<compile_context>
chip_gen: v5e
topology: v5e:2x2
jax: 0.10.0
libtpu: 0.0.40
codegen_flags: <defaults>
</compile_context>

<pallas_src>
import functools

import jax
import jax.numpy as jnp
import numpy as np
from jax.experimental import pallas as pl
from jax.experimental.pallas import tpu as pltpu

EPS = 1e-4        # BatchNorm2d eps
NEG_SLOPE = 0.01  # F.leaky_relu default negative_slope
Z_DIM = 32
_VMEM_LIMIT = 48 * 1024 * 1024   # fits v7x's 64 MiB physical VMEM with headroom


def _pick_tile(n):
    """Batch-tile size.  With more than one tile, block second-to-last dims
    (nb, nb*18, nb*32 rows) must be multiples of 8, so nb must be a multiple
    of 8; a single tile (nb == n, block == full array) has no constraint."""
    if n <= 32:
        return n
    for nb in (16, 8, 32, 24, 40, 56, 64):
        if n % nb == 0:
            return nb
    return n


# ---------------------------------------------------------------------------
# Pallas kernels
# ---------------------------------------------------------------------------
def _conv1_kernel(x_ref, w1b_ref, y_ref, stat_ref):
    rows = x_ref.shape[0]                  # nb*32 (28 valid + 4 halo rows/sample)
    A = rows - 4
    x = x_ref[...]
    # conv1 (1->8, 5x5, pad 2) as 5 banded MXU matmuls; output channel co lives
    # in lanes [28*co, 28*co + 28).
    acc = jnp.zeros((A, 224), jnp.float32)
    for ky in range(5):
        acc = acc + jnp.dot(x[ky:ky + A, :], w1b_ref[ky],
                            preferred_element_type=jnp.float32)
    y_ref[0:A, :] = acc
    y_ref[A:rows, :] = jnp.zeros((4, 224), jnp.float32)   # keep junk rows finite
    # per-column sum / sum-of-squares over valid rows (BatchNorm batch stats)
    rid = jax.lax.broadcasted_iota(jnp.int32, (A, 224), 0)
    ym = jnp.where((rid % 32) < 28, acc, 0.0)
    stat_ref[...] = jnp.zeros_like(stat_ref)
    stat_ref[0:1, :] = jnp.sum(ym, axis=0, keepdims=True)
    stat_ref[1:2, :] = jnp.sum(ym * ym, axis=0, keepdims=True)


def _conv2_kernel(y1_ref, bn1_ref, c1_ref, r1_ref, w2b_ref, y2_ref, stat_ref):
    rows1 = y1_ref.shape[0]                # nb*32
    rows2 = y2_ref.shape[0]                # nb*18
    A2 = rows2 - 4
    # BatchNorm1 (precomputed per-column mu / inv-sigma) + LeakyReLU
    y = (y1_ref[...] - bn1_ref[0:1, :]) * bn1_ref[1:2, :]
    y = jnp.where(y > 0, y, NEG_SLOPE * y)
    # 2x2 max-pool: lane- then sublane-shifted maxes ...
    cm = jnp.maximum(y[:, 0:223], y[:, 1:224])
    rm = jnp.maximum(cm[0:rows1 - 1, :], cm[1:rows1, :])
    # ... then constant 0/1 selection matmuls pick the even rows/cols and
    # re-lay the 8 pooled 14x14 maps as a halo-padded (nb*18, 8*18) tall image.
    u = jnp.dot(rm, c1_ref[...], preferred_element_type=jnp.float32)
    z = jnp.dot(r1_ref[...], u, preferred_element_type=jnp.float32)
    # conv2 (8->4, 5x5, pad 2) as 5 banded MXU matmuls (output padded to 128
    # lanes; lanes >= 56 stay exactly zero).
    acc = jnp.zeros((A2, 128), jnp.float32)
    for ky in range(5):
        acc = acc + jnp.dot(z[ky:ky + A2, :], w2b_ref[ky],
                            preferred_element_type=jnp.float32)
    y2_ref[0:A2, :] = acc
    y2_ref[A2:rows2, :] = jnp.zeros((4, 128), jnp.float32)
    rid = jax.lax.broadcasted_iota(jnp.int32, (A2, 128), 0)
    ym = jnp.where((rid % 18) < 14, acc, 0.0)
    stat_ref[...] = jnp.zeros_like(stat_ref)
    stat_ref[0:1, :] = jnp.sum(ym, axis=0, keepdims=True)
    stat_ref[1:2, :] = jnp.sum(ym * ym, axis=0, keepdims=True)


def _head_kernel(y2_ref, bn2_ref, g2_ref, bfc_ref, o_ref):
    rows2 = y2_ref.shape[0]                # nb*18
    nb = o_ref.shape[0]
    y = (y2_ref[...] - bn2_ref[0:1, :]) * bn2_ref[1:2, :]
    y = jnp.where(y > 0, y, NEG_SLOPE * y)
    cm = jnp.maximum(y[:, 0:127], y[:, 1:128])
    rm = jnp.maximum(cm[0:rows2 - 1, :], cm[1:rows2, :])
    # 2x2 max-pool row selection (g2) + column selection fused with the fc1
    # weight in PyTorch NCHW-flatten order (bfc), one pooled-row index per step.
    out = jnp.zeros((nb, Z_DIM), jnp.float32)
    for i in range(7):
        sel = jnp.dot(g2_ref[i], rm, preferred_element_type=jnp.float32)
        out = out + jnp.dot(sel, bfc_ref[i], preferred_element_type=jnp.float32)
    o_ref[...] = out


# ---------------------------------------------------------------------------
# pallas_call wrappers (1-D batch-tile grid, fully parallel, revisit-free)
# ---------------------------------------------------------------------------
def _compiler_params():
    return pltpu.CompilerParams(dimension_semantics=("parallel",),
                                vmem_limit_bytes=_VMEM_LIMIT)


def _conv1_call(xt, w1b, nb, bt):
    rows = nb * 32
    return pl.pallas_call(
        _conv1_kernel,
        out_shape=(jax.ShapeDtypeStruct((bt * rows, 224), jnp.float32),
                   jax.ShapeDtypeStruct((bt * 8, 224), jnp.float32)),
        grid=(bt,),
        in_specs=[
            pl.BlockSpec((rows, 32), lambda b: (b, 0)),
            pl.BlockSpec((5, 32, 224), lambda b: (0, 0, 0)),
        ],
        out_specs=(
            pl.BlockSpec((rows, 224), lambda b: (b, 0)),
            pl.BlockSpec((8, 224), lambda b: (b, 0)),
        ),
        compiler_params=_compiler_params(),
    )(xt, w1b)


def _conv2_call(y1, bn1, c1, r1, w2b, nb, bt):
    rows1, rows2 = nb * 32, nb * 18
    return pl.pallas_call(
        _conv2_kernel,
        out_shape=(jax.ShapeDtypeStruct((bt * rows2, 128), jnp.float32),
                   jax.ShapeDtypeStruct((bt * 8, 128), jnp.float32)),
        grid=(bt,),
        in_specs=[
            pl.BlockSpec((rows1, 224), lambda b: (b, 0)),
            pl.BlockSpec((8, 224), lambda b: (0, 0)),
            pl.BlockSpec((223, 144), lambda b: (0, 0)),
            pl.BlockSpec((rows2, rows1 - 1), lambda b: (0, 0)),
            pl.BlockSpec((5, 144, 128), lambda b: (0, 0, 0)),
        ],
        out_specs=(
            pl.BlockSpec((rows2, 128), lambda b: (b, 0)),
            pl.BlockSpec((8, 128), lambda b: (b, 0)),
        ),
        compiler_params=_compiler_params(),
    )(y1, bn1, c1, r1, w2b)


def _head_call(y2, bn2, g2, bfc, nb, bt):
    rows2 = nb * 18
    return pl.pallas_call(
        _head_kernel,
        out_shape=jax.ShapeDtypeStruct((bt * nb, Z_DIM), jnp.float32),
        grid=(bt,),
        in_specs=[
            pl.BlockSpec((rows2, 128), lambda b: (b, 0)),
            pl.BlockSpec((8, 128), lambda b: (0, 0)),
            pl.BlockSpec((7, nb, rows2 - 1), lambda b: (0, 0, 0)),
            pl.BlockSpec((7, 127, Z_DIM), lambda b: (0, 0, 0)),
        ],
        out_specs=pl.BlockSpec((nb, Z_DIM), lambda b: (b, 0)),
        compiler_params=_compiler_params(),
    )(y2, bn2, g2, bfc)


# ---------------------------------------------------------------------------
# one-time host-side constant preparation
# ---------------------------------------------------------------------------
def prepare(params, n):
    """Banded conv weights (MXU operands), 0/1 pooling / re-layout selectors
    (with fc1 folded in, NCHW flatten order), tied to the batch size n they
    were built for."""
    nb = _pick_tile(n)
    if n % nb:
        raise ValueError(f"batch {n} not divisible by tile {nb}")
    w1 = np.asarray(params["w1"], np.float32)    # (8, 1, 5, 5)
    w2 = np.asarray(params["w2"], np.float32)    # (4, 8, 5, 5)
    wfc = np.asarray(params["wfc"], np.float32)  # (32, 196)

    # conv1 banded weights: (x rows shifted by ky) @ w1b[ky] accumulates the
    # 5x5 conv with output channel co in lanes [28*co, 28*co+28).
    w1b = np.zeros((5, 32, 224), np.float32)
    for co in range(8):
        for ky in range(5):
            for kx in range(5):
                for j in range(28):
                    w1b[ky, j + kx, 28 * co + j] = w1[co, 0, ky, kx]

    # conv2 banded weights on the halo-padded pooled layout (8 chans x 18 cols);
    # output channel co in lanes [14*co, 14*co+14), padded to 128 lanes.
    w2b = np.zeros((5, 144, 128), np.float32)
    for co in range(4):
        for ci in range(8):
            for ky in range(5):
                for kx in range(5):
                    for j in range(14):
                        w2b[ky, 18 * ci + j + kx, 14 * co + j] = w2[co, ci, ky, kx]

    # pool1 column selector: even pooled columns -> 18-wide halo channel slots
    c1 = np.zeros((223, 144), np.float32)
    for co in range(8):
        for j in range(14):
            c1[28 * co + 2 * j, 18 * co + 2 + j] = 1.0

    # pool1 row selector: even pooled rows -> 18-row halo sample slots
    r1 = np.zeros((nb * 18, nb * 32 - 1), np.float32)
    for k in range(nb):
        for i in range(14):
            r1[18 * k + 2 + i, 32 * k + 2 * i] = 1.0

    # pool2 row selectors (one per pooled row index i) ...
    g2 = np.zeros((7, nb, nb * 18 - 1), np.float32)
    for i in range(7):
        for k in range(nb):
            g2[i, k, 18 * k + 2 * i] = 1.0

    # ... and column selectors fused with fc1 (PyTorch NCHW flatten: 49c+7i+j)
    bfc = np.zeros((7, 127, Z_DIM), np.float32)
    for i in range(7):
        for co in range(4):
            for j in range(7):
                bfc[i, 14 * co + 2 * j, :] = wfc[:, 49 * co + 7 * i + j]

    return {
        "n": n,
        "nb": nb,
        "consts": {
            "w1b": jnp.asarray(w1b),
            "w2b": jnp.asarray(w2b),
            "c1": jnp.asarray(c1),
            "r1": jnp.asarray(r1),
            "g2": jnp.asarray(g2),
            "bfc": jnp.asarray(bfc),
        },
    }


def _bn_consts(stats, n_ch, group, width, count):
    """Reduce per-tile (sum, sum-of-squares) partials into an (8, width)
    constant: row 0 = per-column mu, row 1 = per-column 1/sqrt(var + eps)."""
    s = stats.reshape(-1, 8, width).sum(axis=0)
    cw = n_ch * group
    ch_sum = s[0, :cw].reshape(n_ch, group).sum(axis=1)
    ch_sq = s[1, :cw].reshape(n_ch, group).sum(axis=1)
    mu = ch_sum / count
    var = jnp.maximum(ch_sq / count - mu * mu, 0.0)      # biased variance
    inv = jax.lax.rsqrt(var + EPS)
    mu_w = jnp.zeros((width,), jnp.float32).at[:cw].set(jnp.repeat(mu, group))
    inv_w = jnp.zeros((width,), jnp.float32).at[:cw].set(jnp.repeat(inv, group))
    pad = jnp.zeros((6, width), jnp.float32)
    return jnp.concatenate([mu_w[None, :], inv_w[None, :], pad], axis=0)


# ---------------------------------------------------------------------------
# DeepSVDD_network forward
# ---------------------------------------------------------------------------
@functools.partial(jax.jit, static_argnums=(2,))
def _forward_impl(x_nchw, consts, nb):
    n = x_nchw.shape[0]
    bt = n // nb
    # halo-pad (5x5 conv, pad=2) and stack samples into one "tall" image; the
    # 2-row/col zero border of each sample doubles as the convolution halo.
    xt = jnp.pad(x_nchw, ((0, 0), (0, 0), (2, 2), (2, 2))).reshape(n * 32, 32)
    y1, st1 = _conv1_call(xt, consts["w1b"], nb, bt)
    bn1 = _bn_consts(st1, 8, 28, 224, float(n * 28 * 28))
    y2, st2 = _conv2_call(y1, bn1, consts["c1"], consts["r1"], consts["w2b"],
                          nb, bt)
    bn2 = _bn_consts(st2, 4, 14, 128, float(n * 14 * 14))
    return _head_call(y2, bn2, consts["g2"], consts["bfc"], nb, bt)


def deep_svdd_forward(x_nchw, prep):
    if x_nchw.shape[0] != prep["n"]:
        raise ValueError(f"prepare() was built for batch {prep['n']}, "
                         f"got batch {x_nchw.shape[0]}")
    return _forward_impl(x_nchw, prep["consts"], prep["nb"])


def init_params(key, z_dim=Z_DIM):
    k1, k2, k3 = jax.random.split(key, 3)
    return {
        "w1": 0.1 * jax.random.normal(k1, (8, 1, 5, 5), jnp.float32),
        "w2": 0.1 * jax.random.normal(k2, (4, 8, 5, 5), jnp.float32),
        "wfc": 0.1 * jax.random.normal(k3, (z_dim, 4 * 7 * 7), jnp.float32),
    }


def _reference_forward(x, params):
    """Pure-JAX (non-Pallas) reference matching the PyTorch module."""
    def block(v, wt):
        y = jax.lax.conv_general_dilated(
            v, wt, (1, 1), ((2, 2), (2, 2)),
            dimension_numbers=("NCHW", "OIHW", "NCHW"),
            precision=jax.lax.Precision.HIGHEST)
        mu = jnp.mean(y, axis=(0, 2, 3), keepdims=True)
        var = jnp.mean((y - mu) ** 2, axis=(0, 2, 3), keepdims=True)
        y = (y - mu) * jax.lax.rsqrt(var + EPS)
        y = jnp.where(y > 0, y, NEG_SLOPE * y)
        nn, c, hh, ww = y.shape
        return y.reshape(nn, c, hh // 2, 2, ww // 2, 2).max(axis=(3, 5))

    y = block(block(x, params["w1"]), params["w2"])
    flat = y.reshape(y.shape[0], -1)                 # NCHW flatten, like torch
    return jnp.dot(flat, params["wfc"].T, precision=jax.lax.Precision.HIGHEST)


if __name__ == "__main__":
    key = jax.random.PRNGKey(0)
    kx, kp = jax.random.split(key)
    params = init_params(kp)
    # MNIST-shaped input is required by fc1 (4*7*7 features): batch=2, 1x28x28
    x = jax.random.normal(kx, (2, 1, 28, 28), jnp.float32)

    prep = prepare(params, x.shape[0])
    out = deep_svdd_forward(x, prep)
    jax.block_until_ready(out)
    assert out.shape == (2, Z_DIM) and out.dtype == jnp.float32

    ref = _reference_forward(x, params)
    err = float(jnp.max(jnp.abs(out - ref)))
    assert err < 8e-2, f"kernel/reference mismatch: max |diff| = {err}"
    print("KERNEL_OK")
</pallas_src>

<mosaic_0001>
module attributes {stable_mosaic.version = 11 : i64} {
  func.func @_conv1_kernel(%arg0: i32, %arg1: memref<64x32xf32, #tpu.memory_space<vmem>>, %arg2: memref<5x32x224xf32, #tpu.memory_space<vmem>>, %arg3: memref<64x224xf32, #tpu.memory_space<vmem>>, %arg4: memref<8x224xf32, #tpu.memory_space<vmem>>) attributes {dimension_semantics = [#tpu.dimension_semantics<parallel>], iteration_bounds = array<i64: 1>, scalar_prefetch = 0 : i64, scratch_operands = 0 : i64, tpu.core_type = #tpu.core_type<tc>, window_params = [{transform_indices = @transform_0, window_bounds = array<i64: 64, 32>}, {pipeline_mode = #tpu.pipeline_mode<synchronous>, transform_indices = @transform_1, window_bounds = array<i64: 5, 32, 224>}, {transform_indices = @transform_2, window_bounds = array<i64: 64, 224>}, {transform_indices = @transform_3, window_bounds = array<i64: 8, 224>}]} {
    %c0 = arith.constant 0 : index
    %c0_0 = arith.constant 0 : index
    %0 = vector.load %arg1[%c0, %c0_0] : memref<64x32xf32, #tpu.memory_space<vmem>>, vector<64x32xf32>
    %cst = arith.constant 0.000000e+00 : f32
    %1 = vector.broadcast %cst : f32 to vector<60x224xf32>
    %2 = vector.extract_strided_slice %0 {offsets = [0, 0], sizes = [60, 32], strides = [1, 1]} : vector<64x32xf32> to vector<60x32xf32>
    %c0_1 = arith.constant 0 : index
    %c0_2 = arith.constant 0 : index
    %c0_3 = arith.constant 0 : index
    %3 = vector.load %arg2[%c0_1, %c0_2, %c0_3] : memref<5x32x224xf32, #tpu.memory_space<vmem>>, vector<1x32x224xf32>
    %4 = vector.shape_cast %3 : vector<1x32x224xf32> to vector<32x224xf32>
    %cst_4 = arith.constant dense<0.000000e+00> : vector<60x224xf32>
    %5 = tpu.matmul %2, %4, %cst_4 {dimension_numbers = #tpu.dot_dimension_numbers<[1], [0], [0], [1], [0, 0, 1, 1], [], []>} : vector<60x32xf32>, vector<32x224xf32>, vector<60x224xf32> -> vector<60x224xf32>
    %6 = arith.addf %1, %5 : vector<60x224xf32>
    %7 = vector.extract_strided_slice %0 {offsets = [1, 0], sizes = [60, 32], strides = [1, 1]} : vector<64x32xf32> to vector<60x32xf32>
    %c1 = arith.constant 1 : index
    %c0_5 = arith.constant 0 : index
    %c0_6 = arith.constant 0 : index
    %8 = vector.load %arg2[%c1, %c0_5, %c0_6] : memref<5x32x224xf32, #tpu.memory_space<vmem>>, vector<1x32x224xf32>
    %9 = vector.shape_cast %8 : vector<1x32x224xf32> to vector<32x224xf32>
    %cst_7 = arith.constant dense<0.000000e+00> : vector<60x224xf32>
    %10 = tpu.matmul %7, %9, %cst_7 {dimension_numbers = #tpu.dot_dimension_numbers<[1], [0], [0], [1], [0, 0, 1, 1], [], []>} : vector<60x32xf32>, vector<32x224xf32>, vector<60x224xf32> -> vector<60x224xf32>
    %11 = arith.addf %6, %10 : vector<60x224xf32>
    %12 = vector.extract_strided_slice %0 {offsets = [2, 0], sizes = [60, 32], strides = [1, 1]} : vector<64x32xf32> to vector<60x32xf32>
    %c2 = arith.constant 2 : index
    %c0_8 = arith.constant 0 : index
    %c0_9 = arith.constant 0 : index
    %13 = vector.load %arg2[%c2, %c0_8, %c0_9] : memref<5x32x224xf32, #tpu.memory_space<vmem>>, vector<1x32x224xf32>
    %14 = vector.shape_cast %13 : vector<1x32x224xf32> to vector<32x224xf32>
    %cst_10 = arith.constant dense<0.000000e+00> : vector<60x224xf32>
    %15 = tpu.matmul %12, %14, %cst_10 {dimension_numbers = #tpu.dot_dimension_numbers<[1], [0], [0], [1], [0, 0, 1, 1], [], []>} : vector<60x32xf32>, vector<32x224xf32>, vector<60x224xf32> -> vector<60x224xf32>
    %16 = arith.addf %11, %15 : vector<60x224xf32>
    %17 = vector.extract_strided_slice %0 {offsets = [3, 0], sizes = [60, 32], strides = [1, 1]} : vector<64x32xf32> to vector<60x32xf32>
    %c3 = arith.constant 3 : index
    %c0_11 = arith.constant 0 : index
    %c0_12 = arith.constant 0 : index
    %18 = vector.load %arg2[%c3, %c0_11, %c0_12] : memref<5x32x224xf32, #tpu.memory_space<vmem>>, vector<1x32x224xf32>
    %19 = vector.shape_cast %18 : vector<1x32x224xf32> to vector<32x224xf32>
    %cst_13 = arith.constant dense<0.000000e+00> : vector<60x224xf32>
    %20 = tpu.matmul %17, %19, %cst_13 {dimension_numbers = #tpu.dot_dimension_numbers<[1], [0], [0], [1], [0, 0, 1, 1], [], []>} : vector<60x32xf32>, vector<32x224xf32>, vector<60x224xf32> -> vector<60x224xf32>
    %21 = arith.addf %16, %20 : vector<60x224xf32>
    %22 = vector.extract_strided_slice %0 {offsets = [4, 0], sizes = [60, 32], strides = [1, 1]} : vector<64x32xf32> to vector<60x32xf32>
    %c4 = arith.constant 4 : index
    %c0_14 = arith.constant 0 : index
    %c0_15 = arith.constant 0 : index
    %23 = vector.load %arg2[%c4, %c0_14, %c0_15] : memref<5x32x224xf32, #tpu.memory_space<vmem>>, vector<1x32x224xf32>
    %24 = vector.shape_cast %23 : vector<1x32x224xf32> to vector<32x224xf32>
    %cst_16 = arith.constant dense<0.000000e+00> : vector<60x224xf32>
    %25 = tpu.matmul %22, %24, %cst_16 {dimension_numbers = #tpu.dot_dimension_numbers<[1], [0], [0], [1], [0, 0, 1, 1], [], []>} : vector<60x32xf32>, vector<32x224xf32>, vector<60x224xf32> -> vector<60x224xf32>
    %26 = arith.addf %21, %25 : vector<60x224xf32>
    %c0_17 = arith.constant 0 : index
    %c0_18 = arith.constant 0 : index
    %27 = vector.load %arg3[%c0_17, %c0_18] : memref<64x224xf32, #tpu.memory_space<vmem>>, vector<60x224xf32>
    tpu.vector_store %arg3[%c0_17, %c0_18], %26 {strides = array<i32>} : memref<64x224xf32, #tpu.memory_space<vmem>>, vector<60x224xf32>,
    %cst_19 = arith.constant 0.000000e+00 : f32
    %28 = vector.broadcast %cst_19 : f32 to vector<4x224xf32>
    %c60 = arith.constant 60 : index
    %c0_20 = arith.constant 0 : index
    %29 = vector.load %arg3[%c60, %c0_20] : memref<64x224xf32, #tpu.memory_space<vmem>>, vector<4x224xf32>
    tpu.vector_store %arg3[%c60, %c0_20], %28 {strides = array<i32>} : memref<64x224xf32, #tpu.memory_space<vmem>>, vector<4x224xf32>,
    %30 = tpu.iota {dimensions = array<i32: 0>} : vector<60x224xi32>
    %c32_i32 = arith.constant 32 : i32
    %c0_i32 = arith.constant 0 : i32
    %31 = arith.cmpi eq, %c32_i32, %c0_i32 : i32
    %c1_i32 = arith.constant 1 : i32
    %32 = arith.select %31, %c1_i32, %c32_i32 : i32
    %33 = vector.broadcast %32 : i32 to vector<60x224xi32>
    %34 = arith.remsi %30, %33 : vector<60x224xi32>
    %c0_i32_21 = arith.constant 0 : i32
    %35 = vector.broadcast %c0_i32_21 : i32 to vector<60x224xi32>
    %36 = arith.cmpi ne, %34, %35 : vector<60x224xi32>
    %c0_i32_22 = arith.constant 0 : i32
    %37 = vector.broadcast %c0_i32_22 : i32 to vector<60x224xi32>
    %38 = arith.cmpi slt, %34, %37 : vector<60x224xi32>
    %c0_i32_23 = arith.constant 0 : i32
    %39 = arith.cmpi slt, %32, %c0_i32_23 : i32
    %40 = vector.broadcast %39 : i1 to vector<60x224xi1>
    %41 = vector.broadcast %40 : vector<60x224xi1> to vector<60x224xi1>
    %42 = arith.xori %38, %41 : vector<60x224xi1>
    %43 = arith.andi %42, %36 : vector<60x224xi1>
    %44 = vector.broadcast %32 : i32 to vector<60x224xi32>
    %45 = arith.addi %34, %44 : vector<60x224xi32>
    %46 = arith.select %43, %45, %34 : vector<60x224xi1>, vector<60x224xi32>
    %c28_i32 = arith.constant 28 : i32
    %47 = vector.broadcast %c28_i32 : i32 to vector<60x224xi32>
    %48 = arith.cmpi slt, %46, %47 : vector<60x224xi32>
    %cst_24 = arith.constant 0.000000e+00 : f32
    %49 = vector.broadcast %cst_24 : f32 to vector<60x224xf32>
    %50 = arith.select %48, %26, %49 : vector<60x224xi1>, vector<60x224xf32>
    %cst_25 = arith.constant 0.000000e+00 : f32
    %51 = vector.broadcast %cst_25 : f32 to vector<8x224xf32>
    %c0_26 = arith.constant 0 : index
    %c0_27 = arith.constant 0 : index
    %52 = vector.load %arg4[%c0_26, %c0_27] : memref<8x224xf32, #tpu.memory_space<vmem>>, vector<8x224xf32>
    tpu.vector_store %arg4[%c0_26, %c0_27], %51 {strides = array<i32>} : memref<8x224xf32, #tpu.memory_space<vmem>>, vector<8x224xf32>,
    %cst_28 = arith.constant dense<0.000000e+00> : vector<224xf32>
    %53 = vector.multi_reduction <add>, %50, %cst_28 [0] : vector<60x224xf32> to vector<224xf32>
    %54 = vector.shape_cast %53 : vector<224xf32> to vector<1x224xf32>
    %c0_29 = arith.constant 0 : index
    %c0_30 = arith.constant 0 : index
    %55 = vector.load %arg4[%c0_29, %c0_30] : memref<8x224xf32, #tpu.memory_space<vmem>>, vector<1x224xf32>
    tpu.vector_store %arg4[%c0_29, %c0_30], %54 {strides = array<i32>} : memref<8x224xf32, #tpu.memory_space<vmem>>, vector<1x224xf32>,
    %56 = arith.mulf %50, %50 : vector<60x224xf32>
    %cst_31 = arith.constant dense<0.000000e+00> : vector<224xf32>
    %57 = vector.multi_reduction <add>, %56, %cst_31 [0] : vector<60x224xf32> to vector<224xf32>
    %58 = vector.shape_cast %57 : vector<224xf32> to vector<1x224xf32>
    %c1_32 = arith.constant 1 : index
    %c0_33 = arith.constant 0 : index
    %59 = vector.load %arg4[%c1_32, %c0_33] : memref<8x224xf32, #tpu.memory_space<vmem>>, vector<1x224xf32>
    tpu.vector_store %arg4[%c1_32, %c0_33], %58 {strides = array<i32>} : memref<8x224xf32, #tpu.memory_space<vmem>>, vector<1x224xf32>,
    return
  }
  func.func @transform_0(%arg0: i32) -> (i32, i32) {
    %c0_i32 = arith.constant 0 : i32
    %c0_i32_0 = arith.constant 0 : i32
    return %arg0, %c0_i32 : i32, i32
  }
  func.func @transform_1(%arg0: i32) -> (i32, i32, i32) {
    %c0_i32 = arith.constant 0 : i32
    %c0_i32_0 = arith.constant 0 : i32
    %c0_i32_1 = arith.constant 0 : i32
    %c0_i32_2 = arith.constant 0 : i32
    return %c0_i32, %c0_i32_0, %c0_i32_1 : i32, i32, i32
  }
  func.func @transform_2(%arg0: i32) -> (i32, i32) {
    %c0_i32 = arith.constant 0 : i32
    %c0_i32_0 = arith.constant 0 : i32
    return %arg0, %c0_i32 : i32, i32
  }
  func.func @transform_3(%arg0: i32) -> (i32, i32) {
    %c0_i32 = arith.constant 0 : i32
    %c0_i32_0 = arith.constant 0 : i32
    return %arg0, %c0_i32 : i32, i32
  }
}

module attributes {stable_mosaic.version = 11 : i64} {
  func.func @_conv2_kernel(%arg0: i32, %arg1: memref<64x224xf32, #tpu.memory_space<vmem>>, %arg2: memref<8x224xf32, #tpu.memory_space<vmem>>, %arg3: memref<223x144xf32, #tpu.memory_space<vmem>>, %arg4: memref<36x63xf32, #tpu.memory_space<vmem>>, %arg5: memref<5x144x128xf32, #tpu.memory_space<vmem>>, %arg6: memref<36x128xf32, #tpu.memory_space<vmem>>, %arg7: memref<8x128xf32, #tpu.memory_space<vmem>>) attributes {dimension_semantics = [#tpu.dimension_semantics<parallel>], iteration_bounds = array<i64: 1>, scalar_prefetch = 0 : i64, scratch_operands = 0 : i64, tpu.core_type = #tpu.core_type<tc>, window_params = [{transform_indices = @transform_0, window_bounds = array<i64: 64, 224>}, {pipeline_mode = #tpu.pipeline_mode<synchronous>, transform_indices = @transform_1, window_bounds = array<i64: 8, 224>}, {pipeline_mode = #tpu.pipeline_mode<synchronous>, transform_indices = @transform_2, window_bounds = array<i64: 223, 144>}, {pipeline_mode = #tpu.pipeline_mode<synchronous>, transform_indices = @transform_3, window_bounds = array<i64: 36, 63>}, {pipeline_mode = #tpu.pipeline_mode<synchronous>, transform_indices = @transform_4, window_bounds = array<i64: 5, 144, 128>}, {transform_indices = @transform_5, window_bounds = array<i64: 36, 128>}, {transform_indices = @transform_6, window_bounds = array<i64: 8, 128>}]} {
    %c0 = arith.constant 0 : index
    %c0_0 = arith.constant 0 : index
    %0 = vector.load %arg1[%c0, %c0_0] : memref<64x224xf32, #tpu.memory_space<vmem>>, vector<64x224xf32>
    %c0_1 = arith.constant 0 : index
    %c0_2 = arith.constant 0 : index
    %1 = vector.load %arg2[%c0_1, %c0_2] : memref<8x224xf32, #tpu.memory_space<vmem>>, vector<1x224xf32>
    %2 = vector.broadcast %1 : vector<1x224xf32> to vector<64x224xf32>
    %3 = arith.subf %0, %2 : vector<64x224xf32>
    %c1 = arith.constant 1 : index
    %c0_3 = arith.constant 0 : index
    %4 = vector.load %arg2[%c1, %c0_3] : memref<8x224xf32, #tpu.memory_space<vmem>>, vector<1x224xf32>
    %5 = vector.broadcast %4 : vector<1x224xf32> to vector<64x224xf32>
    %6 = arith.mulf %3, %5 : vector<64x224xf32>
    %cst = arith.constant 0.000000e+00 : f32
    %7 = vector.broadcast %cst : f32 to vector<64x224xf32>
    %8 = arith.cmpf ogt, %6, %7 : vector<64x224xf32>
    %cst_4 = arith.constant 0.00999999977 : f32
    %9 = vector.broadcast %cst_4 : f32 to vector<64x224xf32>
    %10 = arith.mulf %9, %6 : vector<64x224xf32>
    %11 = arith.select %8, %6, %10 : vector<64x224xi1>, vector<64x224xf32>
    %12 = vector.extract_strided_slice %11 {offsets = [0, 0], sizes = [64, 223], strides = [1, 1]} : vector<64x224xf32> to vector<64x223xf32>
    %13 = vector.extract_strided_slice %11 {offsets = [0, 1], sizes = [64, 223], strides = [1, 1]} : vector<64x224xf32> to vector<64x223xf32>
    %14 = arith.maximumf %12, %13 : vector<64x223xf32>
    %15 = vector.extract_strided_slice %14 {offsets = [0, 0], sizes = [63, 223], strides = [1, 1]} : vector<64x223xf32> to vector<63x223xf32>
    %16 = vector.extract_strided_slice %14 {offsets = [1, 0], sizes = [63, 223], strides = [1, 1]} : vector<64x223xf32> to vector<63x223xf32>
    %17 = arith.maximumf %15, %16 : vector<63x223xf32>
    %c0_5 = arith.constant 0 : index
    %c0_6 = arith.constant 0 : index
    %18 = vector.load %arg3[%c0_5, %c0_6] : memref<223x144xf32, #tpu.memory_space<vmem>>, vector<223x144xf32>
    %cst_7 = arith.constant dense<0.000000e+00> : vector<63x144xf32>
    %19 = tpu.matmul %17, %18, %cst_7 {dimension_numbers = #tpu.dot_dimension_numbers<[1], [0], [0], [1], [0, 0, 1, 1], [], []>} : vector<63x223xf32>, vector<223x144xf32>, vector<63x144xf32> -> vector<63x144xf32>
    %c0_8 = arith.constant 0 : index
    %c0_9 = arith.constant 0 : index
    %20 = vector.load %arg4[%c0_8, %c0_9] : memref<36x63xf32, #tpu.memory_space<vmem>>, vector<36x63xf32>
    %cst_10 = arith.constant dense<0.000000e+00> : vector<36x144xf32>
    %21 = tpu.matmul %20, %19, %cst_10 {dimension_numbers = #tpu.dot_dimension_numbers<[1], [0], [0], [1], [0, 0, 1, 1], [], []>} : vector<36x63xf32>, vector<63x144xf32>, vector<36x144xf32> -> vector<36x144xf32>
    %cst_11 = arith.constant 0.000000e+00 : f32
    %22 = vector.broadcast %cst_11 : f32 to vector<32x128xf32>
    %23 = vector.extract_strided_slice %21 {offsets = [0, 0], sizes = [32, 144], strides = [1, 1]} : vector<36x144xf32> to vector<32x144xf32>
    %c0_12 = arith.constant 0 : index
    %c0_13 = arith.constant 0 : index
    %c0_14 = arith.constant 0 : index
    %24 = vector.load %arg5[%c0_12, %c0_13, %c0_14] : memref<5x144x128xf32, #tpu.memory_space<vmem>>, vector<1x144x128xf32>
    %25 = vector.shape_cast %24 : vector<1x144x128xf32> to vector<144x128xf32>
    %cst_15 = arith.constant dense<0.000000e+00> : vector<32x128xf32>
    %26 = tpu.matmul %23, %25, %cst_15 {dimension_numbers = #tpu.dot_dimension_numbers<[1], [0], [0], [1], [0, 0, 1, 1], [], []>} : vector<32x144xf32>, vector<144x128xf32>, vector<32x128xf32> -> vector<32x128xf32>
    %27 = arith.addf %22, %26 : vector<32x128xf32>
    %28 = vector.extract_strided_slice %21 {offsets = [1, 0], sizes = [32, 144], strides = [1, 1]} : vector<36x144xf32> to vector<32x144xf32>
    %c1_16 = arith.constant 1 : index
    %c0_17 = arith.constant 0 : index
    %c0_18 = arith.constant 0 : index
    %29 = vector.load %arg5[%c1_16, %c0_17, %c0_18] : memref<5x144x128xf32, #tpu.memory_space<vmem>>, vector<1x144x128xf32>
    %30 = vector.shape_cast %29 : vector<1x144x128xf32> to vector<144x128xf32>
    %cst_19 = arith.constant dense<0.000000e+00> : vector<32x128xf32>
    %31 = tpu.matmul %28, %30, %cst_19 {dimension_numbers = #tpu.dot_dimension_numbers<[1], [0], [0], [1], [0, 0, 1, 1], [], []>} : vector<32x144xf32>, vector<144x128xf32>, vector<32x128xf32> -> vector<32x128xf32>
    %32 = arith.addf %27, %31 : vector<32x128xf32>
    %33 = vector.extract_strided_slice %21 {offsets = [2, 0], sizes = [32, 144], strides = [1, 1]} : vector<36x144xf32> to vector<32x144xf32>
    %c2 = arith.constant 2 : index
    %c0_20 = arith.constant 0 : index
    %c0_21 = arith.constant 0 : index
    %34 = vector.load %arg5[%c2, %c0_20, %c0_21] : memref<5x144x128xf32, #tpu.memory_space<vmem>>, vector<1x144x128xf32>
    %35 = vector.shape_cast %34 : vector<1x144x128xf32> to vector<144x128xf32>
    %cst_22 = arith.constant dense<0.000000e+00> : vector<32x128xf32>
    %36 = tpu.matmul %33, %35, %cst_22 {dimension_numbers = #tpu.dot_dimension_numbers<[1], [0], [0], [1], [0, 0, 1, 1], [], []>} : vector<32x144xf32>, vector<144x128xf32>, vector<32x128xf32> -> vector<32x128xf32>
    %37 = arith.addf %32, %36 : vector<32x128xf32>
    %38 = vector.extract_strided_slice %21 {offsets = [3, 0], sizes = [32, 144], strides = [1, 1]} : vector<36x144xf32> to vector<32x144xf32>
    %c3 = arith.constant 3 : index
    %c0_23 = arith.constant 0 : index
    %c0_24 = arith.constant 0 : index
    %39 = vector.load %arg5[%c3, %c0_23, %c0_24] : memref<5x144x128xf32, #tpu.memory_space<vmem>>, vector<1x144x128xf32>
    %40 = vector.shape_cast %39 : vector<1x144x128xf32> to vector<144x128xf32>
    %cst_25 = arith.constant dense<0.000000e+00> : vector<32x128xf32>
    %41 = tpu.matmul %38, %40, %cst_25 {dimension_numbers = #tpu.dot_dimension_numbers<[1], [0], [0], [1], [0, 0, 1, 1], [], []>} : vector<32x144xf32>, vector<144x128xf32>, vector<32x128xf32> -> vector<32x128xf32>
    %42 = arith.addf %37, %41 : vector<32x128xf32>
    %43 = vector.extract_strided_slice %21 {offsets = [4, 0], sizes = [32, 144], strides = [1, 1]} : vector<36x144xf32> to vector<32x144xf32>
    %c4 = arith.constant 4 : index
    %c0_26 = arith.constant 0 : index
    %c0_27 = arith.constant 0 : index
    %44 = vector.load %arg5[%c4, %c0_26, %c0_27] : memref<5x144x128xf32, #tpu.memory_space<vmem>>, vector<1x144x128xf32>
    %45 = vector.shape_cast %44 : vector<1x144x128xf32> to vector<144x128xf32>
    %cst_28 = arith.constant dense<0.000000e+00> : vector<32x128xf32>
    %46 = tpu.matmul %43, %45, %cst_28 {dimension_numbers = #tpu.dot_dimension_numbers<[1], [0], [0], [1], [0, 0, 1, 1], [], []>} : vector<32x144xf32>, vector<144x128xf32>, vector<32x128xf32> -> vector<32x128xf32>
    %47 = arith.addf %42, %46 : vector<32x128xf32>
    %c0_29 = arith.constant 0 : index
    %c0_30 = arith.constant 0 : index
    %48 = vector.load %arg6[%c0_29, %c0_30] : memref<36x128xf32, #tpu.memory_space<vmem>>, vector<32x128xf32>
    tpu.vector_store %arg6[%c0_29, %c0_30], %47 {strides = array<i32>} : memref<36x128xf32, #tpu.memory_space<vmem>>, vector<32x128xf32>,
    %cst_31 = arith.constant 0.000000e+00 : f32
    %49 = vector.broadcast %cst_31 : f32 to vector<4x128xf32>
    %c32 = arith.constant 32 : index
    %c0_32 = arith.constant 0 : index
    %50 = vector.load %arg6[%c32, %c0_32] : memref<36x128xf32, #tpu.memory_space<vmem>>, vector<4x128xf32>
    tpu.vector_store %arg6[%c32, %c0_32], %49 {strides = array<i32>} : memref<36x128xf32, #tpu.memory_space<vmem>>, vector<4x128xf32>,
    %51 = tpu.iota {dimensions = array<i32: 0>} : vector<32x128xi32>
    %c18_i32 = arith.constant 18 : i32
    %c0_i32 = arith.constant 0 : i32
    %52 = arith.cmpi eq, %c18_i32, %c0_i32 : i32
    %c1_i32 = arith.constant 1 : i32
    %53 = arith.select %52, %c1_i32, %c18_i32 : i32
    %54 = vector.broadcast %53 : i32 to vector<32x128xi32>
    %55 = arith.remsi %51, %54 : vector<32x128xi32>
    %c0_i32_33 = arith.constant 0 : i32
    %56 = vector.broadcast %c0_i32_33 : i32 to vector<32x128xi32>
    %57 = arith.cmpi ne, %55, %56 : vector<32x128xi32>
    %c0_i32_34 = arith.constant 0 : i32
    %58 = vector.broadcast %c0_i32_34 : i32 to vector<32x128xi32>
    %59 = arith.cmpi slt, %55, %58 : vector<32x128xi32>
    %c0_i32_35 = arith.constant 0 : i32
    %60 = arith.cmpi slt, %53, %c0_i32_35 : i32
    %61 = vector.broadcast %60 : i1 to vector<32x128xi1>
    %62 = vector.broadcast %61 : vector<32x128xi1> to vector<32x128xi1>
    %63 = arith.xori %59, %62 : vector<32x128xi1>
    %64 = arith.andi %63, %57 : vector<32x128xi1>
    %65 = vector.broadcast %53 : i32 to vector<32x128xi32>
    %66 = arith.addi %55, %65 : vector<32x128xi32>
    %67 = arith.select %64, %66, %55 : vector<32x128xi1>, vector<32x128xi32>
    %c14_i32 = arith.constant 14 : i32
    %68 = vector.broadcast %c14_i32 : i32 to vector<32x128xi32>
    %69 = arith.cmpi slt, %67, %68 : vector<32x128xi32>
    %cst_36 = arith.constant 0.000000e+00 : f32
    %70 = vector.broadcast %cst_36 : f32 to vector<32x128xf32>
    %71 = arith.select %69, %47, %70 : vector<32x128xi1>, vector<32x128xf32>
    %cst_37 = arith.constant 0.000000e+00 : f32
    %72 = vector.broadcast %cst_37 : f32 to vector<8x128xf32>
    %c0_38 = arith.constant 0 : index
    %c0_39 = arith.constant 0 : index
    %73 = vector.load %arg7[%c0_38, %c0_39] : memref<8x128xf32, #tpu.memory_space<vmem>>, vector<8x128xf32>
    tpu.vector_store %arg7[%c0_38, %c0_39], %72 {strides = array<i32>} : memref<8x128xf32, #tpu.memory_space<vmem>>, vector<8x128xf32>,
    %cst_40 = arith.constant dense<0.000000e+00> : vector<128xf32>
    %74 = vector.multi_reduction <add>, %71, %cst_40 [0] : vector<32x128xf32> to vector<128xf32>
    %75 = vector.shape_cast %74 : vector<128xf32> to vector<1x128xf32>
    %c0_41 = arith.constant 0 : index
    %c0_42 = arith.constant 0 : index
    %76 = vector.load %arg7[%c0_41, %c0_42] : memref<8x128xf32, #tpu.memory_space<vmem>>, vector<1x128xf32>
    tpu.vector_store %arg7[%c0_41, %c0_42], %75 {strides = array<i32>} : memref<8x128xf32, #tpu.memory_space<vmem>>, vector<1x128xf32>,
    %77 = arith.mulf %71, %71 : vector<32x128xf32>
    %cst_43 = arith.constant dense<0.000000e+00> : vector<128xf32>
    %78 = vector.multi_reduction <add>, %77, %cst_43 [0] : vector<32x128xf32> to vector<128xf32>
    %79 = vector.shape_cast %78 : vector<128xf32> to vector<1x128xf32>
    %c1_44 = arith.constant 1 : index
    %c0_45 = arith.constant 0 : index
    %80 = vector.load %arg7[%c1_44, %c0_45] : memref<8x128xf32, #tpu.memory_space<vmem>>, vector<1x128xf32>
    tpu.vector_store %arg7[%c1_44, %c0_45], %79 {strides = array<i32>} : memref<8x128xf32, #tpu.memory_space<vmem>>, vector<1x128xf32>,
    return
  }
  func.func @transform_0(%arg0: i32) -> (i32, i32) {
    %c0_i32 = arith.constant 0 : i32
    %c0_i32_0 = arith.constant 0 : i32
    return %arg0, %c0_i32 : i32, i32
  }
  func.func @transform_1(%arg0: i32) -> (i32, i32) {
    %c0_i32 = arith.constant 0 : i32
    %c0_i32_0 = arith.constant 0 : i32
    %c0_i32_1 = arith.constant 0 : i32
    return %c0_i32, %c0_i32_0 : i32, i32
  }
  func.func @transform_2(%arg0: i32) -> (i32, i32) {
    %c0_i32 = arith.constant 0 : i32
    %c0_i32_0 = arith.constant 0 : i32
    %c0_i32_1 = arith.constant 0 : i32
    return %c0_i32, %c0_i32_0 : i32, i32
  }
  func.func @transform_3(%arg0: i32) -> (i32, i32) {
    %c0_i32 = arith.constant 0 : i32
    %c0_i32_0 = arith.constant 0 : i32
    %c0_i32_1 = arith.constant 0 : i32
    return %c0_i32, %c0_i32_0 : i32, i32
  }
  func.func @transform_4(%arg0: i32) -> (i32, i32, i32) {
    %c0_i32 = arith.constant 0 : i32
    %c0_i32_0 = arith.constant 0 : i32
    %c0_i32_1 = arith.constant 0 : i32
    %c0_i32_2 = arith.constant 0 : i32
    return %c0_i32, %c0_i32_0, %c0_i32_1 : i32, i32, i32
  }
  func.func @transform_5(%arg0: i32) -> (i32, i32) {
    %c0_i32 = arith.constant 0 : i32
    %c0_i32_0 = arith.constant 0 : i32
    return %arg0, %c0_i32 : i32, i32
  }
  func.func @transform_6(%arg0: i32) -> (i32, i32) {
    %c0_i32 = arith.constant 0 : i32
    %c0_i32_0 = arith.constant 0 : i32
    return %arg0, %c0_i32 : i32, i32
  }
}

module attributes {stable_mosaic.version = 11 : i64} {
  func.func @_head_kernel(%arg0: i32, %arg1: memref<36x128xf32, #tpu.memory_space<vmem>>, %arg2: memref<8x128xf32, #tpu.memory_space<vmem>>, %arg3: memref<7x2x35xf32, #tpu.memory_space<vmem>>, %arg4: memref<7x127x32xf32, #tpu.memory_space<vmem>>, %arg5: memref<2x32xf32, #tpu.memory_space<vmem>>) attributes {dimension_semantics = [#tpu.dimension_semantics<parallel>], iteration_bounds = array<i64: 1>, scalar_prefetch = 0 : i64, scratch_operands = 0 : i64, tpu.core_type = #tpu.core_type<tc>, window_params = [{transform_indices = @transform_0, window_bounds = array<i64: 36, 128>}, {pipeline_mode = #tpu.pipeline_mode<synchronous>, transform_indices = @transform_1, window_bounds = array<i64: 8, 128>}, {pipeline_mode = #tpu.pipeline_mode<synchronous>, transform_indices = @transform_2, window_bounds = array<i64: 7, 2, 35>}, {pipeline_mode = #tpu.pipeline_mode<synchronous>, transform_indices = @transform_3, window_bounds = array<i64: 7, 127, 32>}, {transform_indices = @transform_4, window_bounds = array<i64: 2, 32>}]} {
    %c0 = arith.constant 0 : index
    %c0_0 = arith.constant 0 : index
    %0 = vector.load %arg1[%c0, %c0_0] : memref<36x128xf32, #tpu.memory_space<vmem>>, vector<36x128xf32>
    %c0_1 = arith.constant 0 : index
    %c0_2 = arith.constant 0 : index
    %1 = vector.load %arg2[%c0_1, %c0_2] : memref<8x128xf32, #tpu.memory_space<vmem>>, vector<1x128xf32>
    %2 = vector.broadcast %1 : vector<1x128xf32> to vector<36x128xf32>
    %3 = arith.subf %0, %2 : vector<36x128xf32>
    %c1 = arith.constant 1 : index
    %c0_3 = arith.constant 0 : index
    %4 = vector.load %arg2[%c1, %c0_3] : memref<8x128xf32, #tpu.memory_space<vmem>>, vector<1x128xf32>
    %5 = vector.broadcast %4 : vector<1x128xf32> to vector<36x128xf32>
    %6 = arith.mulf %3, %5 : vector<36x128xf32>
    %cst = arith.constant 0.000000e+00 : f32
    %7 = vector.broadcast %cst : f32 to vector<36x128xf32>
    %8 = arith.cmpf ogt, %6, %7 : vector<36x128xf32>
    %cst_4 = arith.constant 0.00999999977 : f32
    %9 = vector.broadcast %cst_4 : f32 to vector<36x128xf32>
    %10 = arith.mulf %9, %6 : vector<36x128xf32>
    %11 = arith.select %8, %6, %10 : vector<36x128xi1>, vector<36x128xf32>
    %12 = vector.extract_strided_slice %11 {offsets = [0, 0], sizes = [36, 127], strides = [1, 1]} : vector<36x128xf32> to vector<36x127xf32>
    %13 = vector.extract_strided_slice %11 {offsets = [0, 1], sizes = [36, 127], strides = [1, 1]} : vector<36x128xf32> to vector<36x127xf32>
    %14 = arith.maximumf %12, %13 : vector<36x127xf32>
    %15 = vector.extract_strided_slice %14 {offsets = [0, 0], sizes = [35, 127], strides = [1, 1]} : vector<36x127xf32> to vector<35x127xf32>
    %16 = vector.extract_strided_slice %14 {offsets = [1, 0], sizes = [35, 127], strides = [1, 1]} : vector<36x127xf32> to vector<35x127xf32>
    %17 = arith.maximumf %15, %16 : vector<35x127xf32>
    %cst_5 = arith.constant 0.000000e+00 : f32
    %18 = vector.broadcast %cst_5 : f32 to vector<2x32xf32>
    %c0_6 = arith.constant 0 : index
    %c0_7 = arith.constant 0 : index
    %c0_8 = arith.constant 0 : index
    %19 = vector.load %arg3[%c0_6, %c0_7, %c0_8] : memref<7x2x35xf32, #tpu.memory_space<vmem>>, vector<1x2x35xf32>
    %20 = vector.shape_cast %19 : vector<1x2x35xf32> to vector<2x35xf32>
    %cst_9 = arith.constant dense<0.000000e+00> : vector<2x127xf32>
    %21 = tpu.matmul %20, %17, %cst_9 {dimension_numbers = #tpu.dot_dimension_numbers<[1], [0], [0], [1], [0, 0, 1, 1], [], []>} : vector<2x35xf32>, vector<35x127xf32>, vector<2x127xf32> -> vector<2x127xf32>
    %c0_10 = arith.constant 0 : index
    %c0_11 = arith.constant 0 : index
    %c0_12 = arith.constant 0 : index
    %22 = vector.load %arg4[%c0_10, %c0_11, %c0_12] : memref<7x127x32xf32, #tpu.memory_space<vmem>>, vector<1x127x32xf32>
    %23 = vector.shape_cast %22 : vector<1x127x32xf32> to vector<127x32xf32>
    %cst_13 = arith.constant dense<0.000000e+00> : vector<2x32xf32>
    %24 = tpu.matmul %21, %23, %cst_13 {dimension_numbers = #tpu.dot_dimension_numbers<[1], [0], [0], [1], [0, 0, 1, 1], [], []>} : vector<2x127xf32>, vector<127x32xf32>, vector<2x32xf32> -> vector<2x32xf32>
    %25 = arith.addf %18, %24 : vector<2x32xf32>
    %c1_14 = arith.constant 1 : index
    %c0_15 = arith.constant 0 : index
    %c0_16 = arith.constant 0 : index
    %26 = vector.load %arg3[%c1_14, %c0_15, %c0_16] : memref<7x2x35xf32, #tpu.memory_space<vmem>>, vector<1x2x35xf32>
    %27 = vector.shape_cast %26 : vector<1x2x35xf32> to vector<2x35xf32>
    %cst_17 = arith.constant dense<0.000000e+00> : vector<2x127xf32>
    %28 = tpu.matmul %27, %17, %cst_17 {dimension_numbers = #tpu.dot_dimension_numbers<[1], [0], [0], [1], [0, 0, 1, 1], [], []>} : vector<2x35xf32>, vector<35x127xf32>, vector<2x127xf32> -> vector<2x127xf32>
    %c1_18 = arith.constant 1 : index
    %c0_19 = arith.constant 0 : index
    %c0_20 = arith.constant 0 : index
    %29 = vector.load %arg4[%c1_18, %c0_19, %c0_20] : memref<7x127x32xf32, #tpu.memory_space<vmem>>, vector<1x127x32xf32>
    %30 = vector.shape_cast %29 : vector<1x127x32xf32> to vector<127x32xf32>
    %cst_21 = arith.constant dense<0.000000e+00> : vector<2x32xf32>
    %31 = tpu.matmul %28, %30, %cst_21 {dimension_numbers = #tpu.dot_dimension_numbers<[1], [0], [0], [1], [0, 0, 1, 1], [], []>} : vector<2x127xf32>, vector<127x32xf32>, vector<2x32xf32> -> vector<2x32xf32>
    %32 = arith.addf %25, %31 : vector<2x32xf32>
    %c2 = arith.constant 2 : index
    %c0_22 = arith.constant 0 : index
    %c0_23 = arith.constant 0 : index
    %33 = vector.load %arg3[%c2, %c0_22, %c0_23] : memref<7x2x35xf32, #tpu.memory_space<vmem>>, vector<1x2x35xf32>
    %34 = vector.shape_cast %33 : vector<1x2x35xf32> to vector<2x35xf32>
    %cst_24 = arith.constant dense<0.000000e+00> : vector<2x127xf32>
    %35 = tpu.matmul %34, %17, %cst_24 {dimension_numbers = #tpu.dot_dimension_numbers<[1], [0], [0], [1], [0, 0, 1, 1], [], []>} : vector<2x35xf32>, vector<35x127xf32>, vector<2x127xf32> -> vector<2x127xf32>
    %c2_25 = arith.constant 2 : index
    %c0_26 = arith.constant 0 : index
    %c0_27 = arith.constant 0 : index
    %36 = vector.load %arg4[%c2_25, %c0_26, %c0_27] : memref<7x127x32xf32, #tpu.memory_space<vmem>>, vector<1x127x32xf32>
    %37 = vector.shape_cast %36 : vector<1x127x32xf32> to vector<127x32xf32>
    %cst_28 = arith.constant dense<0.000000e+00> : vector<2x32xf32>
    %38 = tpu.matmul %35, %37, %cst_28 {dimension_numbers = #tpu.dot_dimension_numbers<[1], [0], [0], [1], [0, 0, 1, 1], [], []>} : vector<2x127xf32>, vector<127x32xf32>, vector<2x32xf32> -> vector<2x32xf32>
    %39 = arith.addf %32, %38 : vector<2x32xf32>
    %c3 = arith.constant 3 : index
    %c0_29 = arith.constant 0 : index
    %c0_30 = arith.constant 0 : index
    %40 = vector.load %arg3[%c3, %c0_29, %c0_30] : memref<7x2x35xf32, #tpu.memory_space<vmem>>, vector<1x2x35xf32>
    %41 = vector.shape_cast %40 : vector<1x2x35xf32> to vector<2x35xf32>
    %cst_31 = arith.constant dense<0.000000e+00> : vector<2x127xf32>
    %42 = tpu.matmul %41, %17, %cst_31 {dimension_numbers = #tpu.dot_dimension_numbers<[1], [0], [0], [1], [0, 0, 1, 1], [], []>} : vector<2x35xf32>, vector<35x127xf32>, vector<2x127xf32> -> vector<2x127xf32>
    %c3_32 = arith.constant 3 : index
    %c0_33 = arith.constant 0 : index
    %c0_34 = arith.constant 0 : index
    %43 = vector.load %arg4[%c3_32, %c0_33, %c0_34] : memref<7x127x32xf32, #tpu.memory_space<vmem>>, vector<1x127x32xf32>
    %44 = vector.shape_cast %43 : vector<1x127x32xf32> to vector<127x32xf32>
    %cst_35 = arith.constant dense<0.000000e+00> : vector<2x32xf32>
    %45 = tpu.matmul %42, %44, %cst_35 {dimension_numbers = #tpu.dot_dimension_numbers<[1], [0], [0], [1], [0, 0, 1, 1], [], []>} : vector<2x127xf32>, vector<127x32xf32>, vector<2x32xf32> -> vector<2x32xf32>
    %46 = arith.addf %39, %45 : vector<2x32xf32>
    %c4 = arith.constant 4 : index
    %c0_36 = arith.constant 0 : index
    %c0_37 = arith.constant 0 : index
    %47 = vector.load %arg3[%c4, %c0_36, %c0_37] : memref<7x2x35xf32, #tpu.memory_space<vmem>>, vector<1x2x35xf32>
    %48 = vector.shape_cast %47 : vector<1x2x35xf32> to vector<2x35xf32>
    %cst_38 = arith.constant dense<0.000000e+00> : vector<2x127xf32>
    %49 = tpu.matmul %48, %17, %cst_38 {dimension_numbers = #tpu.dot_dimension_numbers<[1], [0], [0], [1], [0, 0, 1, 1], [], []>} : vector<2x35xf32>, vector<35x127xf32>, vector<2x127xf32> -> vector<2x127xf32>
    %c4_39 = arith.constant 4 : index
    %c0_40 = arith.constant 0 : index
    %c0_41 = arith.constant 0 : index
    %50 = vector.load %arg4[%c4_39, %c0_40, %c0_41] : memref<7x127x32xf32, #tpu.memory_space<vmem>>, vector<1x127x32xf32>
    %51 = vector.shape_cast %50 : vector<1x127x32xf32> to vector<127x32xf32>
    %cst_42 = arith.constant dense<0.000000e+00> : vector<2x32xf32>
    %52 = tpu.matmul %49, %51, %cst_42 {dimension_numbers = #tpu.dot_dimension_numbers<[1], [0], [0], [1], [0, 0, 1, 1], [], []>} : vector<2x127xf32>, vector<127x32xf32>, vector<2x32xf32> -> vector<2x32xf32>
    %53 = arith.addf %46, %52 : vector<2x32xf32>
    %c5 = arith.constant 5 : index
    %c0_43 = arith.constant 0 : index
    %c0_44 = arith.constant 0 : index
    %54 = vector.load %arg3[%c5, %c0_43, %c0_44] : memref<7x2x35xf32, #tpu.memory_space<vmem>>, vector<1x2x35xf32>
    %55 = vector.shape_cast %54 : vector<1x2x35xf32> to vector<2x35xf32>
    %cst_45 = arith.constant dense<0.000000e+00> : vector<2x127xf32>
    %56 = tpu.matmul %55, %17, %cst_45 {dimension_numbers = #tpu.dot_dimension_numbers<[1], [0], [0], [1], [0, 0, 1, 1], [], []>} : vector<2x35xf32>, vector<35x127xf32>, vector<2x127xf32> -> vector<2x127xf32>
    %c5_46 = arith.constant 5 : index
    %c0_47 = arith.constant 0 : index
    %c0_48 = arith.constant 0 : index
    %57 = vector.load %arg4[%c5_46, %c0_47, %c0_48] : memref<7x127x32xf32, #tpu.memory_space<vmem>>, vector<1x127x32xf32>
    %58 = vector.shape_cast %57 : vector<1x127x32xf32> to vector<127x32xf32>
    %cst_49 = arith.constant dense<0.000000e+00> : vector<2x32xf32>
    %59 = tpu.matmul %56, %58, %cst_49 {dimension_numbers = #tpu.dot_dimension_numbers<[1], [0], [0], [1], [0, 0, 1, 1], [], []>} : vector<2x127xf32>, vector<127x32xf32>, vector<2x32xf32> -> vector<2x32xf32>
    %60 = arith.addf %53, %59 : vector<2x32xf32>
    %c6 = arith.constant 6 : index
    %c0_50 = arith.constant 0 : index
    %c0_51 = arith.constant 0 : index
    %61 = vector.load %arg3[%c6, %c0_50, %c0_51] : memref<7x2x35xf32, #tpu.memory_space<vmem>>, vector<1x2x35xf32>
    %62 = vector.shape_cast %61 : vector<1x2x35xf32> to vector<2x35xf32>
    %cst_52 = arith.constant dense<0.000000e+00> : vector<2x127xf32>
    %63 = tpu.matmul %62, %17, %cst_52 {dimension_numbers = #tpu.dot_dimension_numbers<[1], [0], [0], [1], [0, 0, 1, 1], [], []>} : vector<2x35xf32>, vector<35x127xf32>, vector<2x127xf32> -> vector<2x127xf32>
    %c6_53 = arith.constant 6 : index
    %c0_54 = arith.constant 0 : index
    %c0_55 = arith.constant 0 : index
    %64 = vector.load %arg4[%c6_53, %c0_54, %c0_55] : memref<7x127x32xf32, #tpu.memory_space<vmem>>, vector<1x127x32xf32>
    %65 = vector.shape_cast %64 : vector<1x127x32xf32> to vector<127x32xf32>
    %cst_56 = arith.constant dense<0.000000e+00> : vector<2x32xf32>
    %66 = tpu.matmul %63, %65, %cst_56 {dimension_numbers = #tpu.dot_dimension_numbers<[1], [0], [0], [1], [0, 0, 1, 1], [], []>} : vector<2x127xf32>, vector<127x32xf32>, vector<2x32xf32> -> vector<2x32xf32>
    %67 = arith.addf %60, %66 : vector<2x32xf32>
    %c0_57 = arith.constant 0 : index
    %c0_58 = arith.constant 0 : index
    %68 = vector.load %arg5[%c0_57, %c0_58] : memref<2x32xf32, #tpu.memory_space<vmem>>, vector<2x32xf32>
    tpu.vector_store %arg5[%c0_57, %c0_58], %67 {strides = array<i32>} : memref<2x32xf32, #tpu.memory_space<vmem>>, vector<2x32xf32>,
    return
  }
  func.func @transform_0(%arg0: i32) -> (i32, i32) {
    %c0_i32 = arith.constant 0 : i32
    %c0_i32_0 = arith.constant 0 : i32
    return %arg0, %c0_i32 : i32, i32
  }
  func.func @transform_1(%arg0: i32) -> (i32, i32) {
    %c0_i32 = arith.constant 0 : i32
    %c0_i32_0 = arith.constant 0 : i32
    %c0_i32_1 = arith.constant 0 : i32
    return %c0_i32, %c0_i32_0 : i32, i32
  }
  func.func @transform_2(%arg0: i32) -> (i32, i32, i32) {
    %c0_i32 = arith.constant 0 : i32
    %c0_i32_0 = arith.constant 0 : i32
    %c0_i32_1 = arith.constant 0 : i32
    %c0_i32_2 = arith.constant 0 : i32
    return %c0_i32, %c0_i32_0, %c0_i32_1 : i32, i32, i32
  }
  func.func @transform_3(%arg0: i32) -> (i32, i32, i32) {
    %c0_i32 = arith.constant 0 : i32
    %c0_i32_0 = arith.constant 0 : i32
    %c0_i32_1 = arith.constant 0 : i32
    %c0_i32_2 = arith.constant 0 : i32
    return %c0_i32, %c0_i32_0, %c0_i32_1 : i32, i32, i32
  }
  func.func @transform_4(%arg0: i32) -> (i32, i32) {
    %c0_i32 = arith.constant 0 : i32
    %c0_i32_0 = arith.constant 0 : i32
    return %arg0, %c0_i32 : i32, i32
  }
}

</mosaic_0001>

<bundles_post_ra>
// kernel: squeeze.5
= control target key start
LH: loop header
LB: loop body
LE: loop exit
PB: predicated region body
PF: predicated region fallthrough
CT: control target
= control target key end

     0   :  { %s77_s8 = smov 100   ;;  %vm51_vm0 = vcmask 916480   ;;  %s78_s9 = smov 72   ;;  %vm7_vm1 = vcmask 228352   ;;  %vm55_vm2 = vcmask 130048   ;;  %vm58_vm3 = vcmask 228480   ;;  %s130_s0 = inlined_call_operand.vmem [shape: f32[224], index: 0, kind: input, shape index: {}]   ;;  %s131_s1 = inlined_call_operand.vmem [shape: f32[8,28], index: 1, kind: output, shape index: {}]  }
   0x1   :  { %v4_v0 = vld [vmem:[%s130_s0] sm:$0x3]  ;;  %s76_s0 = smov 116   ;;  %s79_s10 = smov 16  }
   0x2   :  { %5 = vst [vmem:[#allocation0] sm:$0x3] %v4_v0  ;;  %s80_s11 = smov 88   ;;  %s81_s12 = smov 60  }
   0x3   :  { %s82_s13 = smov 44  }
   0x9   :  { %v10_v1 = vld [vmem:[#allocation0 + $0x1] sm:$0x1]   ;;  %v16_v2 = vld [vmem:[#allocation0] sm:$0x1]  }
   0xa   :  { %11 = vrot.lane.b32.xlu0 %v10_v1, %s76_s0  ;;  %17 = vrot.lane.b32.xlu1 %v16_v2, %s77_s8  ;;  %v29_v3 = vld [vmem:[#allocation0] sm:$0x1]   ;;  %v50_v5 = vld [vmem:[#allocation0 + $0x1] sm:$0x1]  }
   0xb   :  { %v48_v4 = vld [vmem:[#allocation0] sm:$0x1]   ;;  %30 = vrot.lane.b32.xlu2 %v29_v3, %s78_s9  ;;  %v23_v7 = vld [vmem:[#allocation0 + $0x1] sm:$0x1]  }
   0xc   :  { %v52_v6 = vsel %vm51_vm0, %v50_v5, %v48_v4  ;;  %v36_v8 = vld [vmem:[#allocation0 + $0x1] sm:$0x1]   ;;  %v42_v9 = vld [vmem:[#allocation0] sm:$0x1]  }
   0xd   :  { %v6_v10 = vld [vmem:[#allocation0] sm:$0x1]  }
   0xe   :  { %8 = vst.msk [vmem:[%s131_s1] sm:$0x1] %vm7_vm1, %v6_v10  }
  0x12   :  { %53 = vrot.lane.b32.xlu0 %v52_v6, %s79_s10  ;;  %24 = vrot.lane.b32.xlu1 %v23_v7, %s80_s11 }
  0x13   :  { %37 = vrot.lane.b32.xlu2 %v36_v8, %s81_s12 }
  0x1a   :  { %43 = vrot.lane.b32.xlu0 %v42_v9, %s82_s13 }
  0x65   :  { %v31_v11 = vpop.permute.xlu2 %30  }
  0x66   :  { %64 = vst.msk [vmem:[%s131_s1 + $0x2] sm:$0x1] %vm7_vm1, %v31_v11  }
  0x6d   :  { %v38_v12 = vpop.permute.xlu2 %37  }
  0x6e   :  { %65 = vst.msk [vmem:[%s131_s1 + $0x7] sm:$0x1] %vm7_vm1, %v38_v12  }
  0x7c   :  { %v12_v13 = vpop.permute.xlu0 %11   ;;  %v18_v14 = vpop.permute.xlu1 %17  }
  0x7d   :  { %61 = vst.msk [vmem:[%s131_s1 + $0x5] sm:$0x1] %vm7_vm1, %v12_v13  }
  0x7e   :  { %62 = vst.msk [vmem:[%s131_s1 + $0x1] sm:$0x1] %vm7_vm1, %v18_v14  }
  0x84   :  { %v54_v15 = vpop.permute.xlu0 %53   ;;  %v25_v16 = vpop.permute.xlu1 %24  }
  0x85   :  { %67 = vst.msk [vmem:[%s131_s1 + $0x4] sm:$0x1] %vm55_vm2, %v54_v15  }
  0x86   :  { %68 = vst.msk [vmem:[%s131_s1 + $0x4] sm:$0x1] %vm58_vm3, %v54_v15  }
  0x87   :  { %63 = vst.msk [vmem:[%s131_s1 + $0x6] sm:$0x1] %vm7_vm1, %v25_v16  }
  0x8c   :  { %v44_v17 = vpop.permute.xlu0 %43  }
  0x8d   :  { %66 = vst.msk [vmem:[%s131_s1 + $0x3] sm:$0x1] %vm7_vm1, %v44_v17  }

// kernel: squeeze.6
= control target key start
LH: loop header
LB: loop body
LE: loop exit
PB: predicated region body
PF: predicated region fallthrough
CT: control target
= control target key end

     0   :  { %s37_s8 = smov 86   ;;  %s38_s9 = smov 100   ;;  %vm7_vm0 = vcmask 113664   ;;  %s55_s0 = inlined_call_operand.vmem [shape: f32[56], index: 0, kind: input, shape index: {}]   ;;  %s56_s1 = inlined_call_operand.vmem [shape: f32[4,14], index: 1, kind: output, shape index: {}]  }
   0x1   :  { %v4_v0 = vld [vmem:[%s55_s0] sm:$0x1]  ;;  %s36_s0 = smov 114  }
   0x2   :  { %5 = vst [vmem:[#allocation1] sm:$0x1] %v4_v0 }
   0x9   :  { %v9_v1 = vld [vmem:[#allocation1] sm:$0x1]  }
   0xa   :  { %v21_v2 = vld [vmem:[#allocation1] sm:$0x1]   ;;  %10 = vrot.lane.b32.xlu0 %v9_v1, %s36_s0 }
   0xb   :  { %22 = vrot.lane.b32.xlu1 %v21_v2, %s37_s8  ;;  %v15_v3 = vld [vmem:[#allocation1] sm:$0x1]  }
   0xc   :  { %v6_v4 = vld [vmem:[#allocation1] sm:$0x1]  }
   0xd   :  { %8 = vst.msk [vmem:[#allocation0] sm:$0x1] %vm7_vm0, %v6_v4  }
  0x12   :  { %16 = vrot.lane.b32.xlu0 %v15_v3, %s38_s9 }
  0x7c   :  { %v11_v5 = vpop.permute.xlu0 %10  }
  0x7d   :  { %v23_v6 = vpop.permute.xlu1 %22   ;;  %14 = vst.msk [vmem:[#allocation0 + $0x1] sm:$0x1] %vm7_vm0, %v11_v5  }
  0x7e   :  { %26 = vst.msk [vmem:[#allocation0 + $0x3] sm:$0x1] %vm7_vm0, %v23_v6  }
  0x84   :  { %v17_v7 = vpop.permute.xlu0 %16  }
  0x85   :  { %20 = vst.msk [vmem:[#allocation0 + $0x2] sm:$0x1] %vm7_vm0, %v17_v7  }
  0x8c   :  { %v29_v8 = vld [vmem:[#allocation0] sm:$0xf] }
  0x8d   :  { %32 = vst [vmem:[%s56_s1] sm:$0xf] %v29_v8 }

// kernel: _forward_impl.3
= control target key start
LH: loop header
LB: loop body
LE: loop exit
PB: predicated region body
PF: predicated region fallthrough
CT: control target
= control target key end

     0   :  { %9 = vsyncpa [#allocation3], 0  ;;  %s1078_s15 = smov [#allocation2]   ;;  %s1079_s17 = smov 256   ;;  %s1515_s0 = inlined_call_operand.vmem [shape: f32[64,32], index: 0, kind: input, shape index: {}]   ;;  %s1516_s1 = inlined_call_operand.hbm [shape: f32[5,32,224], index: 1, kind: input, shape index: {}]   ;;  %s1517_s2 = inlined_call_operand.vmem [shape: f32[64,224], index: 2, kind: output, shape index: {0}]   ;;  %s1518_s3 = inlined_call_operand.vmem [shape: f32[8,224], index: 3, kind: output, shape index: {1}]  }
   0x1   :  { %s16_s14 = sshll.u32 %s1516_s1, 4  ;;  %s18_s16 = sshll.u32 %s1078_s15, 4  ;;  %s17_s14 = int_to_ptr.hbm [resolvable:$true] %s16_s14  ;;  %s19_s16 = int_to_ptr.vmem [resolvable:$true] %s18_s16 }
   0x2   :  { %s1080_s18 = smov 16  }
   0x3   :  { %24 = dma.hbm_to_vmem [thread:$0]  %s17_s14, 5120, %s19_s16, [#allocation3], %s1079_s17, %s1079_s17, %s1080_s18  }
   0x4   :  { %1076 = dma.done.wait [#allocation3], 5120  }
   0x5   :  { %1077 = vsyncadd [#allocation3], 4294962176  ;;  %v52_v0 = vld [vmem:[#allocation2 + $0x70] sm:$0xff]  ;;  %v53_v1 = vld [vmem:[#allocation2 + $0x78] sm:$0xff]  ;;  %vm62_vm0 = vcmask 1046528   ;;  %vm78_vm1 = vcmask 261120  }
   0x6   :  { %v50_v2 = vld [vmem:[#allocation2 + $0x60] sm:$0xff]  ;;  %1040 = vmatpush.msra.mxu2 %v52_v0  ;;  %1044 = vmatpush.msra.mxu3 %v53_v1  ;;  %v51_v3 = vld [vmem:[#allocation2 + $0x68] sm:$0xff]  ;;  %v48_v4 = vld [vmem:[#allocation2 + $0x50] sm:$0xff]  ;;  %vm284_vm2 = vcmask 1045504   ;;  %vm423_vm3 = vcmask 1044480   ;;  %vm562_vm4 = vcmask 1043456  }
   0x7   :  { %v49_v5 = vld [vmem:[#allocation2 + $0x58] sm:$0xff]  ;;  %v1108_v6 = vld [vmem:[%s1515_s0 + $0x20] sm:$0xff]  ;;  %107 = vmatpush.msra.mxu0 %v52_v0  ;;  %148 = vmatpush.msra.mxu1 %v53_v1  ;;  %v1113_v8 = vld [vmem:[%s1515_s0 + $0x28] sm:$0xff]  ;;  %vm693_vm5 = vcmask 785408   ;;  %vm711_vm7 = vcmask 785412   ;;  %vm708_vm9 = vcmask 781312  }
   0x8   :  { %1041 = vmatpush.msra.mxu2 %v50_v2  ;;  %1045 = vmatpush.msra.mxu3 %v51_v3  ;;  %v46_v7 = vld [vmem:[#allocation2 + $0x40] sm:$0xff]  ;;  %v70_v9 = vrot.slane %v1108_v6, 1  ;;  %v47_v10 = vld [vmem:[#allocation2 + $0x48] sm:$0xff]  ;;  %v72_v11 = vrot.slane %v1113_v8, 1  ;;  %v44_v17 = vld [vmem:[#allocation2 + $0x38] sm:$0xff]  ;;  %vm882_vm10 = vcmask 1040384  }
   0x9   :  { %108 = vmatpush.msra.mxu0 %v50_v2  ;;  %149 = vmatpush.msra.mxu1 %v51_v3  ;;  %v1120_v12 = vld [vmem:[%s1515_s0] sm:$0xff]  ;;  %v1125_v13 = vld [vmem:[%s1515_s0 + $0x8] sm:$0xff]  ;;  %v43_v18 = vld [vmem:[#allocation2 + $0x30] sm:$0xff] }
   0xa   :  { %1042 = vmatpush.msra.mxu2 %v48_v4  ;;  %1046 = vmatpush.msra.mxu3 %v49_v5  ;;  %v63_v14 = vrot.slane %v1120_v12, 1  ;;  %v64_v15 = vrot.slane %v1125_v13, 1  ;;  %v73_v16 = vsel %vm62_vm0, %v70_v9, %v72_v11  ;;  %v1135_v19 = vld [vmem:[%s1515_s0 + $0x30] sm:$0xff]  ;;  %v42_v22 = vld [vmem:[#allocation2 + $0x28] sm:$0xff]  ;;  %v283_v23 = vld [vmem:[#allocation2 + $0xb8] sm:$0xff]  ;;  %v285_v55 = vrot.slane %v1120_v12, 2 }
   0xb   :  { %109 = vmatpush.msra.mxu0 %v48_v4  ;;  %150 = vmatpush.msra.mxu1 %v49_v5  ;;  %v74_v21 = vrot.slane %v1135_v19, 1  ;;  %v1144_v24 = vld [vmem:[%s1515_s0 + $0x10] sm:$0xff]  ;;  %v41_v25 = vld [vmem:[#allocation2 + $0x20] sm:$0xff]  ;;  %v40_v27 = vld [vmem:[#allocation2 + $0x18] sm:$0xff]  ;;  %v286_v56 = vrot.slane %v1125_v13, 2  ;;  %v292_v4 = vrot.slane %v1108_v6, 2 }
   0xc   :  { %1043 = vmatpush.msra.mxu2 %v46_v7  ;;  %1047 = vmatpush.msra.mxu3 %v47_v10  ;;  %v65_v20 = vsel %vm62_vm0, %v63_v14, %v64_v15  ;;  %v282_v26 = vld [vmem:[#allocation2 + $0xb0] sm:$0xff]  ;;  %v281_v28 = vld [vmem:[#allocation2 + $0xa8] sm:$0xff]  ;;  %v66_v29 = vrot.slane %v1144_v24, 1  ;;  %v280_v31 = vld [vmem:[#allocation2 + $0xa0] sm:$0xff]  ;;  %v288_v60 = vrot.slane %v1144_v24, 2  ;;  %v296_v14 = vrot.slane %v1135_v19, 2 }
   0xd   :  { %963 = vmatmul.msk.f32.vlgmr.msra.gmra.mxu2 %vm78_vm1, %v73_v16  ;;  %971 = vmatmul.msk.f32.vlgmr.msra.gmra.mxu3 %vm78_vm1, %v73_v16  ;;  %v39_v30 = vld [vmem:[#allocation2 + $0x10] sm:$0xff]  ;;  %v75_v32 = vsel %vm62_vm0, %v72_v11, %v74_v21  ;;  %v1153_v33 = vld [vmem:[%s1515_s0 + $0x38] sm:$0xff]  ;;  %v38_v34 = vld [vmem:[#allocation2 + $0x8] sm:$0xff]  ;;  %v287_v57 = vsel %vm284_vm2, %v285_v55, %v286_v56 }
   0xe   :  { %246 = vmatpush.msrb.mxu3 %v44_v17  ;;  %205 = vmatpush.msrb.mxu2 %v43_v18  ;;  %v279_v35 = vld [vmem:[#allocation2 + $0x98] sm:$0xff]  ;;  %v37_v36 = vld [vmem:[#allocation2] sm:$0xff]  ;;  %v278_v37 = vld [vmem:[#allocation2 + $0x90] sm:$0xff]  ;;  %v67_v38 = vsel %vm62_vm0, %v64_v15, %v66_v29  ;;  %v76_v39 = vrot.slane %v1153_v33, 1  ;;  %v289_v61 = vsel %vm284_vm2, %v286_v56, %v288_v60  ;;  %v298_v16 = vrot.slane %v1153_v33, 2 }
   0xf   :  { %110 = vmatpush.msra.mxu0 %v46_v7  ;;  %151 = vmatpush.msra.mxu1 %v47_v10  ;;  %v1162_v40 = vld [vmem:[%s1515_s0 + $0x18] sm:$0xff]  ;;  %v277_v41 = vld [vmem:[#allocation2 + $0x88] sm:$0xff]  ;;  %v276_v43 = vld [vmem:[#allocation2 + $0x80] sm:$0xff]  ;;  %v294_v10 = vrot.slane %v1113_v8, 2  ;;  %v424_v18 = vrot.slane %v1120_v12, 3 }
  0x10   :  { %959 = vmatmul.msk.f32.vlgmr.msra.gmra.mxu0 %vm78_vm1, %v65_v20  ;;  %967 = vmatmul.msk.f32.vlgmr.msra.gmra.mxu1 %vm78_vm1, %v65_v20  ;;  %v422_v42 = vld [vmem:[#allocation2 + $0xf8] sm:$0xff]  ;;  %v421_v44 = vld [vmem:[#allocation2 + $0xf0] sm:$0xff]  ;;  %v68_v47 = vrot.slane %v1162_v40, 1  ;;  %v77_v48 = vsel %vm62_vm0, %v74_v21, %v76_v39  ;;  %v420_v50 = vld [vmem:[#allocation2 + $0xe8] sm:$0xff]  ;;  %v290_v0 = vrot.slane %v1162_v40, 2  ;;  %v299_v17 = vsel %vm284_vm2, %v296_v14, %v298_v16 }
  0x11   :  { %247 = vmatpush.msrb.mxu3 %v42_v22  ;;  %369 = vmatpush.msrb.mxu1 %v283_v23  ;;  %v561_v45 = vld [vmem:[#allocation2 + $0x138] sm:$0xff]  ;;  %v560_v46 = vld [vmem:[#allocation2 + $0x130] sm:$0xff]  ;;  %v419_v51 = vld [vmem:[#allocation2 + $0xe0] sm:$0xff]  ;;  %v295_v11 = vsel %vm284_vm2, %v292_v4, %v294_v10  ;;  %v297_v15 = vsel %vm284_vm2, %v294_v10, %v296_v14  ;;  %v425_v20 = vrot.slane %v1125_v13, 3  ;;  %v563_v21 = vrot.slane %v1120_v12, 4 }
  0x12   :  { %206 = vmatpush.msrb.mxu2 %v41_v25  ;;  %328 = vmatpush.msrb.mxu0 %v282_v26  ;;  %v69_v49 = vsel %vm62_vm0, %v66_v29, %v68_v47  ;;  %v71_v52 = vsel %vm62_vm0, %v68_v47, %v70_v9  ;;  %v559_v53 = vld [vmem:[#allocation2 + $0x128] sm:$0xff]  ;;  %v558_v54 = vld [vmem:[#allocation2 + $0x120] sm:$0xff]  ;;  %v418_v58 = vld [vmem:[#allocation2 + $0xd8] sm:$0xff]  ;;  %v291_v1 = vsel %vm284_vm2, %v288_v60, %v290_v0  ;;  %v564_v22 = vrot.slane %v1125_v13, 4 }
  0x13   :  { %248 = vmatpush.msrb.mxu3 %v40_v27  ;;  %370 = vmatpush.msrb.mxu1 %v281_v28  ;;  %v417_v59 = vld [vmem:[#allocation2 + $0xd0] sm:$0xff]  ;;  %v557_v62 = vld [vmem:[#allocation2 + $0x118] sm:$0xff]  ;;  %v416_v2 = vld [vmem:[#allocation2 + $0xc8] sm:$0xff]  ;;  %v293_v5 = vsel %vm284_vm2, %v290_v0, %v292_v4  ;;  %v426_v23 = vsel %vm423_vm3, %v424_v18, %v425_v20  ;;  %v427_v26 = vrot.slane %v1144_v24, 3  ;;  %v566_v27 = vrot.slane %v1144_v24, 4 }
  0x14   :  { %207 = vmatpush.msrb.mxu2 %v39_v30  ;;  %329 = vmatpush.msrb.mxu0 %v280_v31  ;;  %v556_v63 = vld [vmem:[#allocation2 + $0x110] sm:$0xff]  ;;  %v415_v3 = vld [vmem:[#allocation2 + $0xc0] sm:$0xff]  ;;  %v555_v7 = vld [vmem:[#allocation2 + $0x108] sm:$0xff]  ;;  %v565_v25 = vsel %vm562_vm4, %v563_v21, %v564_v22  ;;  %v429_v28 = vrot.slane %v1162_v40, 3  ;;  %v568_v29 = vrot.slane %v1162_v40, 4  ;;  %v431_v31 = vrot.slane %v1108_v6, 3 }
  0x15   :  { %964 = vmatmul.msk.f32.gmra.mxu2 %vm78_vm1, %v75_v32  ;;  %972 = vmatmul.msk.f32.gmra.mxu3 %vm78_vm1, %v75_v32  ;;  %v554_v9 = vld [vmem:[#allocation2 + $0x100] sm:$0xff]  ;;  %v570_v32 = vrot.slane %v1108_v6, 4 }
  0x16   :  { %249 = vmatpush.msrb.mxu3 %v38_v34  ;;  %371 = vmatpush.msrb.mxu1 %v279_v35  ;;  %v430_v30 = vsel %vm423_vm3, %v427_v26, %v429_v28  ;;  %v432_v34 = vsel %vm423_vm3, %v429_v28, %v431_v31 }
  0x17   :  { %208 = vmatpush.msrb.mxu2 %v37_v36  ;;  %330 = vmatpush.msrb.mxu0 %v278_v37  ;;  %v571_v35 = vsel %vm562_vm4, %v568_v29, %v570_v32  ;;  %v433_v36 = vrot.slane %v1113_v8, 3  ;;  %v572_v37 = vrot.slane %v1113_v8, 4 }
  0x18   :  { %960 = vmatmul.msk.f32.gmra.mxu0 %vm78_vm1, %v67_v38  ;;  %968 = vmatmul.msk.f32.gmra.mxu1 %vm78_vm1, %v67_v38 }
  0x19   :  { %372 = vmatpush.msrb.mxu1 %v277_v41  ;;  %508 = vmatpush.msra.mxu3 %v422_v42  ;;  %v434_v38 = vsel %vm423_vm3, %v431_v31, %v433_v36  ;;  %v435_v41 = vrot.slane %v1135_v19, 3 }
  0x1a   :  { %331 = vmatpush.msrb.mxu0 %v276_v43  ;;  %467 = vmatpush.msra.mxu2 %v421_v44 }
  0x1b   :  { %647 = vmatpush.msra.mxu1 %v561_v45  ;;  %509 = vmatpush.msra.mxu3 %v420_v50  ;;  %v436_v44 = vsel %vm423_vm3, %v433_v36, %v435_v41 }
  0x1c   :  { %606 = vmatpush.msra.mxu0 %v560_v46  ;;  %468 = vmatpush.msra.mxu2 %v419_v51 }
  0x1d   :  { %965 = vmatmul.msk.f32.gmra.mxu2 %vm78_vm1, %v77_v48  ;;  %973 = vmatmul.msk.f32.gmra.mxu3 %vm78_vm1, %v77_v48  ;;  %v437_v48 = vrot.slane %v1153_v33, 3 }
  0x1e   :  { %648 = vmatpush.msra.mxu1 %v559_v53  ;;  %607 = vmatpush.msra.mxu0 %v558_v54 }
  0x1f   :  { %510 = vmatpush.msra.mxu3 %v418_v58  ;;  %469 = vmatpush.msra.mxu2 %v417_v59  ;;  %v438_v51 = vsel %vm423_vm3, %v435_v41, %v437_v48 }
  0x20   :  { %961 = vmatmul.msk.f32.gmra.mxu0 %vm78_vm1, %v69_v49  ;;  %969 = vmatmul.msk.f32.gmra.mxu1 %vm78_vm1, %v69_v49 }
  0x21   :  { %649 = vmatpush.msra.mxu1 %v557_v62  ;;  %608 = vmatpush.msra.mxu0 %v556_v63 }
  0x22   :  { %511 = vmatpush.msra.mxu3 %v416_v2  ;;  %470 = vmatpush.msra.mxu2 %v415_v3 }
  0x23   :  { %650 = vmatpush.msra.mxu1 %v555_v7  ;;  %609 = vmatpush.msra.mxu0 %v554_v9 }
  0x25   :  { %966 = vmatmul.msk.f32.gmra.mxu2 %vm78_vm1, %v76_v39  ;;  %974 = vmatmul.msk.f32.gmra.mxu3 %vm78_vm1, %v76_v39 }
  0x28   :  { %962 = vmatmul.msk.f32.gmra.mxu0 %vm78_vm1, %v71_v52  ;;  %970 = vmatmul.msk.f32.gmra.mxu1 %vm78_vm1, %v71_v52 }
  0x2d   :  { %975 = vmatmul.msk.f32.vlgmr.msrb.gmra.mxu2 %vm78_vm1, %v1120_v12  ;;  %983 = vmatmul.msk.f32.vlgmr.msrb.gmra.mxu3 %vm78_vm1, %v1120_v12  ;;  %v428_v12 = vsel %vm423_vm3, %v425_v20, %v427_v26 }
  0x30   :  { %991 = vmatmul.msk.f32.vlgmr.msrb.gmra.mxu0 %vm78_vm1, %v287_v57  ;;  %999 = vmatmul.msk.f32.vlgmr.msrb.gmra.mxu1 %vm78_vm1, %v287_v57 }
  0x35   :  { %976 = vmatmul.msk.f32.gmra.mxu2 %vm78_vm1, %v1125_v13  ;;  %984 = vmatmul.msk.f32.gmra.mxu3 %vm78_vm1, %v1125_v13  ;;  %v567_v13 = vsel %vm562_vm4, %v564_v22, %v566_v27 }
  0x38   :  { %992 = vmatmul.msk.f32.gmra.mxu0 %vm78_vm1, %v289_v61  ;;  %1000 = vmatmul.msk.f32.gmra.mxu1 %vm78_vm1, %v289_v61 }
  0x3d   :  { %977 = vmatmul.msk.f32.gmra.mxu2 %vm78_vm1, %v1144_v24  ;;  %985 = vmatmul.msk.f32.gmra.mxu3 %vm78_vm1, %v1144_v24  ;;  %v569_v24 = vsel %vm562_vm4, %v566_v27, %v568_v29 }
  0x40   :  { %993 = vmatmul.msk.f32.gmra.mxu0 %vm78_vm1, %v291_v1  ;;  %1001 = vmatmul.msk.f32.gmra.mxu1 %vm78_vm1, %v291_v1 }
  0x45   :  { %978 = vmatmul.msk.f32.gmra.mxu2 %vm78_vm1, %v1162_v40  ;;  %986 = vmatmul.msk.f32.gmra.mxu3 %vm78_vm1, %v1162_v40  ;;  %v573_v40 = vsel %vm562_vm4, %v570_v32, %v572_v37 }
  0x48   :  { %994 = vmatmul.msk.f32.gmra.mxu0 %vm78_vm1, %v293_v5  ;;  %1002 = vmatmul.msk.f32.gmra.mxu1 %vm78_vm1, %v293_v5 }
  0x4d   :  { %979 = vmatmul.msk.f32.gmra.mxu2 %vm78_vm1, %v1108_v6  ;;  %987 = vmatmul.msk.f32.gmra.mxu3 %vm78_vm1, %v1108_v6 }
  0x50   :  { %995 = vmatmul.msk.f32.gmra.mxu0 %vm78_vm1, %v295_v11  ;;  %1003 = vmatmul.msk.f32.gmra.mxu1 %vm78_vm1, %v295_v11 }
  0x55   :  { %980 = vmatmul.msk.f32.gmra.mxu2 %vm78_vm1, %v1113_v8  ;;  %988 = vmatmul.msk.f32.gmra.mxu3 %vm78_vm1, %v1113_v8  ;;  %v574_v8 = vrot.slane %v1135_v19, 4 }
  0x57   :  { %v575_v47 = vsel %vm562_vm4, %v572_v37, %v574_v8 }
  0x58   :  { %996 = vmatmul.msk.f32.gmra.mxu0 %vm78_vm1, %v297_v15  ;;  %1004 = vmatmul.msk.f32.gmra.mxu1 %vm78_vm1, %v297_v15 }
  0x5d   :  { %981 = vmatmul.msk.f32.gmra.mxu2 %vm78_vm1, %v1135_v19  ;;  %989 = vmatmul.msk.f32.gmra.mxu3 %vm78_vm1, %v1135_v19  ;;  %v576_v19 = vrot.slane %v1153_v33, 4 }
  0x5f   :  { %v577_v54 = vsel %vm562_vm4, %v574_v8, %v576_v19 }
  0x60   :  { %997 = vmatmul.msk.f32.gmra.mxu0 %vm78_vm1, %v299_v17  ;;  %1005 = vmatmul.msk.f32.gmra.mxu1 %vm78_vm1, %v299_v17 }
  0x65   :  { %982 = vmatmul.msk.f32.gmra.mxu2 %vm78_vm1, %v1153_v33  ;;  %990 = vmatmul.msk.f32.gmra.mxu3 %vm78_vm1, %v1153_v33 }
  0x68   :  { %998 = vmatmul.msk.f32.gmra.mxu0 %vm78_vm1, %v298_v16  ;;  %1006 = vmatmul.msk.f32.gmra.mxu1 %vm78_vm1, %v298_v16 }
  0x6d   :  { %1007 = vmatmul.msk.f32.vlgmr.msra.gmra.mxu2 %vm78_vm1, %v426_v23  ;;  %1015 = vmatmul.msk.f32.vlgmr.msra.gmra.mxu3 %vm78_vm1, %v426_v23 }
  0x70   :  { %1023 = vmatmul.msk.f32.vlgmr.msra.gmra.mxu0 %vm78_vm1, %v565_v25  ;;  %1031 = vmatmul.msk.f32.vlgmr.msra.gmra.mxu1 %vm78_vm1, %v565_v25 }
  0x75   :  { %1008 = vmatmul.msk.f32.gmra.mxu2 %vm78_vm1, %v428_v12  ;;  %1016 = vmatmul.msk.f32.gmra.mxu3 %vm78_vm1, %v428_v12 }
  0x78   :  { %1024 = vmatmul.msk.f32.gmra.mxu0 %vm78_vm1, %v567_v13  ;;  %1032 = vmatmul.msk.f32.gmra.mxu1 %vm78_vm1, %v567_v13 }
  0x7d   :  { %1009 = vmatmul.msk.f32.gmra.mxu2 %vm78_vm1, %v430_v30  ;;  %1017 = vmatmul.msk.f32.gmra.mxu3 %vm78_vm1, %v430_v30 }
  0x80   :  { %1025 = vmatmul.msk.f32.gmra.mxu0 %vm78_vm1, %v569_v24  ;;  %1033 = vmatmul.msk.f32.gmra.mxu1 %vm78_vm1, %v569_v24 }
  0x85   :  { %1010 = vmatmul.msk.f32.gmra.mxu2 %vm78_vm1, %v432_v34  ;;  %1018 = vmatmul.msk.f32.gmra.mxu3 %vm78_vm1, %v432_v34 }
  0x88   :  { %1026 = vmatmul.msk.f32.gmra.mxu0 %vm78_vm1, %v571_v35  ;;  %1034 = vmatmul.msk.f32.gmra.mxu1 %vm78_vm1, %v571_v35 }
  0x8d   :  { %1011 = vmatmul.msk.f32.gmra.mxu2 %vm78_vm1, %v434_v38  ;;  %1019 = vmatmul.msk.f32.gmra.mxu3 %vm78_vm1, %v434_v38  ;;  %v1282_v6 = vpop.f32.mrf.mxu0  ;;  %v1284_v39 = vpop.f32.mrf.mxu1 }
  0x90   :  { %v1288_v42 = vpop.f32.mrf.mxu2  ;;  %v1290_v43 = vpop.f32.mrf.mxu3  ;;  %1027 = vmatmul.msk.f32.gmra.mxu0 %vm78_vm1, %v573_v40  ;;  %1035 = vmatmul.msk.f32.gmra.mxu1 %vm78_vm1, %v573_v40 }
  0x95   :  { %1012 = vmatmul.msk.f32.gmra.mxu2 %vm78_vm1, %v436_v44  ;;  %1020 = vmatmul.msk.f32.gmra.mxu3 %vm78_vm1, %v436_v44  ;;  %v1298_v45 = vpop.f32.mrf.mxu0  ;;  %v1300_v46 = vpop.f32.mrf.mxu1 }
  0x98   :  { %v1304_v49 = vpop.f32.mrf.mxu2  ;;  %v1306_v50 = vpop.f32.mrf.mxu3  ;;  %1028 = vmatmul.msk.f32.gmra.mxu0 %vm78_vm1, %v575_v47  ;;  %1036 = vmatmul.msk.f32.gmra.mxu1 %vm78_vm1, %v575_v47 }
  0x9d   :  { %1013 = vmatmul.msk.f32.gmra.mxu2 %vm78_vm1, %v438_v51  ;;  %1021 = vmatmul.msk.f32.gmra.mxu3 %vm78_vm1, %v438_v51  ;;  %v1314_v52 = vpop.f32.mrf.mxu0  ;;  %v1316_v53 = vpop.f32.mrf.mxu1 }
  0xa0   :  { %v1319_v55 = vpop.f32.mrf.mxu2  ;;  %v1321_v56 = vpop.f32.mrf.mxu3  ;;  %1029 = vmatmul.msk.f32.gmra.mxu0 %vm78_vm1, %v577_v54  ;;  %1037 = vmatmul.msk.f32.gmra.mxu1 %vm78_vm1, %v577_v54 }
  0xa5   :  { %1014 = vmatmul.msk.f32.gmra.mxu2 %vm78_vm1, %v437_v48  ;;  %1022 = vmatmul.msk.f32.gmra.mxu3 %vm78_vm1, %v437_v48  ;;  %v1327_v33 = vpop.f32.mrf.mxu0  ;;  %v1329_v57 = vpop.f32.mrf.mxu1 }
  0xa8   :  { %v1331_v58 = vpop.f32.mrf.mxu2  ;;  %v1333_v59 = vpop.f32.mrf.mxu3  ;;  %1030 = vmatmul.msk.f32.gmra.mxu0 %vm78_vm1, %v576_v19  ;;  %1038 = vmatmul.msk.f32.gmra.mxu1 %vm78_vm1, %v576_v19 }
  0xad   :  { %v333_v60 = vpop.f32.mrf.mxu0  ;;  %v374_v61 = vpop.f32.mrf.mxu1 }
  0xb0   :  { %v210_v62 = vpop.f32.mrf.mxu2  ;;  %v251_v63 = vpop.f32.mrf.mxu3 }
  0xb1   :  { %v211_v31 = vadd.f32 %v210_v62, %v1282_v6  ;;  %v252_v32 = vadd.f32 %v251_v63, %v1284_v39  ;;  %v713_v63 = vlaneseq }
  0xb3   :  { %v398_v36 = vadd.f32 %v333_v60, %v211_v31  ;;  %v399_v37 = vadd.f32 %v374_v61, %v252_v32  ;;  %vm887_vm11 = vcmp.lt.s32.totalorder %v713_v63, 224 }
  0xb5   :  { %v336_v0 = vpop.f32.mrf.mxu0  ;;  %v377_v1 = vpop.f32.mrf.mxu1 }
  0xb8   :  { %v213_v2 = vpop.f32.mrf.mxu2  ;;  %v254_v3 = vpop.f32.mrf.mxu3 }
  0xb9   :  { %v214_v44 = vadd.f32 %v213_v2, %v1298_v45  ;;  %v255_v47 = vadd.f32 %v254_v3, %v1300_v46 }
  0xbb   :  { %v400_v51 = vadd.f32 %v336_v0, %v214_v44  ;;  %v401_v54 = vadd.f32 %v377_v1, %v255_v47 }
  0xbd   :  { %v1337_v4 = vpop.f32.mrf.mxu0  ;;  %v1339_v5 = vpop.f32.mrf.mxu1 }
  0xc0   :  { %v216_v7 = vpop.f32.mrf.mxu2  ;;  %v257_v9 = vpop.f32.mrf.mxu3 }
  0xc1   :  { %v217_v62 = vadd.f32 %v216_v7, %v1314_v52  ;;  %v258_v2 = vadd.f32 %v257_v9, %v1316_v53  ;;  %v1405_v9 = vshrl.u32 %v713_v63, 7 }
  0xc3   :  { %v402_v7 = vadd.f32 %v1337_v4, %v217_v62 }
  0xc5   :  { %v1341_v10 = vpop.f32.mrf.mxu0  ;;  %v1343_v11 = vpop.f32.mrf.mxu1 }
  0xc8   :  { %v1345_v14 = vpop.f32.mrf.mxu2  ;;  %v1347_v15 = vpop.f32.mrf.mxu3 }
  0xcd   :  { %v1349_v16 = vpop.f32.mrf.mxu0  ;;  %v1351_v17 = vpop.f32.mrf.mxu1 }
  0xd0   :  { %v1353_v18 = vpop.f32.mrf.mxu2  ;;  %v1355_v20 = vpop.f32.mrf.mxu3 }
  0xd5   :  { %v1357_v21 = vpop.f32.mrf.mxu0  ;;  %v1359_v22 = vpop.f32.mrf.mxu1 }
  0xd8   :  { %v1361_v23 = vpop.f32.mrf.mxu2  ;;  %v1363_v25 = vpop.f32.mrf.mxu3 }
  0xdd   :  { %v1365_v26 = vpop.f32.mrf.mxu0  ;;  %v1367_v27 = vpop.f32.mrf.mxu1 }
  0xe0   :  { %v1369_v12 = vpop.f32.mrf.mxu2  ;;  %v1371_v13 = vpop.f32.mrf.mxu3 }
  0xe5   :  { %v1373_v28 = vpop.f32.mrf.mxu0  ;;  %v1375_v29 = vpop.f32.mrf.mxu1 }
  0xe8   :  { %v1377_v30 = vpop.f32.mrf.mxu2  ;;  %v1379_v24 = vpop.f32.mrf.mxu3 }
  0xed   :  { %v611_v34 = vpop.f32.mrf.mxu0  ;;  %v652_v35 = vpop.f32.mrf.mxu1 }
  0xf0   :  { %v472_v38 = vpop.f32.mrf.mxu2  ;;  %v513_v40 = vpop.f32.mrf.mxu3 }
  0xf1   :  { %v537_v41 = vadd.f32 %v472_v38, %v398_v36  ;;  %v538_v8 = vadd.f32 %v513_v40, %v399_v37  ;;  %v403_v40 = vadd.f32 %v1339_v5, %v258_v2 }
  0xf3   :  { %v676_v48 = vadd.f32 %v611_v34, %v537_v41  ;;  %v677_v19 = vadd.f32 %v652_v35, %v538_v8 }
  0xf5   :  { %692 = vst [vmem:[%s1517_s2] sm:$0xff] %v676_v48  ;;  %v614_v6 = vpop.f32.mrf.mxu0  ;;  %v655_v39 = vpop.f32.mrf.mxu1  ;;  %v892_v3 = vmul.f32 %v677_v19, %v677_v19  ;;  %v891_v34 = vmul.f32 %v676_v48, %v676_v48  ;;  %v858_v35 = vsel %vm693_vm5, %v677_v19, 0.0 }
  0xf6   :  { %694 = vst.msk [vmem:[%s1517_s2 + $0x8] sm:$0xff] %vm693_vm5, %v677_v19 }
  0xf7   :  { %v921_v41 = vsel %vm693_vm5, %v892_v3, 0.0 }
  0xf8   :  { %v475_v60 = vpop.f32.mrf.mxu2  ;;  %v516_v45 = vpop.f32.mrf.mxu3 }
  0xf9   :  { %v539_v61 = vadd.f32 %v475_v60, %v400_v51  ;;  %v540_v46 = vadd.f32 %v516_v45, %v401_v54  ;;  %v220_v51 = vadd.f32 %v1345_v14, %v1327_v33  ;;  %v261_v54 = vadd.f32 %v1347_v15, %v1329_v57 }
  0xfb   :  { %v678_v31 = vadd.f32 %v614_v6, %v539_v61  ;;  %v679_v32 = vadd.f32 %v655_v39, %v540_v46  ;;  %v717_v39 = vadd.s32 24, %v1405_v9  ;;  %v404_v14 = vadd.f32 %v1341_v10, %v220_v51 }
  0xfc   :  { %v405_v15 = vadd.f32 %v1343_v11, %v261_v54  ;;  %v226_v54 = vadd.f32 %v1361_v23, %v1304_v49 }
  0xfd   :  { %695 = vst [vmem:[%s1517_s2 + $0x10] sm:$0xff] %v678_v31  ;;  %v844_v0 = vadd.f32 %v678_v31, %v676_v48  ;;  %v893_v1 = vmul.f32 %v678_v31, %v678_v31  ;;  %v859_v36 = vsel %vm693_vm5, %v679_v32, 0.0  ;;  %v894_v37 = vmul.f32 %v679_v32, %v679_v32  ;;  %v617_v38 = vpop.f32.mrf.mxu0  ;;  %v658_v52 = vpop.f32.mrf.mxu1 }
  0xfe   :  { %696 = vst.msk [vmem:[%s1517_s2 + $0x18] sm:$0xff] %vm693_vm5, %v679_v32  ;;  %v860_v53 = vadd.f32 %v859_v36, %v858_v35  ;;  %v747_v57 = vand.u32 31, %v717_v39 }
  0xff   :  { %v907_v8 = vadd.f32 %v893_v1, %v891_v34  ;;  %v922_v44 = vsel %vm693_vm5, %v894_v37, 0.0  ;;  %v223_v37 = vadd.f32 %v1353_v18, %v1288_v42 }
 0x100   :  { %v923_v47 = vadd.f32 %v922_v44, %v921_v41  ;;  %v478_v48 = vpop.f32.mrf.mxu2  ;;  %v519_v19 = vpop.f32.mrf.mxu3  ;;  %vm821_vm6 = vcmp.lt.s32.totalorder %v747_v57, 28 }
 0x101   :  { %v541_v4 = vadd.f32 %v478_v48, %v402_v7  ;;  %v542_v6 = vadd.f32 %v519_v19, %v403_v40  ;;  %v406_v18 = vadd.f32 %v1349_v16, %v223_v37 }
 0x103   :  { %v680_v60 = vadd.f32 %v617_v38, %v541_v4  ;;  %v681_v5 = vadd.f32 %v658_v52, %v542_v6  ;;  %v264_v38 = vadd.f32 %v1355_v20, %v1290_v43 }
 0x105   :  { %697 = vst [vmem:[%s1517_s2 + $0x20] sm:$0xff] %v680_v60  ;;  %v845_v45 = vadd.f32 %v844_v0, %v680_v60  ;;  %v895_v61 = vmul.f32 %v680_v60, %v680_v60  ;;  %v861_v46 = vsel %vm693_vm5, %v681_v5, 0.0  ;;  %v896_v62 = vmul.f32 %v681_v5, %v681_v5  ;;  %v620_v2 = vpop.f32.mrf.mxu0  ;;  %v661_v3 = vpop.f32.mrf.mxu1 }
 0x106   :  { %698 = vst.msk [vmem:[%s1517_s2 + $0x28] sm:$0xff] %vm693_vm5, %v681_v5  ;;  %v862_v33 = vadd.f32 %v861_v46, %v860_v53  ;;  %v407_v20 = vadd.f32 %v1351_v17, %v264_v38  ;;  %v267_v60 = vadd.f32 %v1363_v25, %v1306_v50  ;;  %v408_v50 = vadd.f32 %v1357_v21, %v226_v54 }
 0x107   :  { %v908_v31 = vadd.f32 %v907_v8, %v895_v61  ;;  %v924_v32 = vsel %vm693_vm5, %v896_v62, 0.0 }
 0x108   :  { %v925_v34 = vadd.f32 %v924_v32, %v923_v47  ;;  %v481_v35 = vpop.f32.mrf.mxu2  ;;  %v522_v0 = vpop.f32.mrf.mxu3  ;;  %v409_v23 = vadd.f32 %v1359_v22, %v267_v60  ;;  %v229_v32 = vadd.f32 %v1369_v12, %v1319_v55 }
 0x109   :  { %v543_v1 = vadd.f32 %v481_v35, %v404_v14  ;;  %v544_v36 = vadd.f32 %v522_v0, %v405_v15 }
 0x10b   :  { %v682_v52 = vadd.f32 %v620_v2, %v543_v1  ;;  %v683_v7 = vadd.f32 %v661_v3, %v544_v36 }
 0x10d   :  { %699 = vst [vmem:[%s1517_s2 + $0x30] sm:$0xff] %v682_v52  ;;  %v832_v10 = vsel %vm821_vm6, %v682_v52, 0.0  ;;  %v833_v11 = vsel %vm821_vm6, %v683_v7, 0.0  ;;  %v623_v53 = vpop.f32.mrf.mxu0  ;;  %v664_v40 = vpop.f32.mrf.mxu1 }
 0x10e   :  { %v846_v41 = vadd.f32 %v845_v45, %v832_v10  ;;  %v897_v8 = vmul.f32 %v832_v10, %v832_v10  ;;  %700 = vst.msk [vmem:[%s1517_s2 + $0x38] sm:$0xff] %vm693_vm5, %v683_v7  ;;  %v863_v42 = vsel %vm693_vm5, %v833_v11, 0.0  ;;  %v898_v43 = vmul.f32 %v833_v11, %v833_v11 }
 0x10f   :  { %v864_v44 = vadd.f32 %v863_v42, %v862_v33  ;;  %v1081_v7 = vmov 0.0  }
 0x110   :  { %v909_v47 = vadd.f32 %v908_v31, %v897_v8  ;;  %v926_v48 = vsel %vm693_vm5, %v898_v43, 0.0  ;;  %v484_v19 = vpop.f32.mrf.mxu2  ;;  %v525_v4 = vpop.f32.mrf.mxu3  ;;  %710 = vst [vmem:[%s1517_s2 + $0x70] sm:$0xf0] %v1081_v7  ;;  %v273_v8 = vadd.f32 %v1379_v24, %v1333_v59 }
 0x111   :  { %v927_v6 = vadd.f32 %v926_v48, %v925_v34  ;;  %v545_v39 = vadd.f32 %v484_v19, %v406_v18  ;;  %v546_v51 = vadd.f32 %v525_v4, %v407_v20  ;;  %v270_v34 = vadd.f32 %v1371_v13, %v1321_v56  ;;  %712 = vst.msk [vmem:[%s1517_s2 + $0x78] sm:$0xf0] %vm711_vm7, %v1081_v7 }
 0x112   :  { %v410_v56 = vadd.f32 %v1365_v26, %v229_v32  ;;  %842 = vst [vmem:[%s1518_s3] sm:$0xff] %v1081_v7  ;;  %v721_v26 = vadd.s32 56, %v1405_v9  ;;  %v413_v24 = vadd.f32 %v1375_v29, %v273_v8 }
 0x113   :  { %v684_v5 = vadd.f32 %v623_v53, %v545_v39  ;;  %v685_v45 = vadd.f32 %v664_v40, %v546_v51  ;;  %v411_v12 = vadd.f32 %v1367_v27, %v270_v34  ;;  %843 = vst.msk [vmem:[%s1518_s3 + $0x8] sm:$0xff] %vm693_vm5, %v1081_v7  ;;  %v232_v27 = vadd.f32 %v1377_v30, %v1331_v58 }
 0x114   :  { %v775_v30 = vand.u32 31, %v721_v26 }
 0x115   :  { %701 = vst [vmem:[%s1517_s2 + $0x40] sm:$0xff] %v684_v5  ;;  %v847_v16 = vadd.f32 %v846_v41, %v684_v5  ;;  %v899_v17 = vmul.f32 %v684_v5, %v684_v5  ;;  %v865_v61 = vsel %vm693_vm5, %v685_v45, 0.0  ;;  %v900_v46 = vmul.f32 %v685_v45, %v685_v45  ;;  %v626_v62 = vpop.f32.mrf.mxu0  ;;  %v667_v2 = vpop.f32.mrf.mxu1 }
 0x116   :  { %702 = vst.msk [vmem:[%s1517_s2 + $0x48] sm:$0xff] %vm693_vm5, %v685_v45  ;;  %v866_v49 = vadd.f32 %v865_v61, %v864_v44  ;;  %v412_v59 = vadd.f32 %v1373_v28, %v232_v27  ;;  %vm825_vm8 = vcmp.lt.s32.totalorder %v775_v30, 28 }
 0x117   :  { %v910_v25 = vadd.f32 %v909_v47, %v899_v17  ;;  %v928_v3 = vsel %vm693_vm5, %v900_v46, 0.0 }
 0x118   :  { %v929_v33 = vadd.f32 %v928_v3, %v927_v6  ;;  %v487_v57 = vpop.f32.mrf.mxu2  ;;  %v528_v14 = vpop.f32.mrf.mxu3 }
 0x119   :  { %v547_v15 = vadd.f32 %v487_v57, %v408_v50  ;;  %v548_v31 = vadd.f32 %v528_v14, %v409_v23 }
 0x11b   :  { %v686_v35 = vadd.f32 %v626_v62, %v547_v15  ;;  %v687_v0 = vadd.f32 %v667_v2, %v548_v31 }
 0x11d   :  { %703 = vst [vmem:[%s1517_s2 + $0x50] sm:$0xff] %v686_v35  ;;  %v848_v21 = vadd.f32 %v847_v16, %v686_v35  ;;  %v901_v22 = vmul.f32 %v686_v35, %v686_v35  ;;  %v867_v1 = vsel %vm693_vm5, %v687_v0, 0.0  ;;  %v902_v36 = vmul.f32 %v687_v0, %v687_v0  ;;  %v629_v37 = vpop.f32.mrf.mxu0  ;;  %v670_v38 = vpop.f32.mrf.mxu1 }
 0x11e   :  { %704 = vst.msk [vmem:[%s1517_s2 + $0x58] sm:$0xff] %vm693_vm5, %v687_v0  ;;  %v868_v55 = vadd.f32 %v867_v1, %v866_v49 }
 0x11f   :  { %v911_v13 = vadd.f32 %v910_v25, %v901_v22  ;;  %v930_v52 = vsel %vm693_vm5, %v902_v36, 0.0 }
 0x120   :  { %v931_v10 = vadd.f32 %v930_v52, %v929_v33  ;;  %v490_v11 = vpop.f32.mrf.mxu2  ;;  %v531_v53 = vpop.f32.mrf.mxu3 }
 0x121   :  { %v549_v40 = vadd.f32 %v490_v11, %v410_v56  ;;  %v550_v41 = vadd.f32 %v531_v53, %v411_v12 }
 0x123   :  { %v688_v42 = vadd.f32 %v629_v37, %v549_v40  ;;  %v689_v43 = vadd.f32 %v670_v38, %v550_v41 }
 0x125   :  { %705 = vst [vmem:[%s1517_s2 + $0x60] sm:$0xff] %v688_v42  ;;  %v849_v18 = vadd.f32 %v848_v21, %v688_v42  ;;  %v903_v20 = vmul.f32 %v688_v42, %v688_v42  ;;  %v869_v9 = vsel %vm693_vm5, %v689_v43, 0.0  ;;  %v904_v44 = vmul.f32 %v689_v43, %v689_v43  ;;  %v632_v19 = vpop.f32.mrf.mxu0  ;;  %v673_v4 = vpop.f32.mrf.mxu1 }
 0x126   :  { %706 = vst.msk [vmem:[%s1517_s2 + $0x68] sm:$0xff] %vm693_vm5, %v689_v43  ;;  %v870_v58 = vadd.f32 %v869_v9, %v868_v55 }
 0x127   :  { %v912_v47 = vadd.f32 %v911_v13, %v903_v20  ;;  %v932_v48 = vsel %vm693_vm5, %v904_v44, 0.0 }
 0x128   :  { %v933_v6 = vadd.f32 %v932_v48, %v931_v10  ;;  %v493_v39 = vpop.f32.mrf.mxu2  ;;  %v534_v51 = vpop.f32.mrf.mxu3 }
 0x129   :  { %v551_v54 = vadd.f32 %v493_v39, %v412_v59  ;;  %v552_v60 = vadd.f32 %v534_v51, %v413_v24 }
 0x12b   :  { %v690_v5 = vadd.f32 %v632_v19, %v551_v54  ;;  %v691_v45 = vadd.f32 %v673_v4, %v552_v60 }
 0x12d   :  { %707 = vst [vmem:[%s1517_s2 + $0x70] sm:$0xf] %v690_v5  ;;  %v840_v28 = vsel %vm825_vm8, %v690_v5, 0.0  ;;  %v841_v29 = vsel %vm825_vm8, %v691_v45, 0.0 }
 0x12e   :  { %v850_v16 = vsel %vm562_vm4, %v840_v28, 0.0  ;;  %v905_v17 = vmul.f32 %v840_v28, %v840_v28  ;;  %709 = vst.msk [vmem:[%s1517_s2 + $0x78] sm:$0xf] %vm708_vm9, %v691_v45  ;;  %v871_v61 = vsel %vm708_vm9, %v841_v29, 0.0  ;;  %v906_v46 = vmul.f32 %v841_v29, %v841_v29 }
 0x12f   :  { %v851_v62 = vadd.f32 %v850_v16, %v849_v18  ;;  %v872_v2 = vadd.f32 %v871_v61, %v870_v58 }
 0x130   :  { %v913_v49 = vsel %vm562_vm4, %v905_v17, 0.0  ;;  %v934_v50 = vsel %vm708_vm9, %v906_v46, 0.0 }
 0x131   :  { %v852_v23 = vrot.slane %v851_v62, 4  ;;  %v914_v25 = vadd.f32 %v913_v49, %v912_v47  ;;  %v873_v3 = vrot.slane %v872_v2, 4  ;;  %v935_v33 = vadd.f32 %v934_v50, %v933_v6 }
 0x133   :  { %v853_v57 = vadd.f32 %v852_v23, %v851_v62  ;;  %v915_v14 = vrot.slane %v914_v25, 4  ;;  %v874_v15 = vadd.f32 %v873_v3, %v872_v2  ;;  %v936_v31 = vrot.slane %v935_v33, 4 }
 0x135   :  { %v854_v32 = vrot.slane %v853_v57, 2  ;;  %v916_v34 = vadd.f32 %v915_v14, %v914_v25  ;;  %v875_v35 = vrot.slane %v874_v15, 2  ;;  %v937_v0 = vadd.f32 %v936_v31, %v935_v33 }
 0x137   :  { %v855_v21 = vadd.f32 %v854_v32, %v853_v57  ;;  %v917_v22 = vrot.slane %v916_v34, 2  ;;  %v876_v1 = vadd.f32 %v875_v35, %v874_v15  ;;  %v938_v36 = vrot.slane %v937_v0, 2 }
 0x139   :  { %v856_v37 = vrot.slane %v855_v21, 1  ;;  %v918_v38 = vadd.f32 %v917_v22, %v916_v34  ;;  %v877_v55 = vrot.slane %v876_v1, 1  ;;  %v939_v56 = vadd.f32 %v938_v36, %v937_v0 }
 0x13b   :  { %v919_v12 = vrot.slane %v918_v38, 1  ;;  %v878_v13 = vadd.f32 %v877_v55, %v876_v1  ;;  %v940_v52 = vrot.slane %v939_v56, 1  ;;  %v857_v7 = vadd.f32 %v856_v37, %v855_v21 }
 0x13d   :  { %v881_v10 = vrot.slane %v878_v13, 7  ;;  %v941_v11 = vadd.f32 %v940_v52, %v939_v56  ;;  %v920_v53 = vadd.f32 %v919_v12, %v918_v38 }
 0x13f   :  { %v883_v40 = vsel %vm882_vm10, %v857_v7, %v881_v10  ;;  %v944_v41 = vrot.slane %v941_v11, 7 }
 0x140   :  { %889 = vst.msk [vmem:[%s1518_s3] ss:$8 sm:$0x3] %vm887_vm11, %v883_v40 }
 0x141   :  { %v945_v26 = vsel %vm882_vm10, %v920_v53, %v944_v41 }
 0x142   :  { %1039 = vst.msk [vmem:[%s1518_s3 + $0x1] ss:$8 sm:$0x3] %vm887_vm11, %v945_v26 }
 0x143   :  { %958 = vsyncpa [#allocation3], 1 }

// kernel: _forward_impl.5
= control target key start
LH: loop header
LB: loop body
LE: loop exit
PB: predicated region body
PF: predicated region fallthrough
CT: control target
= control target key end

     0   :  { %vm82_vm0 = vcmask 1046528   ;;  %s775_s17 = smov 127   ;;  %s1281_s0 = inlined_call_operand.vmem [shape: f32[36,128], index: 0, kind: input, shape index: {}]   ;;  %s1282_s1 = inlined_call_operand.vmem [shape: f32[8,128], index: 1, kind: input, shape index: {}]   ;;  %s1283_s2 = inlined_call_operand.vmem [shape: f32[7,2,35], index: 2, kind: input, shape index: {}]   ;;  %s1284_s3 = inlined_call_operand.vmem [shape: f32[7,127,32], index: 3, kind: input, shape index: {}]   ;;  %s1285_s4 = inlined_call_operand.hbm [shape: f32[2,32], index: 4, kind: output, shape index: {}]  }
   0x1   :  { %v22_v0 = vld [vmem:[%s1281_s0 + $0x20] sm:$0xf]  ;;  %v20_v3 = vld [vmem:[%s1281_s0 + $0x10] sm:$0xff]  ;;  %v21_v5 = vld [vmem:[%s1281_s0 + $0x18] sm:$0xff] }
   0x2   :  { %v747_v1 = vld [vmem:[%s1282_s1] ss:$0 sm:$0xff]  ;;  %v748_v2 = vld [vmem:[%s1282_s1 + $0x1] ss:$0 sm:$0xff]  ;;  %v19_v8 = vld [vmem:[%s1281_s0 + $0x8] sm:$0xff] }
   0x3   :  { %v29_v4 = vsub.f32 %v22_v0, %v747_v1  ;;  %v27_v6 = vsub.f32 %v20_v3, %v747_v1  ;;  %v18_v7 = vld [vmem:[%s1281_s0] sm:$0xff]  ;;  %v28_v9 = vsub.f32 %v21_v5, %v747_v1  ;;  %v26_v11 = vsub.f32 %v19_v8, %v747_v1  ;;  %v625_v12 = vld [vmem:[%s1284_s3 + $0xf8] sm:$0x7f]  ;;  %v624_v14 = vld [vmem:[%s1284_s3 + $0xf0] sm:$0xff] }
   0x4   :  { %v25_v10 = vsub.f32 %v18_v7, %v747_v1  ;;  %v146_v13 = vld [vmem:[%s1284_s3 + $0x78] sm:$0x7f]  ;;  %626 = vmatpush.msk.msra.mxu2 %vm82_vm0, %v625_v12  ;;  %v145_v17 = vld [vmem:[%s1284_s3 + $0x70] sm:$0xff]  ;;  %v623_v21 = vld [vmem:[%s1284_s3 + $0xe8] sm:$0xff] }
   0x5   :  { %v36_v15 = vmul.f32 %v748_v2, %v29_v4  ;;  %v34_v16 = vmul.f32 %v748_v2, %v27_v6  ;;  %628 = vmatpush.msk.msra.mxu3 %vm82_vm0, %v146_v13  ;;  %v35_v18 = vmul.f32 %v748_v2, %v28_v9  ;;  %v33_v20 = vmul.f32 %v748_v2, %v26_v11  ;;  %v144_v22 = vld [vmem:[%s1284_s3 + $0x68] sm:$0xff]  ;;  %v622_v23 = vld [vmem:[%s1284_s3 + $0xe0] sm:$0xff]  ;;  %v621_v32 = vld [vmem:[%s1284_s3 + $0xd8] sm:$0xff] }
   0x6   :  { %v32_v19 = vmul.f32 %v748_v2, %v25_v10  ;;  %197 = vmatpush.msra.mxu2 %v624_v14  ;;  %v143_v27 = vld [vmem:[%s1284_s3 + $0x60] sm:$0xff]  ;;  %v142_v33 = vld [vmem:[%s1284_s3 + $0x58] sm:$0xff]  ;;  %v620_v38 = vld [vmem:[%s1284_s3 + $0xd0] sm:$0xff] }
   0x7   :  { %vm41_vm1 = vcmp.gt.f32.partialorder %v36_v15, 0.0  ;;  %v46_v24 = vmul.f32 0.01, %v36_v15  ;;  %vm39_vm2 = vcmp.gt.f32.partialorder %v34_v16, 0.0  ;;  %v44_v25 = vmul.f32 0.01, %v34_v16  ;;  %223 = vmatpush.msra.mxu3 %v145_v17 }
   0x8   :  { %vm40_vm3 = vcmp.gt.f32.partialorder %v35_v18, 0.0  ;;  %v45_v26 = vmul.f32 0.01, %v35_v18  ;;  %vm37_vm4 = vcmp.gt.f32.partialorder %v32_v19, 0.0  ;;  %vm38_vm5 = vcmp.gt.f32.partialorder %v33_v20, 0.0  ;;  %198 = vmatpush.msra.mxu2 %v623_v21  ;;  %v141_v39 = vld [vmem:[%s1284_s3 + $0x50] sm:$0xff] }
   0x9   :  { %v849_v28 = vsel %vm41_vm1, %v36_v15, %v46_v24  ;;  %v42_v29 = vmul.f32 0.01, %v32_v19  ;;  %v43_v30 = vmul.f32 0.01, %v33_v20  ;;  %224 = vmatpush.msra.mxu3 %v144_v22  ;;  %v853_v31 = vsel %vm39_vm2, %v34_v16, %v44_v25  ;;  %v619_v41 = vld [vmem:[%s1284_s3 + $0xc8] sm:$0xff] }
   0xa   :  { %65 = vrot.lane.b32.xlu0 %v849_v28, %s775_s17  ;;  %v861_v34 = vsel %vm40_vm3, %v35_v18, %v45_v26  ;;  %199 = vmatpush.msra.mxu2 %v622_v23  ;;  %v140_v42 = vld [vmem:[%s1284_s3 + $0x48] sm:$0xff] }
   0xb   :  { %v863_v35 = vsel %vm37_vm4, %v32_v19, %v42_v29  ;;  %v865_v36 = vsel %vm38_vm5, %v33_v20, %v43_v30  ;;  %225 = vmatpush.msra.mxu3 %v143_v27  ;;  %v737_v40 = vpack.i.bf16 %v853_v31, %v861_v34 }
   0xc   :  { %v742_v37 = vpack.i.bf16 %v863_v35, %v865_v36  ;;  %200 = vmatpush.msra.mxu2 %v621_v32 }
   0xd   :  { %226 = vmatpush.msra.mxu3 %v142_v33 }
   0xe   :  { %743 = vrot.lane.b32.xlu1 %v742_v37, %s775_s17 }
   0xf   :  { %9 = vsyncpa [#allocation3], 0  ;;  %201 = vmatpush.msra.mxu2 %v620_v38  ;;  %227 = vmatpush.msra.mxu3 %v141_v39  ;;  %v618_v43 = vld [vmem:[%s1284_s3 + $0xc0] sm:$0xff]  ;;  %v617_v45 = vld [vmem:[%s1284_s3 + $0xb8] sm:$0xff]  ;;  %vm107_vm6 = vcmask 1042432   ;;  %vm103_vm7 = vcmask 285696  }
  0x10   :  { %v139_v44 = vld [vmem:[%s1284_s3 + $0x40] sm:$0xff]  ;;  %v138_v46 = vld [vmem:[%s1284_s3 + $0x38] sm:$0xff]  ;;  %v616_v47 = vld [vmem:[%s1284_s3 + $0xb0] sm:$0xff]  ;;  %vm189_vm8 = vcmask 1039360   ;;  %s776_s15 = smov [#allocation2]   ;;  %vm587_vm9 = vcmask 254976  }
  0x11   :  { %202 = vmatpush.msra.mxu2 %v619_v41  ;;  %228 = vmatpush.msra.mxu3 %v140_v42  ;;  %v137_v48 = vld [vmem:[%s1284_s3 + $0x30] sm:$0xff]  ;;  %v615_v49 = vld [vmem:[%s1284_s3 + $0xa8] sm:$0xff]  ;;  %v614_v51 = vld [vmem:[%s1284_s3 + $0xa0] sm:$0xff]  ;;  %s594_s16 = sshll.u32 %s776_s15, 4  ;;  %s595_s16 = int_to_ptr.vmem [resolvable:$true] %s594_s16 }
  0x12   :  { %738 = vrot.lane.b32.xlu0 %v737_v40, %s775_s17  ;;  %v136_v50 = vld [vmem:[%s1284_s3 + $0x28] sm:$0xff]  ;;  %v135_v52 = vld [vmem:[%s1284_s3 + $0x20] sm:$0xff]  ;;  %v613_v53 = vld [vmem:[%s1284_s3 + $0x98] sm:$0xff] }
  0x13   :  { %203 = vmatpush.msra.mxu2 %v618_v43  ;;  %229 = vmatpush.msra.mxu3 %v139_v44  ;;  %v134_v54 = vld [vmem:[%s1284_s3 + $0x18] sm:$0xff]  ;;  %v612_v55 = vld [vmem:[%s1284_s3 + $0x90] sm:$0xff]  ;;  %v611_v57 = vld [vmem:[%s1284_s3 + $0x88] sm:$0xff] }
  0x14   :  { %v133_v56 = vld [vmem:[%s1284_s3 + $0x10] sm:$0xff]  ;;  %v132_v58 = vld [vmem:[%s1284_s3 + $0x8] sm:$0xff]  ;;  %v610_v59 = vld [vmem:[%s1284_s3 + $0x80] sm:$0xff] }
  0x15   :  { %204 = vmatpush.msra.mxu2 %v617_v45  ;;  %230 = vmatpush.msra.mxu3 %v138_v46  ;;  %v131_v60 = vld [vmem:[%s1284_s3] sm:$0xff]  ;;  %v648_v25 = vld [vmem:[%s1284_s3 + $0x178] sm:$0x7f]  ;;  %v647_v26 = vld [vmem:[%s1284_s3 + $0x170] sm:$0xff] }
  0x16   :  { %v102_v23 = vld [vmem:[%s1283_s2] sm:$0x3]  ;;  %v607_v24 = vld [vmem:[%s1283_s2 + $0x2] sm:$0x3]  ;;  %v646_v27 = vld [vmem:[%s1284_s3 + $0x168] sm:$0xff] }
  0x17   :  { %205 = vmatpush.msra.mxu2 %v616_v47  ;;  %231 = vmatpush.msra.mxu3 %v137_v48  ;;  %v644_v29 = vld [vmem:[%s1284_s3 + $0x158] sm:$0xff]  ;;  %v643_v30 = vld [vmem:[%s1284_s3 + $0x150] sm:$0xff]  ;;  %v641_v32 = vld [vmem:[%s1284_s3 + $0x140] sm:$0xff] }
  0x18   :  { %v640_v33 = vld [vmem:[%s1284_s3 + $0x138] sm:$0xff]  ;;  %v635_v38 = vld [vmem:[%s1284_s3 + $0x110] sm:$0xff]  ;;  %v634_v39 = vld [vmem:[%s1284_s3 + $0x108] sm:$0xff] }
  0x19   :  { %206 = vmatpush.msra.mxu2 %v615_v49  ;;  %232 = vmatpush.msra.mxu3 %v136_v50  ;;  %v636_v37 = vld [vmem:[%s1284_s3 + $0x118] sm:$0xff]  ;;  %v633_v40 = vld [vmem:[%s1284_s3 + $0x100] sm:$0xff]  ;;  %v668_v43 = vld [vmem:[%s1284_s3 + $0x1f0] sm:$0xff] }
  0x1a   :  { %v651_v41 = vld [vmem:[%s1283_s2 + $0x6] sm:$0x3]  ;;  %v669_v42 = vld [vmem:[%s1284_s3 + $0x1f8] sm:$0x7f]  ;;  %v667_v44 = vld [vmem:[%s1284_s3 + $0x1e8] sm:$0xff] }
  0x1b   :  { %207 = vmatpush.msra.mxu2 %v614_v51  ;;  %233 = vmatpush.msra.mxu3 %v135_v52  ;;  %v666_v45 = vld [vmem:[%s1284_s3 + $0x1e0] sm:$0xff]  ;;  %v665_v46 = vld [vmem:[%s1284_s3 + $0x1d8] sm:$0xff]  ;;  %v664_v47 = vld [vmem:[%s1284_s3 + $0x1d0] sm:$0xff] }
  0x1c   :  { %v663_v48 = vld [vmem:[%s1284_s3 + $0x1c8] sm:$0xff]  ;;  %v690_v49 = vld [vmem:[%s1284_s3 + $0x278] sm:$0x7f]  ;;  %v662_v50 = vld [vmem:[%s1284_s3 + $0x1c0] sm:$0xff] }
  0x1d   :  { %208 = vmatpush.msra.mxu2 %v613_v53  ;;  %234 = vmatpush.msra.mxu3 %v134_v54  ;;  %v689_v52 = vld [vmem:[%s1284_s3 + $0x270] sm:$0xff]  ;;  %v661_v53 = vld [vmem:[%s1284_s3 + $0x1b8] sm:$0xff]  ;;  %v688_v54 = vld [vmem:[%s1284_s3 + $0x268] sm:$0xff] }
  0x1f   :  { %209 = vmatpush.msra.mxu2 %v612_v55  ;;  %235 = vmatpush.msra.mxu3 %v133_v56  ;;  %v660_v55 = vld [vmem:[%s1284_s3 + $0x1b0] sm:$0xff]  ;;  %v687_v56 = vld [vmem:[%s1284_s3 + $0x260] sm:$0xff] }
  0x21   :  { %210 = vmatpush.msra.mxu2 %v611_v57  ;;  %236 = vmatpush.msra.mxu3 %v132_v58  ;;  %v630_v57 = vld [vmem:[%s1283_s2 + $0x4] sm:$0x3]  ;;  %v686_v58 = vld [vmem:[%s1284_s3 + $0x258] sm:$0xff] }
  0x23   :  { %211 = vmatpush.msra.mxu2 %v610_v59  ;;  %237 = vmatpush.msra.mxu3 %v131_v60  ;;  %v685_v59 = vld [vmem:[%s1284_s3 + $0x250] sm:$0xff] }
  0x7c   :  { %v66_v61 = vpop.permute.xlu0 %65 }
  0x7d   :  { %v76_v62 = vmax.f32 %v849_v28, %v66_v61  ;;  %v645_v28 = vld [vmem:[%s1284_s3 + $0x160] sm:$0xff]  ;;  %v684_v61 = vld [vmem:[%s1284_s3 + $0x248] sm:$0xff] }
  0x7f   :  { %v90_v63 = vrot.slane %v76_v62, 1 }
  0x80   :  { %v744_v0 = vpop.permute.xlu1 %743 }
  0x81   :  { %v938_v1 = vmax.f32 %v76_v62, %v90_v63  ;;  %v745_v2 = vunpack.i.l.bf16 %v744_v0  ;;  %v746_v3 = vunpack.i.h.bf16 %v744_v0  ;;  %v672_v62 = vld [vmem:[%s1283_s2 + $0x8] sm:$0x3]  ;;  %v683_v0 = vld [vmem:[%s1284_s3 + $0x240] sm:$0xff] }
  0x83   :  { %605 = vmatpush.msk.msra.mxu1 %vm107_vm6, %v938_v1  ;;  %631 = vmatpush.msk.msrb.mxu3 %vm107_vm6, %v938_v1  ;;  %v73_v7 = vmax.f32 %v865_v36, %v745_v2  ;;  %v72_v10 = vmax.f32 %v863_v35, %v746_v3  ;;  %v638_v35 = vld [vmem:[%s1284_s3 + $0x128] sm:$0xff]  ;;  %v637_v36 = vld [vmem:[%s1284_s3 + $0x120] sm:$0xff]  ;;  %v682_v3 = vld [vmem:[%s1284_s3 + $0x238] sm:$0xff] }
  0x84   :  { %652 = vmatpush.msk.msra.mxu0 %vm107_vm6, %v938_v1  ;;  %673 = vmatpush.msk.msrb.mxu2 %vm107_vm6, %v938_v1  ;;  %v739_v4 = vpop.permute.xlu0 %738  ;;  %v658_v2 = vld [vmem:[%s1284_s3 + $0x1a0] sm:$0xff] }
  0x85   :  { %v741_v5 = vunpack.i.h.bf16 %v739_v4  ;;  %v740_v6 = vunpack.i.l.bf16 %v739_v4  ;;  %v84_v13 = vrot.slane %v73_v7, 1  ;;  %v83_v16 = vrot.slane %v72_v10, 1  ;;  %v657_v4 = vld [vmem:[%s1284_s3 + $0x198] sm:$0xff] }
  0x87   :  { %v74_v8 = vmax.f32 %v853_v31, %v741_v5  ;;  %v75_v9 = vmax.f32 %v861_v34, %v740_v6  ;;  %v85_v20 = vsel %vm82_vm0, %v83_v16, %v84_v13  ;;  %v642_v31 = vld [vmem:[%s1284_s3 + $0x148] sm:$0xff]  ;;  %v639_v34 = vld [vmem:[%s1284_s3 + $0x130] sm:$0xff]  ;;  %v711_v16 = vld [vmem:[%s1284_s3 + $0x2f8] sm:$0x7f] }
  0x88   :  { %v970_v22 = vmax.f32 %v72_v10, %v85_v20  ;;  %v681_v5 = vld [vmem:[%s1284_s3 + $0x230] sm:$0xff]  ;;  %v732_v20 = vld [vmem:[%s1284_s3 + $0x378] sm:$0x7f] }
  0x89   :  { %v86_v11 = vrot.slane %v74_v8, 1  ;;  %v88_v12 = vrot.slane %v75_v9, 1  ;;  %v656_v6 = vld [vmem:[%s1284_s3 + $0x190] sm:$0xff] }
  0x8b   :  { %v89_v14 = vsel %vm82_vm0, %v86_v11, %v88_v12  ;;  %v91_v15 = vsel %vm82_vm0, %v88_v12, %v90_v63  ;;  %v87_v18 = vsel %vm82_vm0, %v84_v13, %v86_v11  ;;  %v659_v63 = vld [vmem:[%s1284_s3 + $0x1a8] sm:$0xff]  ;;  %v654_v11 = vld [vmem:[%s1284_s3 + $0x180] sm:$0xff]  ;;  %v678_v12 = vld [vmem:[%s1284_s3 + $0x218] sm:$0xff] }
  0x8c   :  { %v954_v17 = vmax.f32 %v75_v9, %v91_v15  ;;  %v957_v19 = vmax.f32 %v74_v8, %v89_v14  ;;  %v964_v21 = vmax.f32 %v73_v7, %v87_v18  ;;  %v680_v7 = vld [vmem:[%s1284_s3 + $0x228] sm:$0xff]  ;;  %v679_v9 = vld [vmem:[%s1284_s3 + $0x220] sm:$0xff]  ;;  %v677_v13 = vld [vmem:[%s1284_s3 + $0x210] sm:$0xff] }
  0x8d   :  { %v655_v8 = vld [vmem:[%s1284_s3 + $0x188] sm:$0xff]  ;;  %v675_v15 = vld [vmem:[%s1284_s3 + $0x200] sm:$0xff]  ;;  %v710_v18 = vld [vmem:[%s1284_s3 + $0x2f0] sm:$0xff] }
  0x8e   :  { %123 = vmatpush.msra.mxu1 %v954_v17  ;;  %259 = vmatpush.msrb.mxu3 %v954_v17  ;;  %v676_v14 = vld [vmem:[%s1284_s3 + $0x208] sm:$0xff] }
  0x8f   :  { %328 = vmatpush.msra.mxu0 %v954_v17  ;;  %397 = vmatpush.msrb.mxu2 %v954_v17 }
  0x90   :  { %124 = vmatpush.msra.mxu1 %v957_v19  ;;  %260 = vmatpush.msrb.mxu3 %v957_v19 }
  0x91   :  { %329 = vmatpush.msra.mxu0 %v957_v19  ;;  %398 = vmatpush.msrb.mxu2 %v957_v19 }
  0x92   :  { %125 = vmatpush.msra.mxu1 %v964_v21  ;;  %261 = vmatpush.msrb.mxu3 %v964_v21 }
  0x93   :  { %330 = vmatpush.msra.mxu0 %v964_v21  ;;  %399 = vmatpush.msrb.mxu2 %v964_v21 }
  0x94   :  { %126 = vmatpush.msra.mxu1 %v970_v22  ;;  %262 = vmatpush.msrb.mxu3 %v970_v22 }
  0x95   :  { %331 = vmatpush.msra.mxu0 %v970_v22  ;;  %400 = vmatpush.msrb.mxu2 %v970_v22 }
  0x96   :  { %606 = vmatmul.msk.f32.vlgmr.msra.gmra.mxu1 %vm103_vm7, %v102_v23  ;;  %653 = vmatmul.msk.f32.vlgmr.msra.gmra.mxu0 %vm103_vm7, %v651_v41  ;;  %v709_v23 = vld [vmem:[%s1284_s3 + $0x2e8] sm:$0xff] }
  0x97   :  { %608 = vmatpush.msk.msrb.mxu1 %vm107_vm6, %v938_v1  ;;  %670 = vmatpush.msk.msrb.mxu0 %vm82_vm0, %v669_v42  ;;  %v701_v41 = vld [vmem:[%s1284_s3 + $0x2a8] sm:$0xff] }
  0x98   :  { %v693_v42 = vld [vmem:[%s1283_s2 + $0xa] sm:$0x3] }
  0x99   :  { %164 = vmatpush.msrb.mxu1 %v954_v17  ;;  %360 = vmatpush.msrb.mxu0 %v668_v43  ;;  %v724_v43 = vld [vmem:[%s1284_s3 + $0x338] sm:$0xff] }
  0x9b   :  { %165 = vmatpush.msrb.mxu1 %v957_v19  ;;  %361 = vmatpush.msrb.mxu0 %v667_v44  ;;  %v698_v44 = vld [vmem:[%s1284_s3 + $0x290] sm:$0xff] }
  0x9d   :  { %166 = vmatpush.msrb.mxu1 %v964_v21  ;;  %362 = vmatpush.msrb.mxu0 %v666_v45  ;;  %v723_v45 = vld [vmem:[%s1284_s3 + $0x330] sm:$0xff] }
  0x9f   :  { %167 = vmatpush.msrb.mxu1 %v970_v22  ;;  %363 = vmatpush.msrb.mxu0 %v665_v46  ;;  %v697_v46 = vld [vmem:[%s1284_s3 + $0x288] sm:$0xff] }
  0xa0   :  { %609 = vmatmul.msk.f32.vlgmr.msrb.gmra.mxu1 %vm103_vm7, %v607_v24  ;;  %v731_v24 = vld [vmem:[%s1284_s3 + $0x370] sm:$0xff] }
  0xa1   :  { %649 = vmatpush.msk.msra.mxu1 %vm82_vm0, %v648_v25  ;;  %364 = vmatpush.msrb.mxu0 %v664_v47  ;;  %v730_v25 = vld [vmem:[%s1284_s3 + $0x368] sm:$0xff] }
  0xa2   :  { %v722_v47 = vld [vmem:[%s1284_s3 + $0x328] sm:$0xff] }
  0xa3   :  { %291 = vmatpush.msra.mxu1 %v647_v26  ;;  %365 = vmatpush.msrb.mxu0 %v663_v48  ;;  %v708_v26 = vld [vmem:[%s1284_s3 + $0x2e0] sm:$0xff] }
  0xa4   :  { %v696_v48 = vld [vmem:[%s1284_s3 + $0x280] sm:$0xff] }
  0xa5   :  { %292 = vmatpush.msra.mxu1 %v646_v27  ;;  %366 = vmatpush.msrb.mxu0 %v662_v50  ;;  %v729_v27 = vld [vmem:[%s1284_s3 + $0x360] sm:$0xff]  ;;  %v720_v50 = vld [vmem:[%s1284_s3 + $0x318] sm:$0xff] }
  0xa7   :  { %293 = vmatpush.msra.mxu1 %v645_v28  ;;  %367 = vmatpush.msrb.mxu0 %v661_v53  ;;  %v707_v28 = vld [vmem:[%s1284_s3 + $0x2d8] sm:$0xff]  ;;  %v717_v53 = vld [vmem:[%s1284_s3 + $0x300] sm:$0xff] }
  0xa9   :  { %294 = vmatpush.msra.mxu1 %v644_v29  ;;  %368 = vmatpush.msrb.mxu0 %v660_v55 }
  0xab   :  { %295 = vmatpush.msra.mxu1 %v643_v30  ;;  %369 = vmatpush.msrb.mxu0 %v659_v63  ;;  %v728_v30 = vld [vmem:[%s1284_s3 + $0x358] sm:$0xff] }
  0xad   :  { %296 = vmatpush.msra.mxu1 %v642_v31  ;;  %370 = vmatpush.msrb.mxu0 %v658_v2  ;;  %v706_v31 = vld [vmem:[%s1284_s3 + $0x2d0] sm:$0xff] }
  0xaf   :  { %297 = vmatpush.msra.mxu1 %v641_v32  ;;  %371 = vmatpush.msrb.mxu0 %v657_v4  ;;  %v727_v32 = vld [vmem:[%s1284_s3 + $0x350] sm:$0xff] }
  0xb1   :  { %298 = vmatpush.msra.mxu1 %v640_v33  ;;  %372 = vmatpush.msrb.mxu0 %v656_v6  ;;  %v705_v33 = vld [vmem:[%s1284_s3 + $0x2c8] sm:$0xff] }
  0xb3   :  { %299 = vmatpush.msra.mxu1 %v639_v34  ;;  %373 = vmatpush.msrb.mxu0 %v655_v8  ;;  %v726_v34 = vld [vmem:[%s1284_s3 + $0x348] sm:$0xff] }
  0xb5   :  { %300 = vmatpush.msra.mxu1 %v638_v35  ;;  %374 = vmatpush.msrb.mxu0 %v654_v11  ;;  %v704_v35 = vld [vmem:[%s1284_s3 + $0x2c0] sm:$0xff] }
  0xb7   :  { %301 = vmatpush.msra.mxu1 %v637_v36  ;;  %733 = vmatpush.msk.msra.mxu0 %vm82_vm0, %v732_v20  ;;  %v703_v36 = vld [vmem:[%s1284_s3 + $0x2b8] sm:$0xff] }
  0xb9   :  { %302 = vmatpush.msra.mxu1 %v636_v37  ;;  %567 = vmatpush.msra.mxu0 %v731_v24 }
  0xbb   :  { %303 = vmatpush.msra.mxu1 %v635_v38  ;;  %568 = vmatpush.msra.mxu0 %v730_v25  ;;  %v702_v38 = vld [vmem:[%s1284_s3 + $0x2b0] sm:$0xff] }
  0xbd   :  { %304 = vmatpush.msra.mxu1 %v634_v39  ;;  %569 = vmatpush.msra.mxu0 %v729_v27 }
  0xbf   :  { %305 = vmatpush.msra.mxu1 %v633_v40  ;;  %570 = vmatpush.msra.mxu0 %v728_v30 }
  0xc1   :  { %694 = vmatpush.msk.msrb.mxu1 %vm107_vm6, %v938_v1  ;;  %571 = vmatpush.msra.mxu0 %v727_v32 }
  0xc3   :  { %466 = vmatpush.msrb.mxu1 %v954_v17  ;;  %572 = vmatpush.msra.mxu0 %v726_v34 }
  0xc5   :  { %467 = vmatpush.msrb.mxu1 %v957_v19 }
  0xc7   :  { %468 = vmatpush.msrb.mxu1 %v964_v21 }
  0xc9   :  { %469 = vmatpush.msrb.mxu1 %v970_v22 }
 0x113   :  { %v128_v51 = vpop.f32.mrf.mxu1  ;;  %v333_v10 = vpop.f32.mrf.mxu0 }
 0x114   :  { %629 = vmatmul.msk.f32.vlgmr.msra.gmra.mxu3 %vm189_vm8, %v128_v51  ;;  %671 = vmatmul.msk.f32.vlgmr.msrb.gmra.mxu0 %vm189_vm8, %v333_v10  ;;  %v719_v51 = vld [vmem:[%s1284_s3 + $0x310] sm:$0xff] }
 0x115   :  { %691 = vmatpush.msk.msra.mxu3 %vm82_vm0, %v690_v49  ;;  %v721_v49 = vld [vmem:[%s1284_s3 + $0x320] sm:$0xff] }
 0x117   :  { %429 = vmatpush.msra.mxu3 %v689_v52  ;;  %v718_v52 = vld [vmem:[%s1284_s3 + $0x308] sm:$0xff] }
 0x119   :  { %430 = vmatpush.msra.mxu3 %v688_v54 }
 0x11b   :  { %431 = vmatpush.msra.mxu3 %v687_v56 }
 0x11c   :  { %632 = vmatmul.msk.f32.vlgmr.msrb.gmra.mxu3 %vm103_vm7, %v630_v57 }
 0x11d   :  { %v169_v60 = vpop.f32.mrf.mxu1  ;;  %432 = vmatpush.msra.mxu3 %v686_v58 }
 0x11e   :  { %627 = vmatmul.msk.f32.vlgmr.msra.gmra.mxu2 %vm189_vm8, %v169_v60 }
 0x11f   :  { %433 = vmatpush.msra.mxu3 %v685_v59  ;;  %712 = vmatpush.msk.msra.mxu2 %vm82_vm0, %v711_v16 }
 0x121   :  { %434 = vmatpush.msra.mxu3 %v684_v61  ;;  %498 = vmatpush.msra.mxu2 %v710_v18 }
 0x123   :  { %435 = vmatpush.msra.mxu3 %v683_v0  ;;  %499 = vmatpush.msra.mxu2 %v709_v23 }
 0x125   :  { %436 = vmatpush.msra.mxu3 %v682_v3  ;;  %500 = vmatpush.msra.mxu2 %v708_v26 }
 0x126   :  { %674 = vmatmul.msk.f32.vlgmr.msrb.gmra.mxu2 %vm103_vm7, %v672_v62 }
 0x127   :  { %437 = vmatpush.msra.mxu3 %v681_v5  ;;  %501 = vmatpush.msra.mxu2 %v707_v28 }
 0x129   :  { %438 = vmatpush.msra.mxu3 %v680_v7  ;;  %502 = vmatpush.msra.mxu2 %v706_v31 }
 0x12b   :  { %439 = vmatpush.msra.mxu3 %v679_v9  ;;  %503 = vmatpush.msra.mxu2 %v705_v33 }
 0x12d   :  { %440 = vmatpush.msra.mxu3 %v678_v12  ;;  %504 = vmatpush.msra.mxu2 %v704_v35 }
 0x12f   :  { %441 = vmatpush.msra.mxu3 %v677_v13  ;;  %505 = vmatpush.msra.mxu2 %v703_v36 }
 0x131   :  { %442 = vmatpush.msra.mxu3 %v676_v14  ;;  %506 = vmatpush.msra.mxu2 %v702_v38 }
 0x133   :  { %443 = vmatpush.msra.mxu3 %v675_v15  ;;  %507 = vmatpush.msra.mxu2 %v701_v41 }
 0x191   :  { %v376_v58 = vpop.f32.mrf.mxu0 }
 0x197   :  { %v239_v29 = vpop.f32.mrf.mxu3 }
 0x19f   :  { %v264_v37 = vpop.f32.mrf.mxu3 }
 0x1a0   :  { %650 = vmatmul.msk.f32.vlgmr.msra.gmra.mxu1 %vm189_vm8, %v264_v37 }
 0x1a1   :  { %v213_v39 = vpop.f32.mrf.mxu2  ;;  %715 = vmatpush.msk.msra.mxu1 %vm107_vm6, %v938_v1 }
 0x1a2   :  { %v240_v40 = vadd.f32 %v239_v29, %v213_v39 }
 0x1a3   :  { %535 = vmatpush.msra.mxu1 %v954_v17  ;;  %v714_v17 = vld [vmem:[%s1283_s2 + $0xc] sm:$0x3] }
 0x1a5   :  { %536 = vmatpush.msra.mxu1 %v957_v19  ;;  %v700_v19 = vld [vmem:[%s1284_s3 + $0x2a0] sm:$0xff] }
 0x1a6   :  { %508 = vmatpush.msra.mxu2 %v700_v19 }
 0x1a7   :  { %537 = vmatpush.msra.mxu1 %v964_v21  ;;  %v725_v21 = vld [vmem:[%s1284_s3 + $0x340] sm:$0xff] }
 0x1a8   :  { %695 = vmatmul.msk.f32.vlgmr.msrb.gmra.mxu1 %vm103_vm7, %v693_v42  ;;  %573 = vmatpush.msra.mxu0 %v725_v21 }
 0x1a9   :  { %v402_v1 = vpop.f32.mrf.mxu2  ;;  %538 = vmatpush.msra.mxu1 %v970_v22  ;;  %v699_v22 = vld [vmem:[%s1284_s3 + $0x298] sm:$0xff]  ;;  %s596_s3 = sshll.u32 %s1285_s4, 4  ;;  %s597_s3 = int_to_ptr.hbm [resolvable:$true] %s596_s3 }
 0x1aa   :  { %692 = vmatmul.msk.f32.vlgmr.msra.gmra.mxu3 %vm189_vm8, %v402_v1  ;;  %509 = vmatpush.msra.mxu2 %v699_v22 }
 0x1ab   :  { %574 = vmatpush.msra.mxu0 %v724_v43 }
 0x1ac   :  { %510 = vmatpush.msra.mxu2 %v698_v44 }
 0x1ad   :  { %575 = vmatpush.msra.mxu0 %v723_v45 }
 0x1ae   :  { %511 = vmatpush.msra.mxu2 %v697_v46 }
 0x1af   :  { %576 = vmatpush.msra.mxu0 %v722_v47 }
 0x1b0   :  { %716 = vmatmul.msk.f32.vlgmr.msra.gmra.mxu1 %vm103_vm7, %v714_v17  ;;  %512 = vmatpush.msra.mxu2 %v696_v48 }
 0x1b1   :  { %577 = vmatpush.msra.mxu0 %v721_v49 }
 0x1b3   :  { %578 = vmatpush.msra.mxu0 %v720_v50 }
 0x1b5   :  { %579 = vmatpush.msra.mxu0 %v719_v51 }
 0x1b7   :  { %580 = vmatpush.msra.mxu0 %v718_v52 }
 0x1b9   :  { %581 = vmatpush.msra.mxu0 %v717_v53 }
 0x21d   :  { %v307_v54 = vpop.f32.mrf.mxu1 }
 0x21e   :  { %v310_v55 = vadd.f32 %v307_v54, %v240_v40 }
 0x220   :  { %v379_v60 = vadd.f32 %v376_v58, %v310_v55 }
 0x225   :  { %v471_v56 = vpop.f32.mrf.mxu1 }
 0x226   :  { %713 = vmatmul.msk.f32.vlgmr.msra.gmra.mxu2 %vm189_vm8, %v471_v56 }
 0x22d   :  { %v540_v57 = vpop.f32.mrf.mxu1  ;;  %v445_v59 = vpop.f32.mrf.mxu3 }
 0x22e   :  { %734 = vmatmul.msk.f32.vlgmr.msra.gmra.mxu0 %vm189_vm8, %v540_v57  ;;  %v448_v61 = vadd.f32 %v445_v59, %v379_v60 }
 0x2a9   :  { %v514_v62 = vpop.f32.mrf.mxu2 }
 0x2aa   :  { %v517_v63 = vadd.f32 %v514_v62, %v448_v61 }
 0x2ab   :  { %v583_v0 = vpop.f32.mrf.mxu0 }
 0x2ac   :  { %v586_v2 = vadd.f32 %v583_v0, %v517_v63 }
 0x2ae   :  { %588 = vst.msk [vmem:[#allocation2] sm:$0x3] %vm587_vm9, %v586_v2 }
 0x2af   :  { %599 = dma.vmem_to_hbm [thread:$0]  %s595_s16, 32, %s597_s3, [#allocation3]  }
 0x2b0   :  { %773 = dma.done.wait [#allocation3], 32  }
 0x2b1   :  { %774 = vsyncadd [#allocation3], 4294967264 }
 0x2b2   :  { %604 = vsyncpa [#allocation3], 1 }

// kernel: _forward_impl.4
= control target key start
LH: loop header
LB: loop body
LE: loop exit
PB: predicated region body
PF: predicated region fallthrough
CT: control target
= control target key end

     0   :  { %s1497_s14 = smov 127   ;;  %vm236_vm8 = vcmask 1046528   ;;  %s2536_s0 = inlined_call_operand.vmem [shape: f32[64,224], index: 0, kind: input, shape index: {}]   ;;  %s2537_s1 = inlined_call_operand.vmem [shape: f32[8,224], index: 1, kind: input, shape index: {}]   ;;  %s2538_s2 = inlined_call_operand.vmem [shape: f32[223,144], index: 2, kind: input, shape index: {}]   ;;  %s2539_s3 = inlined_call_operand.vmem [shape: f32[36,63], index: 3, kind: input, shape index: {}]   ;;  %s2540_s4 = inlined_call_operand.vmem [shape: f32[5,144,128], index: 4, kind: input, shape index: {}]   ;;  %s2541_s6 = inlined_call_operand.vmem [shape: f32[8,128], index: 6, kind: output, shape index: {1}]   ;;  %s2542_s5 = inlined_call_operand.vmem [shape: f32[36,128], index: 5, kind: output, shape index: {0}]  }
   0x1   :  { %v25_v0 = vld [vmem:[%s2536_s0 + $0x18] sm:$0xff]  ;;  %v38_v1 = vld [vmem:[%s2537_s1] ss:$8 sm:$0x3]  ;;  %v24_v5 = vld [vmem:[%s2536_s0 + $0x10] sm:$0xff] }
   0x2   :  { %v22_v2 = vld [vmem:[%s2536_s0] sm:$0xff]  ;;  %v1544_v3 = vperm.slane %v38_v1, 1  ;;  %v1552_v6 = vperm.slane %v38_v1, 0  ;;  %v23_v14 = vld [vmem:[%s2536_s0 + $0x8] sm:$0xff]  ;;  %v28_v31 = vld [vmem:[%s2536_s0 + $0x30] sm:$0xff] }
   0x3   :  { %v1366_v4 = vld [vmem:[%s2537_s1 + $0x1] ss:$8 sm:$0x3]  ;;  %v29_v34 = vld [vmem:[%s2536_s0 + $0x38] sm:$0xff]  ;;  %v329_v45 = vld [vmem:[%s2538_s2 + $0xf0] sm:$0xff] }
   0x4   :  { %v1554_v7 = vperm.slane %v1366_v4, 1  ;;  %v1556_v8 = vperm.slane %v1366_v4, 0  ;;  %v26_v9 = vld [vmem:[%s2536_s0 + $0x20] sm:$0xff]  ;;  %v47_v10 = vsub.f32 %v25_v0, %v1544_v3  ;;  %v44_v11 = vsub.f32 %v22_v2, %v1552_v6  ;;  %v27_v15 = vld [vmem:[%s2536_s0 + $0x28] sm:$0xff]  ;;  %v330_v46 = vld [vmem:[%s2538_s2 + $0xf8] sm:$0xff]  ;;  %386 = vmatpush.msra.mxu0 %v329_v45 }
   0x5   :  { %v46_v12 = vsub.f32 %v24_v5, %v1552_v6  ;;  %v48_v13 = vsub.f32 %v26_v9, %v1552_v6  ;;  %v49_v16 = vsub.f32 %v27_v15, %v1544_v3  ;;  %v45_v21 = vsub.f32 %v23_v14, %v1544_v3  ;;  %v30_v25 = vld [vmem:[%s2536_s0 + $0x40] sm:$0xff]  ;;  %v31_v38 = vld [vmem:[%s2536_s0 + $0x48] sm:$0xff]  ;;  %v33_v48 = vld [vmem:[%s2536_s0 + $0x58] sm:$0xff]  ;;  %468 = vmatpush.msra.mxu2 %v330_v46 }
   0x6   :  { %v70_v17 = vmul.f32 %v1554_v7, %v47_v10  ;;  %v67_v18 = vmul.f32 %v1556_v8, %v44_v11  ;;  %v52_v35 = vsub.f32 %v30_v25, %v1552_v6  ;;  %v50_v37 = vsub.f32 %v28_v31, %v1552_v6  ;;  %v327_v47 = vld [vmem:[%s2538_s2 + $0xe0] sm:$0xff]  ;;  %v328_v50 = vld [vmem:[%s2538_s2 + $0xe8] sm:$0xff]  ;;  %v325_v52 = vld [vmem:[%s2538_s2 + $0xd0] sm:$0xff] }
   0x7   :  { %v69_v19 = vmul.f32 %v1556_v8, %v46_v12  ;;  %v71_v20 = vmul.f32 %v1556_v8, %v48_v13  ;;  %v72_v26 = vmul.f32 %v1554_v7, %v49_v16  ;;  %v68_v30 = vmul.f32 %v1554_v7, %v45_v21  ;;  %387 = vmatpush.msra.mxu0 %v327_v47  ;;  %v326_v55 = vld [vmem:[%s2538_s2 + $0xd8] sm:$0xff]  ;;  %v32_v58 = vld [vmem:[%s2536_s0 + $0x50] sm:$0xff]  ;;  %v323_v59 = vld [vmem:[%s2538_s2 + $0xc0] sm:$0xff] }
   0x8   :  { %vm86_vm0 = vcmp.gt.f32.partialorder %v70_v17, 0.0  ;;  %v102_v22 = vmul.f32 0.01, %v70_v17  ;;  %vm83_vm1 = vcmp.gt.f32.partialorder %v67_v18, 0.0  ;;  %v99_v23 = vmul.f32 0.01, %v67_v18  ;;  %469 = vmatpush.msra.mxu2 %v328_v50 }
   0x9   :  { %vm85_vm2 = vcmp.gt.f32.partialorder %v69_v19, 0.0  ;;  %v101_v24 = vmul.f32 0.01, %v69_v19  ;;  %v103_v33 = vmul.f32 0.01, %v71_v20  ;;  %vm87_vm3 = vcmp.gt.f32.partialorder %v71_v20, 0.0  ;;  %388 = vmatpush.msra.mxu0 %v325_v52 }
   0xa   :  { %v1581_v27 = vsel %vm86_vm0, %v70_v17, %v102_v22  ;;  %v1585_v28 = vsel %vm83_vm1, %v67_v18, %v99_v23  ;;  %vm88_vm4 = vcmp.gt.f32.partialorder %v72_v26, 0.0  ;;  %v104_v36 = vmul.f32 0.01, %v72_v26  ;;  %v353_v60 = vld [vmem:[%s2538_s2 + $0x1b0] sm:$0x7f]  ;;  %v324_v63 = vld [vmem:[%s2538_s2 + $0xc8] sm:$0xff]  ;;  %470 = vmatpush.msra.mxu2 %v326_v55 }
   0xb   :  { %153 = vrot.lane.b32.xlu1 %v1581_v27, %s1497_s14  ;;  %v1587_v29 = vsel %vm85_vm2, %v69_v19, %v101_v24  ;;  %v100_v39 = vmul.f32 0.01, %v68_v30  ;;  %v51_v40 = vsub.f32 %v29_v34, %v1544_v3  ;;  %v1607_v42 = vsel %vm87_vm3, %v71_v20, %v103_v33  ;;  %v34_v0 = vld [vmem:[%s2536_s0 + $0x60] sm:$0xff]  ;;  %v354_v1 = vld [vmem:[%s2538_s2 + $0x1b8] sm:$0x7f]  ;;  %v321_v2 = vld [vmem:[%s2538_s2 + $0xb0] sm:$0xff]  ;;  %389 = vmatpush.msra.mxu0 %v323_v59 }
   0xc   :  { %v1492_v32 = vpack.i.bf16 %v1587_v29, %v1585_v28  ;;  %v1605_v41 = vsel %vm88_vm4, %v72_v26, %v104_v36  ;;  %vm84_vm5 = vcmp.gt.f32.partialorder %v68_v30, 0.0  ;;  %v75_v43 = vmul.f32 %v1556_v8, %v52_v35  ;;  %1367 = vmatpush.msk.msra.mxu1 %vm236_vm8, %v353_v60  ;;  %v322_v9 = vld [vmem:[%s2538_s2 + $0xb8] sm:$0xff]  ;;  %v351_v10 = vld [vmem:[%s2538_s2 + $0x1a0] sm:$0xff]  ;;  %471 = vmatpush.msra.mxu2 %v324_v63  ;;  %v352_v13 = vld [vmem:[%s2538_s2 + $0x1a8] sm:$0xff] }
   0xd   :  { %157 = vrot.lane.b32.xlu2 %v1605_v41, %s1497_s14  ;;  %v73_v44 = vmul.f32 %v1556_v8, %v50_v37  ;;  %v53_v49 = vsub.f32 %v31_v38, %v1544_v3  ;;  %v1635_v53 = vsel %vm84_vm5, %v68_v30, %v100_v39  ;;  %v74_v54 = vmul.f32 %v1554_v7, %v51_v40  ;;  %v36_v15 = vld [vmem:[%s2536_s0 + $0x70] sm:$0xff]  ;;  %v319_v17 = vld [vmem:[%s2538_s2 + $0xa0] sm:$0xff]  ;;  %v320_v18 = vld [vmem:[%s2538_s2 + $0xa8] sm:$0xff] }
   0xe   :  { %1493 = vrot.lane.b32.xlu0 %v1492_v32, %s1497_s14  ;;  %v107_v56 = vmul.f32 0.01, %v75_v43  ;;  %v55_v57 = vsub.f32 %v33_v48, %v1544_v3  ;;  %vm91_vm7 = vcmp.gt.f32.partialorder %v75_v43, 0.0  ;;  %v54_v5 = vsub.f32 %v32_v58, %v1552_v6  ;;  %1376 = vmatpush.msk.msra.mxu3 %vm236_vm8, %v354_v1  ;;  %v349_v19 = vld [vmem:[%s2538_s2 + $0x190] sm:$0xff]  ;;  %v350_v20 = vld [vmem:[%s2538_s2 + $0x198] sm:$0xff]  ;;  %v35_v25 = vld [vmem:[%s2536_s0 + $0x68] sm:$0xff] }
   0xf   :  { %vm89_vm6 = vcmp.gt.f32.partialorder %v73_v44, 0.0  ;;  %v105_v51 = vmul.f32 0.01, %v73_v44  ;;  %v76_v62 = vmul.f32 %v1554_v7, %v53_v49  ;;  %v106_v4 = vmul.f32 0.01, %v74_v54  ;;  %390 = vmatpush.msra.mxu0 %v321_v2  ;;  %472 = vmatpush.msra.mxu2 %v322_v9  ;;  %v317_v23 = vld [vmem:[%s2538_s2 + $0x90] sm:$0xff] }
  0x10   :  { %vm90_vm9 = vcmp.gt.f32.partialorder %v74_v54, 0.0  ;;  %v1677_v11 = vsel %vm91_vm7, %v75_v43, %v107_v56  ;;  %v78_v12 = vmul.f32 %v1554_v7, %v55_v57  ;;  %v56_v16 = vsub.f32 %v34_v0, %v1552_v6  ;;  %432 = vmatpush.msra.mxu1 %v351_v10  ;;  %514 = vmatpush.msra.mxu3 %v352_v13  ;;  %v318_v30 = vld [vmem:[%s2538_s2 + $0x98] sm:$0xff]  ;;  %v348_v49 = vld [vmem:[%s2538_s2 + $0x188] sm:$0xff]  ;;  %v315_v50 = vld [vmem:[%s2538_s2 + $0x80] sm:$0xff] }
  0x11   :  { %v1651_v61 = vsel %vm89_vm6, %v73_v44, %v105_v51  ;;  %v108_v14 = vmul.f32 0.01, %v76_v62  ;;  %vm92_vm10 = vcmp.gt.f32.partialorder %v76_v62, 0.0  ;;  %v1703_v21 = vsel %vm90_vm9, %v74_v54, %v106_v4  ;;  %391 = vmatpush.msra.mxu0 %v319_v17  ;;  %473 = vmatpush.msra.mxu2 %v320_v18  ;;  %v316_v51 = vld [vmem:[%s2538_s2 + $0x88] sm:$0xff]  ;;  %v345_v52 = vld [vmem:[%s2538_s2 + $0x170] sm:$0xff]  ;;  %v346_v54 = vld [vmem:[%s2538_s2 + $0x178] sm:$0xff] }
  0x12   :  { %v77_v22 = vmul.f32 %v1556_v8, %v54_v5  ;;  %v110_v24 = vmul.f32 0.01, %v78_v12  ;;  %v58_v26 = vsub.f32 %v36_v15, %v1552_v6  ;;  %vm94_vm11 = vcmp.gt.f32.partialorder %v78_v12, 0.0  ;;  %433 = vmatpush.msra.mxu1 %v349_v19  ;;  %515 = vmatpush.msra.mxu3 %v350_v20  ;;  %v37_v6 = vld [vmem:[%s2536_s0 + $0x78] sm:$0xff]  ;;  %v313_v55 = vld [vmem:[%s2538_s2 + $0x70] sm:$0xff]  ;;  %v343_v57 = vld [vmem:[%s2538_s2 + $0x160] sm:$0xff] }
  0x13   :  { %155 = vrot.lane.b32.xlu1 %v1607_v42, %s1497_s14  ;;  %v1719_v31 = vsel %vm92_vm10, %v76_v62, %v108_v14  ;;  %v79_v32 = vmul.f32 %v1556_v8, %v56_v16  ;;  %392 = vmatpush.msra.mxu0 %v317_v23  ;;  %v57_v34 = vsub.f32 %v35_v25, %v1544_v3  ;;  %v314_v56 = vld [vmem:[%s2538_s2 + $0x78] sm:$0xff]  ;;  %v344_v58 = vld [vmem:[%s2538_s2 + $0x168] sm:$0xff]  ;;  %v311_v59 = vld [vmem:[%s2538_s2 + $0x60] sm:$0xff]  ;;  %vm179_vm1 = vcmask 1039360  }
  0x14   :  { %v109_v33 = vmul.f32 0.01, %v77_v22  ;;  %474 = vmatpush.msra.mxu2 %v318_v30  ;;  %v1728_v35 = vsel %vm94_vm11, %v78_v12, %v110_v24  ;;  %vm93_vm12 = vcmp.gt.f32.partialorder %v77_v22, 0.0  ;;  %v81_v36 = vmul.f32 %v1556_v8, %v58_v26  ;;  %516 = vmatpush.msra.mxu3 %v348_v49  ;;  %v312_v60 = vld [vmem:[%s2538_s2 + $0x68] sm:$0xff]  ;;  %v341_v62 = vld [vmem:[%s2538_s2 + $0x150] sm:$0xff]  ;;  %v342_v63 = vld [vmem:[%s2538_s2 + $0x158] sm:$0xff] }
  0x15   :  { %159 = vrot.lane.b32.xlu2 %v1651_v61, %s1497_s14  ;;  %v111_v37 = vmul.f32 0.01, %v79_v32  ;;  %v59_v38 = vsub.f32 %v37_v6, %v1544_v3  ;;  %vm95_vm13 = vcmp.gt.f32.partialorder %v79_v32, 0.0  ;;  %v80_v40 = vmul.f32 %v1554_v7, %v57_v34  ;;  %393 = vmatpush.msra.mxu0 %v315_v50  ;;  %v309_v0 = vld [vmem:[%s2538_s2 + $0x50] sm:$0xff]  ;;  %v310_v1 = vld [vmem:[%s2538_s2 + $0x58] sm:$0xff]  ;;  %v339_v2 = vld [vmem:[%s2538_s2 + $0x140] sm:$0xff] }
  0x16   :  { %149 = vrot.lane.b32.xlu0 %v1635_v53, %s1497_s14  ;;  %v1736_v39 = vsel %vm93_vm12, %v77_v22, %v109_v33  ;;  %v113_v43 = vmul.f32 0.01, %v81_v36  ;;  %vm97_vm14 = vcmp.gt.f32.partialorder %v81_v36, 0.0  ;;  %475 = vmatpush.msra.mxu2 %v316_v51  ;;  %v340_v4 = vld [vmem:[%s2538_s2 + $0x148] sm:$0xff]  ;;  %v307_v5 = vld [vmem:[%s2538_s2 + $0x40] sm:$0xff]  ;;  %v337_v10 = vld [vmem:[%s2538_s2 + $0x130] sm:$0xff] }
  0x17   :  { %v1739_v44 = vsel %vm95_vm13, %v79_v32, %v111_v37  ;;  %v82_v45 = vmul.f32 %v1554_v7, %v59_v38  ;;  %v112_v8 = vmul.f32 0.01, %v80_v40  ;;  %vm96_vm15 = vcmp.gt.f32.partialorder %v80_v40, 0.0  ;;  %v347_v7 = vld [vmem:[%s2538_s2 + $0x180] sm:$0xff]  ;;  %517 = vmatpush.msra.mxu3 %v346_v54  ;;  %394 = vmatpush.msra.mxu0 %v313_v55  ;;  %v308_v9 = vld [vmem:[%s2538_s2 + $0x48] sm:$0xff]  ;;  %v338_v12 = vld [vmem:[%s2538_s2 + $0x138] sm:$0xff] }
  0x18   :  { %v1744_v3 = vsel %vm97_vm14, %v81_v36, %v113_v43  ;;  %434 = vmatpush.msra.mxu1 %v347_v7  ;;  %476 = vmatpush.msra.mxu2 %v314_v56  ;;  %v305_v13 = vld [vmem:[%s2538_s2 + $0x30] sm:$0xff]  ;;  %v306_v14 = vld [vmem:[%s2538_s2 + $0x38] sm:$0xff]  ;;  %v335_v15 = vld [vmem:[%s2538_s2 + $0x120] sm:$0xff]  ;;  %vm355_vm2 = vcmask 777216   ;;  %vm555_vm3 = vcmask 515072   ;;  %vm974_vm4 = vcmask 1044480  }
  0x19   :  { %v114_v46 = vmul.f32 0.01, %v82_v45  ;;  %vm98_vm0 = vcmp.gt.f32.partialorder %v82_v45, 0.0  ;;  %v1748_v47 = vsel %vm96_vm15, %v80_v40, %v112_v8  ;;  %518 = vmatpush.msra.mxu3 %v344_v58  ;;  %395 = vmatpush.msra.mxu0 %v311_v59  ;;  %v336_v16 = vld [vmem:[%s2538_s2 + $0x128] sm:$0xff]  ;;  %v303_v17 = vld [vmem:[%s2538_s2 + $0x20] sm:$0xff]  ;;  %v333_v19 = vld [vmem:[%s2538_s2 + $0x110] sm:$0xff] }
  0x1a   :  { %435 = vmatpush.msra.mxu1 %v345_v52  ;;  %477 = vmatpush.msra.mxu2 %v312_v60  ;;  %v304_v18 = vld [vmem:[%s2538_s2 + $0x28] sm:$0xff]  ;;  %v334_v20 = vld [vmem:[%s2538_s2 + $0x118] sm:$0xff]  ;;  %v301_v22 = vld [vmem:[%s2538_s2 + $0x10] sm:$0xff]  ;;  %vm1086_vm5 = vcmask 1043456   ;;  %vm710_vm6 = vcmask 130048   ;;  %vm862_vm7 = vcmask 1045504  }
  0x1b   :  { %163 = vrot.lane.b32.xlu1 %v1677_v11, %s1497_s14  ;;  %v1752_v48 = vsel %vm98_vm0, %v82_v45, %v114_v46  ;;  %519 = vmatpush.msra.mxu3 %v342_v63  ;;  %v302_v23 = vld [vmem:[%s2538_s2 + $0x18] sm:$0xff]  ;;  %v331_v24 = vld [vmem:[%s2538_s2 + $0x100] sm:$0xff]  ;;  %v332_v25 = vld [vmem:[%s2538_s2 + $0x108] sm:$0xff] }
  0x1c   :  { %436 = vmatpush.msra.mxu1 %v343_v57  ;;  %396 = vmatpush.msra.mxu0 %v309_v0  ;;  %v299_v26 = vld [vmem:[%s2538_s2] sm:$0xff]  ;;  %v300_v30 = vld [vmem:[%s2538_s2 + $0x8] sm:$0xff] }
  0x1d   :  { %165 = vrot.lane.b32.xlu2 %v1719_v31, %s1497_s14  ;;  %478 = vmatpush.msra.mxu2 %v310_v1 }
  0x1e   :  { %161 = vrot.lane.b32.xlu0 %v1703_v21, %s1497_s14  ;;  %437 = vmatpush.msra.mxu1 %v341_v62 }
  0x1f   :  { %520 = vmatpush.msra.mxu3 %v340_v4  ;;  %397 = vmatpush.msra.mxu0 %v307_v5 }
  0x20   :  { %438 = vmatpush.msra.mxu1 %v339_v2  ;;  %479 = vmatpush.msra.mxu2 %v308_v9 }
  0x21   :  { %521 = vmatpush.msra.mxu3 %v338_v12  ;;  %398 = vmatpush.msra.mxu0 %v305_v13 }
  0x22   :  { %439 = vmatpush.msra.mxu1 %v337_v10  ;;  %480 = vmatpush.msra.mxu2 %v306_v14 }
  0x23   :  { %169 = vrot.lane.b32.xlu1 %v1728_v35, %s1497_s14  ;;  %522 = vmatpush.msra.mxu3 %v336_v16 }
  0x24   :  { %440 = vmatpush.msra.mxu1 %v335_v15  ;;  %399 = vmatpush.msra.mxu0 %v303_v17 }
  0x25   :  { %171 = vrot.lane.b32.xlu2 %v1739_v44, %s1497_s14  ;;  %481 = vmatpush.msra.mxu2 %v304_v18 }
  0x26   :  { %167 = vrot.lane.b32.xlu0 %v1736_v39, %s1497_s14  ;;  %441 = vmatpush.msra.mxu1 %v333_v19 }
  0x27   :  { %523 = vmatpush.msra.mxu3 %v334_v20  ;;  %400 = vmatpush.msra.mxu0 %v301_v22 }
  0x28   :  { %482 = vmatpush.msra.mxu2 %v302_v23  ;;  %442 = vmatpush.msra.mxu1 %v331_v24 }
  0x29   :  { %524 = vmatpush.msra.mxu3 %v332_v25  ;;  %401 = vmatpush.msra.mxu0 %v299_v26 }
  0x2a   :  { %483 = vmatpush.msra.mxu2 %v300_v30 }
  0x2b   :  { %175 = vrot.lane.b32.xlu1 %v1744_v3, %s1497_s14 }
  0x2d   :  { %177 = vrot.lane.b32.xlu2 %v1752_v48, %s1497_s14 }
  0x2e   :  { %173 = vrot.lane.b32.xlu0 %v1748_v47, %s1497_s14 }
  0x67   :  { %v158_v34 = vpop.permute.xlu2 %157 }
  0x68   :  { %v209_v51 = vmax.f32 %v1605_v41, %v158_v34 }
  0x6a   :  { %v245_v59 = vrot.slane %v209_v51, 1 }
  0x7d   :  { %v154_v32 = vpop.permute.xlu1 %153 }
  0x7e   :  { %v207_v38 = vmax.f32 %v1581_v27, %v154_v32  ;;  %v160_v27 = vpop.permute.xlu2 %159 }
  0x80   :  { %v1494_v6 = vpop.permute.xlu0 %1493  ;;  %v241_v50 = vrot.slane %v207_v38, 1 }
  0x81   :  { %v1496_v33 = vunpack.i.h.bf16 %v1494_v6  ;;  %v1495_v40 = vunpack.i.l.bf16 %v1494_v6 }
  0x82   :  { %v246_v62 = vsel %vm236_vm8, %v241_v50, %v245_v59 }
  0x83   :  { %v181_v36 = vsel %vm179_vm1, %v1496_v33, %v154_v32  ;;  %v286_v4 = vmax.f32 %v207_v38, %v246_v62 }
  0x84   :  { %v206_v43 = vmax.f32 %v1587_v29, %v181_v36 }
  0x85   :  { %v156_v37 = vpop.permute.xlu1 %155 }
  0x86   :  { %v182_v8 = vsel %vm179_vm1, %v156_v37, %v158_v34  ;;  %v238_v56 = vrot.slane %v206_v43, 1  ;;  %v166_v2 = vpop.permute.xlu2 %165 }
  0x87   :  { %v208_v54 = vmax.f32 %v1607_v42, %v182_v8 }
  0x88   :  { %v150_v45 = vpop.permute.xlu0 %149 }
  0x89   :  { %v180_v46 = vsel %vm179_vm1, %v1495_v40, %v150_v45  ;;  %v205_v7 = vmax.f32 %v1635_v53, %v150_v45  ;;  %v243_v53 = vrot.slane %v208_v54, 1 }
  0x8a   :  { %v204_v49 = vmax.f32 %v1585_v28, %v180_v46 }
  0x8b   :  { %v240_v52 = vrot.slane %v205_v7, 1  ;;  %v244_v1 = vsel %vm236_vm8, %v238_v56, %v243_v53 }
  0x8c   :  { %v237_v55 = vrot.slane %v204_v49, 1  ;;  %v285_v9 = vmax.f32 %v206_v43, %v244_v1 }
  0x8d   :  { %v242_v29 = vsel %vm236_vm8, %v240_v52, %v241_v50  ;;  %v164_v0 = vpop.permute.xlu1 %163 }
  0x8e   :  { %v284_v57 = vmax.f32 %v205_v7, %v242_v29  ;;  %v239_v58 = vsel %vm236_vm8, %v237_v55, %v238_v56  ;;  %v184_v12 = vsel %vm179_vm1, %v164_v0, %v166_v2  ;;  %v172_v24 = vpop.permute.xlu2 %171 }
  0x8f   :  { %v283_v60 = vmax.f32 %v204_v49, %v239_v58  ;;  %v212_v13 = vmax.f32 %v1677_v11, %v184_v12 }
  0x90   :  { %1368 = vmatmul.msk.f32.vlgmr.msra.gmra.mxu1 %vm355_vm2, %v284_v57  ;;  %1377 = vmatmul.msk.f32.vlgmr.msra.gmra.mxu3 %vm355_vm2, %v284_v57  ;;  %v162_v28 = vpop.permute.xlu0 %161 }
  0x91   :  { %v183_v41 = vsel %vm179_vm1, %v160_v27, %v162_v28  ;;  %402 = vmatmul.f32.vlgmr.msra.gmra.mxu0 %v283_v60  ;;  %484 = vmatmul.f32.vlgmr.msra.gmra.mxu2 %v283_v60  ;;  %v211_v42 = vmax.f32 %v1703_v21, %v162_v28  ;;  %v213_v21 = vmax.f32 %v1719_v31, %v166_v2  ;;  %v251_v20 = vrot.slane %v212_v13, 1 }
  0x92   :  { %v210_v63 = vmax.f32 %v1651_v61, %v183_v41 }
  0x93   :  { %v249_v5 = vrot.slane %v211_v42, 1  ;;  %v253_v18 = vrot.slane %v213_v21, 1 }
  0x94   :  { %v247_v10 = vrot.slane %v210_v63, 1 }
  0x95   :  { %v250_v61 = vsel %vm236_vm8, %v245_v59, %v249_v5  ;;  %v170_v16 = vpop.permute.xlu1 %169  ;;  %v254_v11 = vsel %vm236_vm8, %v249_v5, %v253_v18 }
  0x96   :  { %v248_v15 = vsel %vm236_vm8, %v243_v53, %v247_v10  ;;  %v288_v17 = vmax.f32 %v209_v51, %v250_v61  ;;  %v215_v31 = vmax.f32 %v1728_v35, %v170_v16  ;;  %v252_v25 = vsel %vm236_vm8, %v247_v10, %v251_v20  ;;  %v178_v38 = vpop.permute.xlu2 %177 }
  0x97   :  { %v287_v19 = vmax.f32 %v208_v54, %v248_v15  ;;  %v290_v30 = vmax.f32 %v211_v42, %v254_v11  ;;  %v289_v6 = vmax.f32 %v210_v63, %v252_v25 }
  0x98   :  { %1369 = vmatmul.msk.f32.gmra.mxu1 %vm355_vm2, %v286_v4  ;;  %1378 = vmatmul.msk.f32.gmra.mxu3 %vm355_vm2, %v286_v4  ;;  %v168_v14 = vpop.permute.xlu0 %167  ;;  %v257_v32 = vrot.slane %v215_v31, 1 }
  0x99   :  { %405 = vmatmul.f32.gmra.mxu0 %v285_v9  ;;  %487 = vmatmul.f32.gmra.mxu2 %v285_v9  ;;  %v185_v22 = vsel %vm179_vm1, %v168_v14, %v170_v16 }
  0x9a   :  { %v214_v23 = vmax.f32 %v1736_v39, %v185_v22  ;;  %v258_v39 = vsel %vm236_vm8, %v253_v18, %v257_v32 }
  0x9b   :  { %v292_v43 = vmax.f32 %v213_v21, %v258_v39 }
  0x9c   :  { %v255_v33 = vrot.slane %v214_v23, 1 }
  0x9d   :  { %v176_v40 = vpop.permute.xlu1 %175 }
  0x9e   :  { %v256_v37 = vsel %vm236_vm8, %v251_v20, %v255_v33  ;;  %v187_v7 = vsel %vm179_vm1, %v176_v40, %v178_v38 }
  0x9f   :  { %v291_v8 = vmax.f32 %v212_v13, %v256_v37  ;;  %v218_v49 = vmax.f32 %v1744_v3, %v187_v7  ;;  %v551_v7 = vld [vmem:[%s2539_s3 + $0x8] sm:$0xff] }
  0xa0   :  { %1370 = vmatmul.msk.f32.gmra.mxu1 %vm355_vm2, %v288_v17  ;;  %1379 = vmatmul.msk.f32.gmra.mxu3 %vm355_vm2, %v288_v17  ;;  %v174_v26 = vpop.permute.xlu0 %173 }
  0xa1   :  { %408 = vmatmul.f32.gmra.mxu0 %v287_v19  ;;  %490 = vmatmul.f32.gmra.mxu2 %v287_v19  ;;  %v186_v34 = vsel %vm179_vm1, %v172_v24, %v174_v26  ;;  %v217_v35 = vmax.f32 %v1748_v47, %v174_v26  ;;  %v219_v47 = vmax.f32 %v1752_v48, %v178_v38  ;;  %v263_v55 = vrot.slane %v218_v49, 1 }
  0xa2   :  { %v216_v36 = vmax.f32 %v1739_v44, %v186_v34 }
  0xa3   :  { %v261_v45 = vrot.slane %v217_v35, 1  ;;  %v265_v52 = vrot.slane %v219_v47, 1  ;;  %v297_v57 = vmax.f32 %v218_v49, %v263_v55  ;;  %v1410_v49 = vld [vmem:[%s2540_s4 + $0xf8] sm:$0xff] }
  0xa4   :  { %v259_v46 = vrot.slane %v216_v36, 1 }
  0xa5   :  { %v262_v44 = vsel %vm236_vm8, %v257_v32, %v261_v45  ;;  %v266_v27 = vsel %vm236_vm8, %v261_v45, %v265_v52  ;;  %v298_v3 = vmax.f32 %v219_v47, %v265_v52  ;;  %v550_v45 = vld [vmem:[%s2539_s3] sm:$0xff]  ;;  %v1412_v47 = vld [vmem:[%s2540_s4 + $0x108] sm:$0xff]  ;;  %v552_v52 = vld [vmem:[%s2539_s3 + $0x10] sm:$0xff] }
  0xa6   :  { %v260_v50 = vsel %vm236_vm8, %v255_v33, %v259_v46  ;;  %v294_v51 = vmax.f32 %v215_v31, %v262_v44  ;;  %v264_v48 = vsel %vm236_vm8, %v259_v46, %v263_v55  ;;  %v296_v56 = vmax.f32 %v217_v35, %v266_v27  ;;  %v1411_v44 = vld [vmem:[%s2540_s4 + $0x100] sm:$0xff]  ;;  %719 = vmatpush.msrb.mxu0 %v1412_v47  ;;  %v1406_v55 = vld [vmem:[%s2540_s4 + $0xd8] sm:$0xff]  ;;  %v1405_v27 = vld [vmem:[%s2540_s4 + $0xd0] sm:$0xff] }
  0xa7   :  { %v293_v54 = vmax.f32 %v214_v23, %v260_v50  ;;  %v295_v29 = vmax.f32 %v216_v36, %v264_v48  ;;  %v1409_v50 = vld [vmem:[%s2540_s4 + $0xf0] sm:$0xff]  ;;  %v1404_v48 = vld [vmem:[%s2540_s4 + $0xc8] sm:$0xff] }
  0xa8   :  { %1371 = vmatmul.msk.f32.gmra.mxu1 %vm355_vm2, %v290_v30  ;;  %1380 = vmatmul.msk.f32.gmra.mxu3 %vm355_vm2, %v290_v30  ;;  %v1428_v47 = vld [vmem:[%s2540_s4 + $0x148] sm:$0xff] }
  0xa9   :  { %411 = vmatmul.f32.gmra.mxu0 %v289_v6  ;;  %493 = vmatmul.f32.gmra.mxu2 %v289_v6 }
  0xaa   :  { %720 = vmatpush.msrb.mxu0 %v1411_v44  ;;  %v1460_v44 = vld [vmem:[%s2540_s4 + $0x228] sm:$0xff] }
  0xac   :  { %721 = vmatpush.msrb.mxu0 %v1410_v49 }
  0xae   :  { %722 = vmatpush.msrb.mxu0 %v1409_v50  ;;  %v1427_v50 = vld [vmem:[%s2540_s4 + $0x140] sm:$0xff] }
  0xb0   :  { %1372 = vmatmul.msk.f32.gmra.mxu1 %vm355_vm2, %v292_v43  ;;  %1381 = vmatmul.msk.f32.gmra.mxu3 %vm355_vm2, %v292_v43 }
  0xb1   :  { %414 = vmatmul.f32.gmra.mxu0 %v291_v8  ;;  %496 = vmatmul.f32.gmra.mxu2 %v291_v8 }
  0xb8   :  { %1373 = vmatmul.msk.f32.gmra.mxu1 %vm355_vm2, %v294_v51  ;;  %1382 = vmatmul.msk.f32.gmra.mxu3 %vm355_vm2, %v294_v51  ;;  %v1408_v51 = vld [vmem:[%s2540_s4 + $0xe8] sm:$0xff] }
  0xb9   :  { %417 = vmatmul.f32.gmra.mxu0 %v293_v54  ;;  %499 = vmatmul.f32.gmra.mxu2 %v293_v54  ;;  %v1407_v54 = vld [vmem:[%s2540_s4 + $0xe0] sm:$0xff] }
  0xba   :  { %723 = vmatpush.msrb.mxu0 %v1408_v51  ;;  %v1459_v51 = vld [vmem:[%s2540_s4 + $0x220] sm:$0xff] }
  0xbc   :  { %724 = vmatpush.msrb.mxu0 %v1407_v54  ;;  %v1426_v54 = vld [vmem:[%s2540_s4 + $0x138] sm:$0xff] }
  0xbe   :  { %725 = vmatpush.msrb.mxu0 %v1406_v55  ;;  %v1458_v55 = vld [vmem:[%s2540_s4 + $0x218] sm:$0xff] }
  0xc0   :  { %1374 = vmatmul.msk.f32.gmra.mxu1 %vm355_vm2, %v296_v56  ;;  %1383 = vmatmul.msk.f32.gmra.mxu3 %vm355_vm2, %v296_v56  ;;  %v553_v56 = vld [vmem:[%s2539_s3 + $0x18] sm:$0xff] }
  0xc1   :  { %420 = vmatmul.f32.gmra.mxu0 %v295_v29  ;;  %502 = vmatmul.f32.gmra.mxu2 %v295_v29  ;;  %v1403_v29 = vld [vmem:[%s2540_s4 + $0xc0] sm:$0xff] }
  0xc2   :  { %726 = vmatpush.msrb.mxu0 %v1405_v27  ;;  %v1425_v27 = vld [vmem:[%s2540_s4 + $0x130] sm:$0xff] }
  0xc4   :  { %727 = vmatpush.msrb.mxu0 %v1404_v48 }
  0xc6   :  { %728 = vmatpush.msrb.mxu0 %v1403_v29 }
  0xc8   :  { %1375 = vmatmul.msk.f32.gmra.mxu1 %vm355_vm2, %v298_v3  ;;  %1384 = vmatmul.msk.f32.gmra.mxu3 %vm355_vm2, %v298_v3  ;;  %v554_v3 = vld [vmem:[%s2539_s3 + $0x20] sm:$0xf] }
  0xc9   :  { %423 = vmatmul.f32.gmra.mxu0 %v297_v57  ;;  %505 = vmatmul.f32.gmra.mxu2 %v297_v57  ;;  %v1402_v57 = vld [vmem:[%s2540_s4 + $0xb8] sm:$0xff] }
  0xca   :  { %729 = vmatpush.msrb.mxu0 %v1402_v57 }
 0x10d   :  { %v444_v58 = vpop.f32.mrf.mxu1 }
 0x10e   :  { %v403_v59 = vpop.f32.mrf.mxu0 }
 0x10f   :  { %v445_v60 = vadd.f32 %v444_v58, %v403_v59  ;;  %v1401_v58 = vld [vmem:[%s2540_s4 + $0xb0] sm:$0xff]  ;;  %v1400_v59 = vld [vmem:[%s2540_s4 + $0xa8] sm:$0xff] }
 0x110   :  { %730 = vmatpush.msrb.mxu0 %v1401_v58 }
 0x112   :  { %731 = vmatpush.msrb.mxu0 %v1400_v59 }
 0x113   :  { %v526_v53 = vpop.f32.mrf.mxu3 }
 0x114   :  { %v485_v28 = vpop.f32.mrf.mxu2 }
 0x115   :  { %v527_v41 = vadd.f32 %v526_v53, %v485_v28  ;;  %v447_v42 = vpop.f32.mrf.mxu1  ;;  %v1398_v53 = vld [vmem:[%s2540_s4 + $0x98] sm:$0xff] }
 0x116   :  { %v406_v62 = vpop.f32.mrf.mxu0  ;;  %v1414_v28 = vld [vmem:[%s2540_s4 + $0x118] sm:$0xff] }
 0x117   :  { %v448_v38 = vadd.f32 %v447_v42, %v406_v62  ;;  %762 = vmatpush.msrb.mxu2 %v1414_v28  ;;  %v658_v42 = vld [vmem:[%s2540_s4 + $0x88] sm:$0xff]  ;;  %v657_v62 = vld [vmem:[%s2540_s4 + $0x80] sm:$0xff] }
 0x118   :  { %v1456_v28 = vld [vmem:[%s2540_s4 + $0x208] sm:$0xff] }
 0x11b   :  { %v529_v63 = vpop.f32.mrf.mxu3 }
 0x11c   :  { %v488_v0 = vpop.f32.mrf.mxu2 }
 0x11d   :  { %v450_v1 = vpop.f32.mrf.mxu1  ;;  %v530_v46 = vadd.f32 %v529_v63, %v488_v0  ;;  %v656_v63 = vld [vmem:[%s2540_s4 + $0x78] sm:$0xff]  ;;  %v655_v0 = vld [vmem:[%s2540_s4 + $0x70] sm:$0xff] }
 0x11e   :  { %v409_v2 = vpop.f32.mrf.mxu0 }
 0x11f   :  { %v451_v36 = vadd.f32 %v450_v1, %v409_v2  ;;  %v654_v1 = vld [vmem:[%s2540_s4 + $0x68] sm:$0xff]  ;;  %v653_v2 = vld [vmem:[%s2540_s4 + $0x60] sm:$0xff] }
 0x123   :  { %v532_v4 = vpop.f32.mrf.mxu3 }
 0x124   :  { %v491_v5 = vpop.f32.mrf.mxu2 }
 0x125   :  { %v453_v9 = vpop.f32.mrf.mxu1  ;;  %v533_v8 = vadd.f32 %v532_v4, %v491_v5  ;;  %v652_v4 = vld [vmem:[%s2540_s4 + $0x58] sm:$0xff]  ;;  %v1440_v5 = vld [vmem:[%s2540_s4 + $0x1a8] sm:$0xff] }
 0x126   :  { %v412_v10 = vpop.f32.mrf.mxu0 }
 0x127   :  { %v454_v35 = vadd.f32 %v453_v9, %v412_v10  ;;  %v1413_v9 = vld [vmem:[%s2540_s4 + $0x110] sm:$0xff] }
 0x128   :  { %v651_v10 = vld [vmem:[%s2540_s4 + $0x50] sm:$0xff]  ;;  %763 = vmatpush.msrb.mxu2 %v1413_v9  ;;  %v1483_v9 = vld [vmem:[%s2540_s4 + $0x2c0] sm:$0xff] }
 0x12b   :  { %v535_v12 = vpop.f32.mrf.mxu3 }
 0x12c   :  { %v494_v21 = vpop.f32.mrf.mxu2 }
 0x12d   :  { %v456_v61 = vpop.f32.mrf.mxu1  ;;  %v536_v43 = vadd.f32 %v535_v12, %v494_v21  ;;  %v1439_v12 = vld [vmem:[%s2540_s4 + $0x1a0] sm:$0xff]  ;;  %v650_v21 = vld [vmem:[%s2540_s4 + $0x48] sm:$0xff] }
 0x12e   :  { %v415_v13 = vpop.f32.mrf.mxu0 }
 0x12f   :  { %v457_v33 = vadd.f32 %v456_v61, %v415_v13  ;;  %v1438_v61 = vld [vmem:[%s2540_s4 + $0x198] sm:$0xff]  ;;  %v649_v13 = vld [vmem:[%s2540_s4 + $0x40] sm:$0xff] }
 0x130   :  { %893 = vmatpush.msra.mxu2 %v1438_v61 }
 0x133   :  { %v538_v14 = vpop.f32.mrf.mxu3 }
 0x134   :  { %v497_v15 = vpop.f32.mrf.mxu2 }
 0x135   :  { %v459_v16 = vpop.f32.mrf.mxu1  ;;  %v539_v40 = vadd.f32 %v538_v14, %v497_v15  ;;  %v1437_v14 = vld [vmem:[%s2540_s4 + $0x190] sm:$0xff]  ;;  %v648_v15 = vld [vmem:[%s2540_s4 + $0x38] sm:$0xff] }
 0x136   :  { %v418_v17 = vpop.f32.mrf.mxu0  ;;  %894 = vmatpush.msra.mxu2 %v1437_v14 }
 0x137   :  { %v460_v30 = vadd.f32 %v459_v16, %v418_v17  ;;  %v1436_v16 = vld [vmem:[%s2540_s4 + $0x188] sm:$0xff]  ;;  %v647_v17 = vld [vmem:[%s2540_s4 + $0x30] sm:$0xff] }
 0x138   :  { %895 = vmatpush.msra.mxu2 %v1436_v16  ;;  %v1453_v16 = vld [vmem:[%s2540_s4 + $0x1f0] sm:$0xff] }
 0x13b   :  { %v541_v18 = vpop.f32.mrf.mxu3 }
 0x13c   :  { %v500_v19 = vpop.f32.mrf.mxu2 }
 0x13d   :  { %v462_v20 = vpop.f32.mrf.mxu1  ;;  %v542_v37 = vadd.f32 %v541_v18, %v500_v19  ;;  %v1435_v18 = vld [vmem:[%s2540_s4 + $0x180] sm:$0xff] }
 0x13e   :  { %v421_v22 = vpop.f32.mrf.mxu0  ;;  %896 = vmatpush.msra.mxu2 %v1435_v18 }
 0x13f   :  { %v463_v26 = vadd.f32 %v462_v20, %v421_v22  ;;  %v646_v20 = vld [vmem:[%s2540_s4 + $0x28] sm:$0xff]  ;;  %v1434_v22 = vld [vmem:[%s2540_s4 + $0x178] sm:$0xff] }
 0x140   :  { %897 = vmatpush.msra.mxu2 %v1434_v22 }
 0x143   :  { %v544_v31 = vpop.f32.mrf.mxu3 }
 0x144   :  { %v503_v11 = vpop.f32.mrf.mxu2 }
 0x145   :  { %v465_v23 = vpop.f32.mrf.mxu1  ;;  %v545_v39 = vadd.f32 %v544_v31, %v503_v11  ;;  %v645_v31 = vld [vmem:[%s2540_s4 + $0x20] sm:$0xff]  ;;  %v1433_v11 = vld [vmem:[%s2540_s4 + $0x170] sm:$0xff] }
 0x146   :  { %v424_v24 = vpop.f32.mrf.mxu0  ;;  %898 = vmatpush.msra.mxu2 %v1433_v11  ;;  %v1480_v11 = vld [vmem:[%s2540_s4 + $0x2a8] sm:$0xff] }
 0x147   :  { %v466_v25 = vadd.f32 %v465_v23, %v424_v24  ;;  %v644_v23 = vld [vmem:[%s2540_s4 + $0x18] sm:$0xff]  ;;  %v1432_v24 = vld [vmem:[%s2540_s4 + $0x168] sm:$0xff] }
 0x148   :  { %899 = vmatpush.msra.mxu2 %v1432_v24 }
 0x149   :  { %1385 = vmatpush.msk.msrb.mxu1 %vm236_vm8, %v466_v25  ;;  %v643_v25 = vld [vmem:[%s2540_s4 + $0x10] sm:$0xff] }
 0x14b   :  { %v547_v32 = vpop.f32.mrf.mxu3  ;;  %586 = vmatpush.msrb.mxu1 %v463_v26  ;;  %v1431_v26 = vld [vmem:[%s2540_s4 + $0x160] sm:$0xff] }
 0x14c   :  { %v506_v6 = vpop.f32.mrf.mxu2  ;;  %900 = vmatpush.msra.mxu2 %v1431_v26  ;;  %v1479_v26 = vld [vmem:[%s2540_s4 + $0x2a0] sm:$0xff] }
 0x14d   :  { %v548_v34 = vadd.f32 %v547_v32, %v506_v6  ;;  %587 = vmatpush.msrb.mxu1 %v460_v30 }
 0x14f   :  { %588 = vmatpush.msrb.mxu1 %v457_v33  ;;  %1391 = vmatpush.msk.msrb.mxu3 %vm236_vm8, %v548_v34  ;;  %v642_v33 = vld [vmem:[%s2540_s4 + $0x8] sm:$0xff]  ;;  %v1430_v34 = vld [vmem:[%s2540_s4 + $0x158] sm:$0xff] }
 0x150   :  { %901 = vmatpush.msra.mxu2 %v1430_v34  ;;  %v1450_v34 = vld [vmem:[%s2540_s4 + $0x1d8] sm:$0xff] }
 0x151   :  { %589 = vmatpush.msrb.mxu1 %v454_v35  ;;  %618 = vmatpush.msrb.mxu3 %v545_v39  ;;  %v641_v35 = vld [vmem:[%s2540_s4] sm:$0xff] }
 0x153   :  { %590 = vmatpush.msrb.mxu1 %v451_v36  ;;  %619 = vmatpush.msrb.mxu3 %v542_v37  ;;  %v1429_v37 = vld [vmem:[%s2540_s4 + $0x150] sm:$0xff] }
 0x154   :  { %902 = vmatpush.msra.mxu2 %v1429_v37 }
 0x155   :  { %591 = vmatpush.msrb.mxu1 %v448_v38  ;;  %620 = vmatpush.msrb.mxu3 %v539_v40  ;;  %v1462_v38 = vld [vmem:[%s2540_s4 + $0x238] sm:$0xff] }
 0x156   :  { %903 = vmatpush.msra.mxu2 %v1428_v47  ;;  %v1476_v47 = vld [vmem:[%s2540_s4 + $0x288] sm:$0xff] }
 0x157   :  { %592 = vmatpush.msrb.mxu1 %v445_v60  ;;  %621 = vmatpush.msrb.mxu3 %v536_v43  ;;  %v1399_v60 = vld [vmem:[%s2540_s4 + $0xa0] sm:$0xff] }
 0x158   :  { %1386 = vmatmul.msk.f32.vlgmr.msrb.gmra.mxu1 %vm555_vm3, %v550_v45  ;;  %732 = vmatpush.msrb.mxu0 %v1399_v60 }
 0x159   :  { %622 = vmatpush.msrb.mxu3 %v533_v8  ;;  %828 = vmatpush.msra.mxu1 %v658_v42  ;;  %v1461_v8 = vld [vmem:[%s2540_s4 + $0x230] sm:$0xff] }
 0x15a   :  { %733 = vmatpush.msrb.mxu0 %v1398_v53  ;;  %904 = vmatpush.msra.mxu2 %v1427_v50  ;;  %v1424_v53 = vld [vmem:[%s2540_s4 + $0x128] sm:$0xff] }
 0x15b   :  { %623 = vmatpush.msrb.mxu3 %v530_v46  ;;  %829 = vmatpush.msra.mxu1 %v657_v62 }
 0x15c   :  { %905 = vmatpush.msra.mxu2 %v1426_v54 }
 0x15d   :  { %624 = vmatpush.msrb.mxu3 %v527_v41  ;;  %v1397_v41 = vld [vmem:[%s2540_s4 + $0x90] sm:$0xff]  ;;  %1048 = vmatpush.msrb.mxu1 %v1462_v38 }
 0x15e   :  { %1392 = vmatmul.msk.f32.vlgmr.msrb.gmra.mxu3 %vm555_vm3, %v550_v45  ;;  %734 = vmatpush.msrb.mxu0 %v1397_v41  ;;  %v1477_v38 = vld [vmem:[%s2540_s4 + $0x290] sm:$0xff] }
 0x15f   :  { %936 = vmatpush.msra.mxu3 %v1440_v5  ;;  %1049 = vmatpush.msrb.mxu1 %v1461_v8 }
 0x160   :  { %1387 = vmatmul.msk.f32.gmra.mxu1 %vm555_vm3, %v551_v7  ;;  %785 = vmatpush.msra.mxu0 %v656_v63 }
 0x161   :  { %937 = vmatpush.msra.mxu3 %v1439_v12  ;;  %906 = vmatpush.msra.mxu2 %v1425_v27  ;;  %v1454_v12 = vld [vmem:[%s2540_s4 + $0x1f8] sm:$0xff] }
 0x162   :  { %786 = vmatpush.msra.mxu0 %v655_v0  ;;  %v1484_v0 = vld [vmem:[%s2540_s4 + $0x2c8] sm:$0xff]  ;;  %v1446_v27 = vld [vmem:[%s2540_s4 + $0x1b8] sm:$0xff] }
 0x163   :  { %907 = vmatpush.msra.mxu2 %v1424_v53  ;;  %1160 = vmatpush.msrb.mxu3 %v1484_v0  ;;  %v1473_v53 = vld [vmem:[%s2540_s4 + $0x270] sm:$0xff] }
 0x164   :  { %787 = vmatpush.msra.mxu0 %v654_v1  ;;  %v1423_v1 = vld [vmem:[%s2540_s4 + $0x120] sm:$0xff] }
 0x165   :  { %908 = vmatpush.msra.mxu2 %v1423_v1  ;;  %1161 = vmatpush.msrb.mxu3 %v1483_v9  ;;  %v1471_v1 = vld [vmem:[%s2540_s4 + $0x260] sm:$0xff] }
 0x166   :  { %1393 = vmatmul.msk.f32.gmra.mxu3 %vm555_vm3, %v551_v7  ;;  %788 = vmatpush.msra.mxu0 %v653_v2  ;;  %v1455_v2 = vld [vmem:[%s2540_s4 + $0x200] sm:$0xff] }
 0x168   :  { %1388 = vmatmul.msk.f32.gmra.mxu1 %vm555_vm3, %v552_v52  ;;  %789 = vmatpush.msra.mxu0 %v652_v4 }
 0x16a   :  { %790 = vmatpush.msra.mxu0 %v651_v10 }
 0x16c   :  { %791 = vmatpush.msra.mxu0 %v650_v21  ;;  %v1482_v21 = vld [vmem:[%s2540_s4 + $0x2b8] sm:$0xff] }
 0x16e   :  { %1394 = vmatmul.msk.f32.gmra.mxu3 %vm555_vm3, %v552_v52  ;;  %792 = vmatpush.msra.mxu0 %v649_v13  ;;  %v1481_v13 = vld [vmem:[%s2540_s4 + $0x2b0] sm:$0xff] }
 0x170   :  { %1389 = vmatmul.msk.f32.gmra.mxu1 %vm555_vm3, %v553_v56  ;;  %793 = vmatpush.msra.mxu0 %v648_v15 }
 0x172   :  { %794 = vmatpush.msra.mxu0 %v647_v17 }
 0x174   :  { %795 = vmatpush.msra.mxu0 %v646_v20 }
 0x176   :  { %1395 = vmatmul.msk.f32.gmra.mxu3 %vm555_vm3, %v553_v56  ;;  %796 = vmatpush.msra.mxu0 %v645_v31  ;;  %v1452_v31 = vld [vmem:[%s2540_s4 + $0x1e8] sm:$0xff] }
 0x178   :  { %1390 = vmatmul.msk.f32.gmra.mxu1 %vm555_vm3, %v554_v3  ;;  %797 = vmatpush.msra.mxu0 %v644_v23 }
 0x17a   :  { %798 = vmatpush.msra.mxu0 %v643_v25  ;;  %v1451_v25 = vld [vmem:[%s2540_s4 + $0x1e0] sm:$0xff] }
 0x17c   :  { %799 = vmatpush.msra.mxu0 %v642_v33 }
 0x17e   :  { %1396 = vmatmul.msk.f32.gmra.mxu3 %vm555_vm3, %v554_v3  ;;  %800 = vmatpush.msra.mxu0 %v641_v35  ;;  %v1457_v3 = vld [vmem:[%s2540_s4 + $0x210] sm:$0xff]  ;;  %v1478_v35 = vld [vmem:[%s2540_s4 + $0x298] sm:$0xff] }
 0x1d5   :  { %v2055_v19 = vpop.f32.mrf.mxu1 }
 0x1d6   :  { %v688_v30 = vrot.slane %v2055_v19, 1  ;;  %v975_v32 = vrot.slane %v2055_v19, 3  ;;  %v1087_v39 = vrot.slane %v2055_v19, 4 }
 0x1dd   :  { %v2083_v6 = vpop.f32.mrf.mxu1 }
 0x1de   :  { %v689_v36 = vrot.slane %v2083_v6, 1  ;;  %v976_v40 = vrot.slane %v2083_v6, 3  ;;  %v1088_v43 = vrot.slane %v2083_v6, 4  ;;  %v864_v9 = vrot.slane %v2083_v6, 2 }
 0x1e0   :  { %v690_v45 = vsel %vm236_vm8, %v688_v30, %v689_v36  ;;  %v2109_v46 = vsel %vm974_vm4, %v975_v32, %v976_v40  ;;  %v2120_v49 = vsel %vm1086_vm5, %v1087_v39, %v1088_v43 }
 0x1e1   :  { %v2111_v7 = vpop.f32.mrf.mxu3  ;;  %735 = vmatmul.f32.vlgmr.msrb.gmra.mxu0 %v690_v45 }
 0x1e2   :  { %1419 = vmatmul.msk.f32.vlgmr.msra.gmra.mxu1 %vm710_vm6, %v2111_v7  ;;  %1005 = vmatpush.msrb.mxu0 %v1460_v44  ;;  %v866_v41 = vrot.slane %v2111_v7, 2  ;;  %v691_v62 = vrot.slane %v2111_v7, 1  ;;  %v1447_v44 = vld [vmem:[%s2540_s4 + $0x1c0] sm:$0xff] }
 0x1e4   :  { %1006 = vmatpush.msrb.mxu0 %v1459_v51 }
 0x1e5   :  { %v2130_v52 = vpop.f32.mrf.mxu1 }
 0x1e6   :  { %v694_v48 = vrot.slane %v2130_v52, 1  ;;  %v981_v56 = vrot.slane %v2130_v52, 3  ;;  %v1093_v29 = vrot.slane %v2130_v52, 4  ;;  %1007 = vmatpush.msrb.mxu0 %v1458_v55  ;;  %v1475_v55 = vld [vmem:[%s2540_s4 + $0x280] sm:$0xff] }
 0x1e8   :  { %v695_v57 = vsel %vm236_vm8, %v689_v36, %v694_v48  ;;  %v2149_v58 = vsel %vm974_vm4, %v976_v40, %v981_v56  ;;  %v2152_v59 = vsel %vm1086_vm5, %v1088_v43, %v1093_v29  ;;  %1008 = vmatpush.msrb.mxu0 %v1457_v3  ;;  %v1449_v36 = vld [vmem:[%s2540_s4 + $0x1d0] sm:$0xff]  ;;  %v1448_v43 = vld [vmem:[%s2540_s4 + $0x1c8] sm:$0xff] }
 0x1e9   :  { %v2154_v60 = vpop.f32.mrf.mxu3  ;;  %738 = vmatmul.f32.gmra.mxu0 %v695_v57 }
 0x1ea   :  { %v867_v42 = vrot.slane %v2154_v60, 2  ;;  %v692_v63 = vrot.slane %v2154_v60, 1  ;;  %1420 = vmatmul.msk.f32.gmra.mxu1 %vm710_vm6, %v2154_v60  ;;  %1009 = vmatpush.msrb.mxu0 %v1456_v28  ;;  %v979_v54 = vrot.slane %v2154_v60, 3 }
 0x1ec   :  { %v693_v4 = vsel %vm236_vm8, %v691_v62, %v692_v63  ;;  %v868_v5 = vsel %vm862_vm7, %v866_v41, %v867_v42  ;;  %1010 = vmatpush.msrb.mxu0 %v1455_v2  ;;  %v1470_v2 = vld [vmem:[%s2540_s4 + $0x258] sm:$0xff] }
 0x1ed   :  { %v2182_v10 = vpop.f32.mrf.mxu1  ;;  %1415 = vmatmul.msk.f32.vlgmr.msrb.gmra.mxu2 %vm710_vm6, %v693_v4  ;;  %1441 = vmatmul.msk.f32.vlgmr.msra.gmra.mxu3 %vm710_vm6, %v868_v5  ;;  %v1091_v4 = vrot.slane %v2154_v60, 4  ;;  %v863_v5 = vrot.slane %v2055_v19, 2 }
 0x1ee   :  { %v698_v61 = vrot.slane %v2182_v10, 1  ;;  %v985_v14 = vrot.slane %v2182_v10, 3  ;;  %v1097_v15 = vrot.slane %v2182_v10, 4  ;;  %1117 = vmatpush.msrb.mxu2 %v1482_v21  ;;  %1011 = vmatpush.msrb.mxu0 %v1454_v12  ;;  %v1469_v21 = vld [vmem:[%s2540_s4 + $0x250] sm:$0xff] }
 0x1ef   :  { %v865_v60 = vsel %vm862_vm7, %v863_v5, %v864_v9 }
 0x1f0   :  { %v699_v17 = vsel %vm236_vm8, %v694_v48, %v698_v61  ;;  %v2205_v18 = vsel %vm974_vm4, %v981_v56, %v985_v14  ;;  %v2210_v20 = vsel %vm1086_vm5, %v1093_v29, %v1097_v15  ;;  %1118 = vmatpush.msrb.mxu2 %v1481_v13  ;;  %1012 = vmatpush.msrb.mxu0 %v1453_v16  ;;  %v978_v48 = vrot.slane %v2111_v7, 3  ;;  %v1474_v56 = vld [vmem:[%s2540_s4 + $0x278] sm:$0xff]  ;;  %v1445_v29 = vld [vmem:[%s2540_s4 + $0x1b0] sm:$0xff] }
 0x1f1   :  { %v2212_v22 = vpop.f32.mrf.mxu3  ;;  %741 = vmatmul.f32.gmra.mxu0 %v699_v17  ;;  %v869_v16 = vrot.slane %v2130_v52, 2 }
 0x1f2   :  { %v696_v23 = vrot.slane %v2212_v22, 1  ;;  %v871_v24 = vrot.slane %v2212_v22, 2  ;;  %1421 = vmatmul.msk.f32.gmra.mxu1 %vm710_vm6, %v2212_v22  ;;  %1119 = vmatpush.msrb.mxu2 %v1480_v11  ;;  %v980_v57 = vsel %vm974_vm4, %v978_v48, %v979_v54  ;;  %v983_v0 = vrot.slane %v2212_v22, 3 }
 0x1f3   :  { %1013 = vmatpush.msrb.mxu0 %v1452_v31  ;;  %v1095_v17 = vrot.slane %v2212_v22, 4  ;;  %v870_v11 = vsel %vm862_vm7, %v864_v9, %v869_v16 }
 0x1f4   :  { %v697_v30 = vsel %vm236_vm8, %v692_v63, %v696_v23  ;;  %v872_v32 = vsel %vm862_vm7, %v867_v42, %v871_v24  ;;  %1120 = vmatpush.msrb.mxu2 %v1479_v26  ;;  %v1472_v42 = vld [vmem:[%s2540_s4 + $0x268] sm:$0xff]  ;;  %v984_v12 = vsel %vm974_vm4, %v979_v54, %v983_v0 }
 0x1f5   :  { %v2232_v33 = vpop.f32.mrf.mxu1  ;;  %1416 = vmatmul.msk.f32.gmra.mxu2 %vm710_vm6, %v697_v30  ;;  %1442 = vmatmul.msk.f32.gmra.mxu3 %vm710_vm6, %v872_v32 }
 0x1f6   :  { %v702_v39 = vrot.slane %v2232_v33, 1  ;;  %1014 = vmatpush.msrb.mxu0 %v1451_v25  ;;  %1121 = vmatpush.msrb.mxu2 %v1478_v35  ;;  %v873_v25 = vrot.slane %v2182_v10, 2 }
 0x1f8   :  { %v703_v37 = vsel %vm236_vm8, %v698_v61, %v702_v39  ;;  %1015 = vmatpush.msrb.mxu0 %v1450_v34  ;;  %1122 = vmatpush.msrb.mxu2 %v1477_v38  ;;  %v1090_v61 = vrot.slane %v2111_v7, 4  ;;  %v1467_v7 = vld [vmem:[%s2540_s4 + $0x240] sm:$0xff]  ;;  %v874_v26 = vsel %vm862_vm7, %v869_v16, %v873_v25  ;;  %v877_v34 = vrot.slane %v2232_v33, 2 }
 0x1f9   :  { %v2250_v40 = vpop.f32.mrf.mxu3  ;;  %744 = vmatmul.f32.gmra.mxu0 %v703_v37  ;;  %v1101_v37 = vrot.slane %v2232_v33, 4 }
 0x1fa   :  { %v700_v45 = vrot.slane %v2250_v40, 1  ;;  %v875_v8 = vrot.slane %v2250_v40, 2  ;;  %1422 = vmatmul.msk.f32.gmra.mxu1 %vm710_vm6, %v2250_v40  ;;  %1016 = vmatpush.msrb.mxu0 %v1449_v36  ;;  %v1092_v13 = vsel %vm1086_vm5, %v1090_v61, %v1091_v4  ;;  %v1099_v22 = vrot.slane %v2250_v40, 4 }
 0x1fb   :  { %1123 = vmatpush.msrb.mxu2 %v1476_v47  ;;  %v878_v35 = vsel %vm862_vm7, %v873_v25, %v877_v34  ;;  %v989_v36 = vrot.slane %v2232_v33, 3 }
 0x1fc   :  { %v701_v50 = vsel %vm236_vm8, %v696_v23, %v700_v45  ;;  %v876_v51 = vsel %vm862_vm7, %v871_v24, %v875_v8  ;;  %1017 = vmatpush.msrb.mxu0 %v1448_v43  ;;  %v1096_v23 = vsel %vm1086_vm5, %v1091_v4, %v1095_v17  ;;  %v1100_v30 = vsel %vm1086_vm5, %v1095_v17, %v1099_v22 }
 0x1fd   :  { %1417 = vmatmul.msk.f32.gmra.mxu2 %vm710_vm6, %v701_v50  ;;  %1443 = vmatmul.msk.f32.gmra.mxu3 %vm710_vm6, %v876_v51 }
 0x1fe   :  { %1018 = vmatpush.msrb.mxu0 %v1447_v44  ;;  %1124 = vmatpush.msrb.mxu2 %v1475_v55 }
 0x200   :  { %1019 = vmatpush.msrb.mxu0 %v1446_v27  ;;  %1125 = vmatpush.msrb.mxu2 %v1474_v56 }
 0x201   :  { %v2283_v3 = vpop.f32.mrf.mxu3  ;;  %801 = vmatmul.f32.vlgmr.msra.gmra.mxu0 %v2055_v19  ;;  %v1468_v19 = vld [vmem:[%s2540_s4 + $0x248] sm:$0xff] }
 0x202   :  { %v704_v28 = vrot.slane %v2283_v3, 1  ;;  %v879_v41 = vrot.slane %v2283_v3, 2  ;;  %1463 = vmatmul.msk.f32.vlgmr.msrb.gmra.mxu1 %vm710_vm6, %v980_v57  ;;  %1020 = vmatpush.msrb.mxu0 %v1445_v29  ;;  %v991_v24 = vrot.slane %v2283_v3, 3  ;;  %v1103_v32 = vrot.slane %v2283_v3, 4 }
 0x203   :  { %1126 = vmatpush.msrb.mxu2 %v1473_v53 }
 0x204   :  { %v705_v62 = vsel %vm236_vm8, %v700_v45, %v704_v28  ;;  %v880_v63 = vsel %vm862_vm7, %v875_v8, %v879_v41  ;;  %v1104_v39 = vsel %vm1086_vm5, %v1099_v22, %v1103_v32 }
 0x205   :  { %1418 = vmatmul.msk.f32.gmra.mxu2 %vm710_vm6, %v705_v62  ;;  %1444 = vmatmul.msk.f32.gmra.mxu3 %vm710_vm6, %v880_v63 }
 0x206   :  { %1127 = vmatpush.msrb.mxu2 %v1472_v42 }
 0x208   :  { %1128 = vmatpush.msrb.mxu2 %v1471_v1 }
 0x209   :  { %804 = vmatmul.f32.gmra.mxu0 %v2083_v6  ;;  %v987_v6 = vrot.slane %v2250_v40, 3 }
 0x20a   :  { %1464 = vmatmul.msk.f32.gmra.mxu1 %vm710_vm6, %v984_v12  ;;  %1129 = vmatpush.msrb.mxu2 %v1470_v2 }
 0x20b   :  { %v988_v31 = vsel %vm974_vm4, %v983_v0, %v987_v6 }
 0x20c   :  { %1130 = vmatpush.msrb.mxu2 %v1469_v21 }
 0x20d   :  { %909 = vmatmul.f32.vlgmr.msra.gmra.mxu2 %v865_v60  ;;  %1485 = vmatmul.msk.f32.vlgmr.msrb.gmra.mxu3 %vm710_vm6, %v1092_v13 }
 0x20e   :  { %1131 = vmatpush.msrb.mxu2 %v1468_v19 }
 0x210   :  { %1132 = vmatpush.msrb.mxu2 %v1467_v7  ;;  %v1498_v7 = vmov 0.0  }
 0x211   :  { %807 = vmatmul.f32.gmra.mxu0 %v2130_v52  ;;  %v992_v52 = vsel %vm974_vm4, %v987_v6, %v991_v24  ;;  %1183 = vst [vmem:[%s2542_s5 + $0x20] sm:$0xf] %v1498_v7 }
 0x212   :  { %1465 = vmatmul.msk.f32.gmra.mxu1 %vm710_vm6, %v988_v31  ;;  %1333 = vst [vmem:[%s2541_s6] sm:$0xff] %v1498_v7 }
 0x215   :  { %912 = vmatmul.f32.gmra.mxu2 %v870_v11  ;;  %1486 = vmatmul.msk.f32.gmra.mxu3 %vm710_vm6, %v1096_v23 }
 0x219   :  { %810 = vmatmul.f32.gmra.mxu0 %v2182_v10 }
 0x21a   :  { %1466 = vmatmul.msk.f32.gmra.mxu1 %vm710_vm6, %v992_v52 }
 0x21d   :  { %915 = vmatmul.f32.gmra.mxu2 %v874_v26  ;;  %1487 = vmatmul.msk.f32.gmra.mxu3 %vm710_vm6, %v1100_v30  ;;  %v1499_v30 = vmov 0  }
 0x221   :  { %1021 = vmatmul.f32.vlgmr.msrb.gmra.mxu0 %v2109_v46  ;;  %v990_v46 = vsel %vm974_vm4, %v985_v14, %v989_v36 }
 0x225   :  { %918 = vmatmul.f32.gmra.mxu2 %v878_v35  ;;  %1488 = vmatmul.msk.f32.gmra.mxu3 %vm710_vm6, %v1104_v39 }
 0x229   :  { %1024 = vmatmul.f32.gmra.mxu0 %v2149_v58  ;;  %v1102_v58 = vsel %vm1086_vm5, %v1097_v15, %v1101_v37  ;;  %v1184_v15 = vlaneseq }
 0x22b   :  { %v2383_v45 = vshrl.u32 %v1184_v15, 7 }
 0x22d   :  { %1133 = vmatmul.f32.vlgmr.msrb.gmra.mxu2 %v2120_v49  ;;  %v2388_v47 = vadd.s32 8, %v2383_v45  ;;  %v1192_v51 = vand.u32 65535, %v2383_v45  ;;  %v2397_v55 = vadd.s32 16, %v2383_v45  ;;  %v1193_v48 = vshrl.u32 %v2383_v45, 16 }
 0x22e   :  { %v2424_v9 = vadd.s32 24, %v2383_v45 }
 0x22f   :  { %v1221_v54 = vand.u32 65535, %v2388_v47  ;;  %v1250_v56 = vand.u32 65535, %v2397_v55  ;;  %v2403_v29 = vmul.u32 58254, %v1192_v51  ;;  %v1222_v3 = vshrl.u32 %v2388_v47, 16 }
 0x230   :  { %v2412_v41 = vmul.u32 14564, %v1193_v48  ;;  %v1251_v42 = vshrl.u32 %v2397_v55, 16  ;;  %v1195_v63 = vmul.u32 14564, %v1192_v51  ;;  %v1279_v31 = vand.u32 65535, %v2424_v9 }
 0x231   :  { %1027 = vmatmul.f32.gmra.mxu0 %v2205_v18  ;;  %v2406_v57 = vmul.u32 58254, %v1221_v54  ;;  %v2415_v62 = vmul.u32 58254, %v1250_v56  ;;  %v1199_v0 = vshll.u32 %v2403_v29, 16  ;;  %v1224_v2 = vmul.u32 14564, %v1221_v54 }
 0x232   :  { %v2420_v4 = vmul.u32 14564, %v1222_v3  ;;  %v1201_v12 = vshll.u32 %v2412_v41, 16  ;;  %v1253_v21 = vmul.u32 14564, %v1250_v56  ;;  %v2427_v61 = vmul.u32 14564, %v1251_v42 }
 0x233   :  { %v1228_v5 = vshll.u32 %v2406_v57, 16  ;;  %v1257_v19 = vshll.u32 %v2415_v62, 16  ;;  %vm2430_vm8 = vc.u32 %v1195_v63, %v1199_v0  ;;  %v1205_v13 = vadd.s32 %v1199_v0, %v1195_v63 }
 0x234   :  { %v1230_v16 = vshll.u32 %v2420_v4, 16  ;;  %v1198_v11 = vmul.u32 58254, %v1193_v48  ;;  %v1227_v23 = vmul.u32 58254, %v1222_v3  ;;  %v1280_v24 = vshrl.u32 %v2424_v9, 16 }
 0x235   :  { %1136 = vmatmul.f32.gmra.mxu2 %v2152_v59  ;;  %vm1232_vm9 = vc.u32 %v1224_v2, %v1228_v5  ;;  %v1234_v17 = vadd.s32 %v1228_v5, %v1224_v2  ;;  %v1259_v22 = vshll.u32 %v2427_v61, 16  ;;  %vm1261_vm10 = vc.u32 %v1253_v21, %v1257_v19 }
 0x236   :  { %v1263_v52 = vadd.s32 %v1257_v19, %v1253_v21  ;;  %v1283_v26 = vmul.u32 58254, %v1279_v31  ;;  %v1204_v32 = vsel %vm2430_vm8, 1, %v1499_v30  ;;  %v1233_v34 = vsel %vm1232_vm9, 1, %v1499_v30 }
 0x237   :  { %vm1207_vm11 = vc.u32 %v1205_v13, %v1201_v12  ;;  %vm1236_vm12 = vc.u32 %v1234_v17, %v1230_v16  ;;  %v1256_v39 = vmul.u32 58254, %v1251_v42  ;;  %v1262_v36 = vsel %vm1261_vm10, 1, %v1499_v30 }
 0x238   :  { %v1284_v37 = vmul.u32 14564, %v1280_v24  ;;  %v1206_v51 = vadd.s32 %v1204_v32, %v1198_v11  ;;  %v1235_v54 = vadd.s32 %v1233_v34, %v1227_v23  ;;  %vm1265_vm13 = vc.u32 %v1263_v52, %v1259_v22 }
 0x239   :  { %1030 = vmatmul.f32.gmra.mxu0 %v990_v46  ;;  %v1282_v46 = vmul.u32 14564, %v1279_v31  ;;  %v1208_v48 = vsel %vm1207_vm11, 1, %v1499_v30  ;;  %v1237_v56 = vsel %vm1236_vm12, 1, %v1499_v30  ;;  %v1264_v3 = vadd.s32 %v1262_v36, %v1256_v39 }
 0x23a   :  { %v1266_v63 = vsel %vm1265_vm13, 1, %v1499_v30  ;;  %v1288_v0 = vshll.u32 %v1284_v37, 16  ;;  %v1200_v42 = vshrl.u32 %v2403_v29, 16  ;;  %v1210_v21 = vadd.s32 %v1208_v48, %v1206_v51 }
 0x23b   :  { %v1229_v19 = vshrl.u32 %v2406_v57, 16  ;;  %v1239_v60 = vadd.s32 %v1237_v56, %v1235_v54  ;;  %v1285_v13 = vmul.u32 58254, %v1280_v24  ;;  %v1258_v7 = vshrl.u32 %v2415_v62, 16 }
 0x23c   :  { %v1268_v16 = vadd.s32 %v1266_v63, %v1264_v3  ;;  %v1202_v11 = vshrl.u32 %v2412_v41, 16  ;;  %v1211_v23 = vadd.s32 %v1210_v21, %v1200_v42  ;;  %v1231_v22 = vshrl.u32 %v2420_v4, 16 }
 0x23d   :  { %1139 = vmatmul.f32.gmra.mxu2 %v2210_v20  ;;  %v1240_v52 = vadd.s32 %v1239_v60, %v1229_v19  ;;  %v1260_v29 = vshrl.u32 %v2427_v61, 16  ;;  %v1287_v41 = vshrl.u32 %v1283_v26, 16  ;;  %v1289_v63 = vshrl.u32 %v1284_v37, 16 }
 0x23e   :  { %v1269_v39 = vadd.s32 %v1268_v16, %v1258_v7  ;;  %v1212_v36 = vadd.s32 %v1211_v23, %v1202_v11 }
 0x240   :  { %v1270_v4 = vadd.s32 %v1269_v39, %v1260_v29  ;;  %v1213_v56 = vshrl.u32 %v1212_v36, 4 }
 0x242   :  { %v1214_v21 = vmul.u32 18, %v1213_v56 }
 0x245   :  { %1142 = vmatmul.f32.gmra.mxu2 %v1102_v58  ;;  %v1286_v58 = vshll.u32 %v1283_v26, 16 }
 0x247   :  { %vm1290_vm14 = vc.u32 %v1282_v46, %v1286_v58  ;;  %v1292_v2 = vadd.s32 %v1286_v58, %v1282_v46  ;;  %v1241_v46 = vadd.s32 %v1240_v52, %v1231_v22 }
 0x248   :  { %v1291_v17 = vsel %vm1290_vm14, 1, %v1499_v30 }
 0x249   :  { %vm1294_vm15 = vc.u32 %v1292_v2, %v1288_v0  ;;  %v1293_v32 = vadd.s32 %v1291_v17, %v1285_v13  ;;  %v1242_v61 = vshrl.u32 %v1241_v46, 4  ;;  %v1271_v0 = vshrl.u32 %v1270_v4, 4 }
 0x24a   :  { %v1295_v57 = vsel %vm1294_vm15, 1, %v1499_v30  ;;  %v1215_v17 = vsub.s32 %v2383_v45, %v1214_v21 }
 0x24b   :  { %v1297_v51 = vadd.s32 %v1295_v57, %v1293_v32  ;;  %v1243_v19 = vmul.u32 18, %v1242_v61  ;;  %v1272_v7 = vmul.u32 18, %v1271_v0 }
 0x24c   :  { %vm1305_vm0 = vcmp.ne.s32.totalorder %v1215_v17, 0  ;;  %vm1309_vm1 = vcmp.lt.s32.totalorder %v1215_v17, 0 }
 0x24d   :  { %v1273_v23 = vsub.s32 %v2397_v55, %v1272_v7  ;;  %vm2489_vm6 = vmand %vm1309_vm1, %vm1305_vm0 }
 0x24f   :  { %vm1307_vm4 = vcmp.ne.s32.totalorder %v1273_v23, 0  ;;  %vm1311_vm5 = vcmp.lt.s32.totalorder %v1273_v23, 0  ;;  %v1319_v39 = vadd.s32 18, %v1273_v23 }
 0x250   :  { %vm2501_vm8 = vmand %vm1311_vm5, %vm1307_vm4 }
 0x251   :  { %v1323_v4 = vsel %vm2501_vm8, %v1319_v39, %v1273_v23 }
 0x252   :  { %vm1327_vm13 = vcmp.lt.s32.totalorder %v1323_v4, 14 }
 0x25e   :  { %v2363_v49 = vpop.f32.mrf.mxu0 }
 0x25f   :  { %v2375_v20 = vpop.f32.mrf.mxu1 }
 0x266   :  { %v2365_v18 = vpop.f32.mrf.mxu0 }
 0x267   :  { %v2390_v44 = vpop.f32.mrf.mxu1 }
 0x26e   :  { %v2367_v38 = vpop.f32.mrf.mxu0 }
 0x26f   :  { %v2418_v1 = vpop.f32.mrf.mxu1 }
 0x270   :  { %v2369_v59 = vpop.f32.mrf.mxu2  ;;  %v2381_v43 = vpop.f32.mrf.mxu3 }
 0x271   :  { %v766_v24 = vadd.f32 %v2369_v59, %v2363_v49  ;;  %v1298_v49 = vadd.s32 %v1297_v51, %v1287_v41 }
 0x273   :  { %v1299_v13 = vadd.s32 %v1298_v49, %v1289_v63 }
 0x276   :  { %v2371_v40 = vpop.f32.mrf.mxu0 }
 0x277   :  { %v2452_v15 = vpop.f32.mrf.mxu1 }
 0x278   :  { %v2373_v14 = vpop.f32.mrf.mxu2  ;;  %v2399_v27 = vpop.f32.mrf.mxu3 }
 0x279   :  { %v769_v2 = vadd.f32 %v2373_v14, %v2365_v18  ;;  %v1244_v18 = vsub.s32 %v2388_v47, %v1243_v19 }
 0x27b   :  { %vm1306_vm2 = vcmp.ne.s32.totalorder %v1244_v18, 0  ;;  %vm1310_vm3 = vcmp.lt.s32.totalorder %v1244_v18, 0 }
 0x27c   :  { %vm2493_vm7 = vmand %vm1310_vm3, %vm1306_vm2 }
 0x27e   :  { %v2377_v33 = vpop.f32.mrf.mxu0 }
 0x27f   :  { %v1051_v34 = vpop.f32.mrf.mxu1  ;;  %v803_v58 = vadd.f32 %v2377_v33, %v766_v24 }
 0x280   :  { %v2379_v10 = vpop.f32.mrf.mxu2  ;;  %v2434_v6 = vpop.f32.mrf.mxu3 }
 0x281   :  { %v832_v30 = vadd.f32 %v2375_v20, %v803_v58  ;;  %v772_v11 = vadd.f32 %v2379_v10, %v2367_v38 }
 0x286   :  { %v2385_v8 = vpop.f32.mrf.mxu0 }
 0x287   :  { %v1054_v26 = vpop.f32.mrf.mxu1  ;;  %v806_v60 = vadd.f32 %v2385_v8, %v769_v2  ;;  %v1300_v8 = vshrl.u32 %v1299_v13, 4 }
 0x288   :  { %v2392_v50 = vpop.f32.mrf.mxu2  ;;  %v2454_v5 = vpop.f32.mrf.mxu3 }
 0x289   :  { %v835_v14 = vadd.f32 %v2390_v44, %v806_v60  ;;  %v1301_v52 = vmul.u32 18, %v1300_v8  ;;  %v775_v36 = vadd.f32 %v2392_v50, %v2371_v40 }
 0x28e   :  { %v2408_v53 = vpop.f32.mrf.mxu0 }
 0x28f   :  { %v1057_v32 = vpop.f32.mrf.mxu1 }
 0x290   :  { %v2410_v28 = vpop.f32.mrf.mxu2  ;;  %v1163_v54 = vpop.f32.mrf.mxu3 }
 0x291   :  { %v940_v48 = vadd.f32 %v2381_v43, %v2410_v28 }
 0x293   :  { %v951_v33 = vadd.f32 %v940_v48, %v832_v30 }
 0x296   :  { %v2450_v35 = vpop.f32.mrf.mxu0 }
 0x297   :  { %v1060_v30 = vpop.f32.mrf.mxu1 }
 0x298   :  { %v2445_v25 = vpop.f32.mrf.mxu2  ;;  %v1166_v16 = vpop.f32.mrf.mxu3 }
 0x299   :  { %v943_v20 = vadd.f32 %v2399_v27, %v2445_v25  ;;  %v809_v25 = vadd.f32 %v2408_v53, %v772_v11  ;;  %v1318_v53 = vadd.s32 18, %v1244_v18 }
 0x29b   :  { %v952_v27 = vadd.f32 %v943_v20, %v835_v14  ;;  %v838_v57 = vadd.f32 %v2418_v1, %v809_v25  ;;  %v1322_v41 = vsel %vm2493_vm7, %v1318_v53, %v1244_v18  ;;  %v812_v1 = vadd.f32 %v2450_v35, %v775_v36 }
 0x29c   :  { %vm1326_vm11 = vcmp.lt.s32.totalorder %v1322_v41, 14 }
 0x29e   :  { %v1022_v31 = vpop.f32.mrf.mxu0 }
 0x29f   :  { %v1052_v3 = vadd.f32 %v1051_v34, %v1022_v31  ;;  %v1317_v34 = vadd.s32 18, %v1215_v17 }
 0x2a0   :  { %v2456_v12 = vpop.f32.mrf.mxu2  ;;  %v1169_v46 = vpop.f32.mrf.mxu3 }
 0x2a1   :  { %v1063_v43 = vadd.f32 %v1052_v3, %v951_v33  ;;  %v946_v38 = vadd.f32 %v2434_v6, %v2456_v12  ;;  %v1302_v12 = vsub.s32 %v2424_v9, %v1301_v52  ;;  %v1321_v51 = vsel %vm2489_vm6, %v1317_v34, %v1215_v17 }
 0x2a2   :  { %vm1325_vm12 = vcmp.lt.s32.totalorder %v1321_v51, 14  ;;  %v841_v3 = vadd.f32 %v2452_v15, %v812_v1 }
 0x2a3   :  { %v953_v58 = vadd.f32 %v946_v38, %v838_v57  ;;  %vm1308_vm9 = vcmp.ne.s32.totalorder %v1302_v12, 0  ;;  %vm1312_vm10 = vcmp.lt.s32.totalorder %v1302_v12, 0  ;;  %v1320_v61 = vadd.s32 18, %v1302_v12 }
 0x2a4   :  { %vm2517_vm14 = vmand %vm1312_vm10, %vm1308_vm9 }
 0x2a6   :  { %v1025_v59 = vpop.f32.mrf.mxu0 }
 0x2a7   :  { %v1055_v31 = vadd.f32 %v1054_v26, %v1025_v59 }
 0x2a8   :  { %v2466_v62 = vpop.f32.mrf.mxu2  ;;  %v1172_v2 = vpop.f32.mrf.mxu3 }
 0x2a9   :  { %v1064_v47 = vadd.f32 %v1055_v31, %v952_v27  ;;  %v949_v40 = vadd.f32 %v2454_v5, %v2466_v62  ;;  %v1324_v62 = vsel %vm2517_vm14, %v1320_v61, %v1302_v12 }
 0x2aa   :  { %vm1328_vm15 = vcmp.lt.s32.totalorder %v1324_v62, 14 }
 0x2ab   :  { %v954_v59 = vadd.f32 %v949_v40, %v841_v3 }
 0x2ae   :  { %v1028_v22 = vpop.f32.mrf.mxu0 }
 0x2af   :  { %v1058_v24 = vadd.f32 %v1057_v32, %v1028_v22 }
 0x2b0   :  { %v1134_v42 = vpop.f32.mrf.mxu2 }
 0x2b1   :  { %v1164_v28 = vadd.f32 %v1163_v54, %v1134_v42  ;;  %v1065_v48 = vadd.f32 %v1058_v24, %v953_v58 }
 0x2b3   :  { %v1175_v37 = vadd.f32 %v1164_v28, %v1063_v43 }
 0x2b5   :  { %1179 = vst [vmem:[%s2542_s5] sm:$0xff] %v1175_v37  ;;  %v1329_v0 = vsel %vm1325_vm12, %v1175_v37, 0.0 }
 0x2b6   :  { %v1031_v9 = vpop.f32.mrf.mxu0  ;;  %v1344_v19 = vmul.f32 %v1329_v0, %v1329_v0 }
 0x2b7   :  { %v1061_v63 = vadd.f32 %v1060_v30, %v1031_v9 }
 0x2b8   :  { %v1137_v45 = vpop.f32.mrf.mxu2 }
 0x2b9   :  { %v1167_v44 = vadd.f32 %v1166_v16, %v1137_v45  ;;  %v1066_v42 = vadd.f32 %v1061_v63, %v954_v59 }
 0x2bb   :  { %v1176_v55 = vadd.f32 %v1167_v44, %v1064_v47 }
 0x2bd   :  { %1180 = vst [vmem:[%s2542_s5 + $0x8] sm:$0xff] %v1176_v55  ;;  %v1330_v49 = vsel %vm1326_vm11, %v1176_v55, 0.0 }
 0x2be   :  { %v1345_v33 = vmul.f32 %v1330_v49, %v1330_v49  ;;  %v1334_v60 = vadd.f32 %v1330_v49, %v1329_v0 }
 0x2c0   :  { %v1140_v54 = vpop.f32.mrf.mxu2  ;;  %v1348_v28 = vadd.f32 %v1345_v33, %v1344_v19 }
 0x2c1   :  { %v1170_v56 = vadd.f32 %v1169_v46, %v1140_v54 }
 0x2c3   :  { %v1177_v50 = vadd.f32 %v1170_v56, %v1065_v48 }
 0x2c5   :  { %1181 = vst [vmem:[%s2542_s5 + $0x10] sm:$0xff] %v1177_v50  ;;  %v1331_v5 = vsel %vm1327_vm13, %v1177_v50, 0.0 }
 0x2c6   :  { %v1346_v15 = vmul.f32 %v1331_v5, %v1331_v5  ;;  %v1335_v13 = vadd.f32 %v1334_v60, %v1331_v5 }
 0x2c8   :  { %v1143_v26 = vpop.f32.mrf.mxu2  ;;  %v1349_v20 = vadd.f32 %v1348_v28, %v1346_v15 }
 0x2c9   :  { %v1173_v21 = vadd.f32 %v1172_v2, %v1143_v26 }
 0x2cb   :  { %v1178_v43 = vadd.f32 %v1173_v21, %v1066_v42 }
 0x2cd   :  { %1182 = vst [vmem:[%s2542_s5 + $0x18] sm:$0xff] %v1178_v43  ;;  %v1332_v7 = vsel %vm1328_vm15, %v1178_v43, 0.0 }
 0x2ce   :  { %v1336_v37 = vadd.f32 %v1335_v13, %v1332_v7  ;;  %v1347_v16 = vmul.f32 %v1332_v7, %v1332_v7 }
 0x2d0   :  { %v1337_v17 = vrot.slane %v1336_v37, 4  ;;  %v1350_v18 = vadd.f32 %v1349_v20, %v1347_v16 }
 0x2d2   :  { %v1338_v14 = vadd.f32 %v1337_v17, %v1336_v37  ;;  %v1351_v31 = vrot.slane %v1350_v18, 4 }
 0x2d4   :  { %v1339_v8 = vrot.slane %v1338_v14, 2  ;;  %v1352_v11 = vadd.f32 %v1351_v31, %v1350_v18 }
 0x2d6   :  { %v1340_v23 = vadd.f32 %v1339_v8, %v1338_v14  ;;  %v1353_v27 = vrot.slane %v1352_v11, 2 }
 0x2d8   :  { %v1341_v25 = vrot.slane %v1340_v23, 1  ;;  %v1354_v22 = vadd.f32 %v1353_v27, %v1352_v11 }
 0x2da   :  { %v1342_v45 = vadd.f32 %v1341_v25, %v1340_v23  ;;  %v1355_v47 = vrot.slane %v1354_v22, 1 }
 0x2dc   :  { %1343 = vst [vmem:[%s2541_s6] sm:$0x1] %v1342_v45  ;;  %v1356_v44 = vadd.f32 %v1355_v47, %v1354_v22 }
 0x2de   :  { %1357 = vst [vmem:[%s2541_s6 + $0x1] sm:$0x1] %v1356_v44 }

</bundles_post_ra>
